<compile_context>
chip_gen: v6e
topology: v6e:2x2x1
jax: 0.10.0
libtpu: 0.0.40
codegen_flags: <defaults>
</compile_context>

<pallas_src>
import jax
import jax.numpy as jnp
from jax import lax
from jax.experimental import pallas as pl
from jax.experimental.pallas import tpu as pltpu


# ---------------------------------------------------------------------------
# Exact GELU (erf-based, matching nn.GELU() default), built only from ops with
# guaranteed Mosaic lowerings (exp / abs / where / polynomial).
# Abramowitz-Stegun 7.1.26 erf approximation, |abs error| < 1.5e-7.
# ---------------------------------------------------------------------------
def _gelu_exact(x):
    z = x * 0.7071067811865476          # x / sqrt(2)
    az = jnp.abs(z)
    t = 1.0 / (1.0 + 0.3275911 * az)
    poly = t * (0.254829592 + t * (-0.284496736 + t * (1.421413741
               + t * (-1.453152027 + t * 1.061405429))))
    erf_abs = 1.0 - poly * jnp.exp(-az * az)
    erf = jnp.where(z >= 0.0, erf_abs, -erf_abs)
    return 0.5 * x * (1.0 + erf)


# ---------------------------------------------------------------------------
# Fused kernel: one image (H, W, C) per grid step.
#   LayerNorm -> (H*W,C)@(C,4C) MXU -> GELU -> depthwise 3x3 via zero-padded VMEM
#   scratch -> GELU -> (H*W,4C)@(4C,C) MXU -> (H, W, C)
# ---------------------------------------------------------------------------
def _prenorm_ff_kernel(x_ref, g_ref, b_ref, w1_ref, wdw_ref, w2_ref, o_ref, hp_ref):
    H, W, C = x_ref.shape
    ch = w1_ref.shape[1]

    # ---- LayerNorm over channels (biased variance, eps=1e-5, affine) ----
    x = x_ref[...].reshape(H * W, C)
    mu = jnp.mean(x, axis=-1, keepdims=True)
    xc = x - mu
    var = jnp.mean(xc * xc, axis=-1, keepdims=True)
    y = (xc * lax.rsqrt(var + 1e-5)) * g_ref[...] + b_ref[...]      # (H*W, C)

    # ---- 1x1 conv C -> 4C (MXU) + GELU, lane-dense 4C=128 ----
    h = jnp.dot(y, w1_ref[...], preferred_element_type=jnp.float32)  # (H*W, 4C)
    h = _gelu_exact(h)

    # ---- zero-halo hidden in VMEM scratch (replaces the old HBM jnp.pad) ----
    hp_ref[...] = jnp.zeros_like(hp_ref)                             # keeps the 1-px border 0
    hp_ref[1:H + 1, 1:W + 1, :] = h.reshape(H, W, ch)

    # ---- depthwise 3x3 (pad 1): dy = major-dim ref slice, dx = sublane value slice ----
    acc = jnp.zeros((H, W, ch), jnp.float32)
    for dy in range(3):
        rows = hp_ref[dy:dy + H, :, :]                               # (H, W+2, 4C)
        for dx in range(3):
            acc = acc + rows[:, dx:dx + W, :] * wdw_ref[3 * dy + dx]  # (1,4C) bcast weight
    g2 = _gelu_exact(acc).reshape(H * W, ch)

    # ---- 1x1 conv 4C -> C (MXU) ----
    out = jnp.dot(g2, w2_ref[...], preferred_element_type=jnp.float32)
    o_ref[...] = out.reshape(H, W, C)


def prenorm_forward(x, params):
    """x: (B, H, W, C) f32 -> PreNorm(FeedForward)(x): (B, H, W, C) f32."""
    b, h, w, c = x.shape
    ch = params["w1"].shape[1]                           # 4 * dim
    gamma = params["gamma"].reshape(1, c)
    beta = params["beta"].reshape(1, c)
    w_dw9 = params["w_dw"].reshape(9, 1, ch)             # (3,3,4C) taps -> tap-major

    # TODO(synk): for very large H*W a second grid axis over row tiles (with a 1-row halo
    # re-fetch) would bound the per-step VMEM scratch; not needed at these sizes.
    return pl.pallas_call(
        _prenorm_ff_kernel,
        out_shape=jax.ShapeDtypeStruct((b, h, w, c), jnp.float32),
        grid_spec=pltpu.PrefetchScalarGridSpec(
            num_scalar_prefetch=0,
            grid=(b,),
            in_specs=[
                pl.BlockSpec((None, h, w, c), lambda i: (i, 0, 0, 0)),   # x, one image
                pl.BlockSpec((1, c), lambda i: (0, 0)),                  # LayerNorm weight
                pl.BlockSpec((1, c), lambda i: (0, 0)),                  # LayerNorm bias
                pl.BlockSpec((c, ch), lambda i: (0, 0)),                 # 1x1 conv (C, 4C)
                pl.BlockSpec((9, 1, ch), lambda i: (0, 0, 0)),           # dw 3x3 taps
                pl.BlockSpec((ch, c), lambda i: (0, 0)),                 # 1x1 conv (4C, C)
            ],
            out_specs=pl.BlockSpec((None, h, w, c), lambda i: (i, 0, 0, 0)),
            scratch_shapes=[pltpu.VMEM((h + 2, w + 2, ch), jnp.float32)],
        ),
        compiler_params=pltpu.CompilerParams(dimension_semantics=("parallel",)),
    )(x, gamma, beta, params["w1"], w_dw9, params["w2"])


# ---------------------------------------------------------------------------
# Pure-JAX reference (for a sanity check in __main__).
# ---------------------------------------------------------------------------
def _reference(x, params):
    H, W = x.shape[1], x.shape[2]
    mu = jnp.mean(x, -1, keepdims=True)
    var = jnp.mean((x - mu) ** 2, -1, keepdims=True)
    y = (x - mu) / jnp.sqrt(var + 1e-5) * params["gamma"] + params["beta"]
    h = jax.nn.gelu(jnp.einsum("bhwc,cd->bhwd", y, params["w1"]), approximate=False)
    hp = jnp.pad(h, ((0, 0), (1, 1), (1, 1), (0, 0)))
    acc = jnp.zeros_like(h)
    for dy in range(3):
        for dx in range(3):
            acc = acc + hp[:, dy:dy + H, dx:dx + W, :] * params["w_dw"][dy, dx]
    g = jax.nn.gelu(acc, approximate=False)
    return jnp.einsum("bhwd,dc->bhwc", g, params["w2"])


if __name__ == "__main__":
    key = jax.random.PRNGKey(0)
    b, h, w, c = 2, 16, 16, 32        # dim = 32, FeedForward hidden = 4 * dim = 128
    ch = 4 * c
    ks = jax.random.split(key, 6)
    x = jax.random.normal(ks[0], (b, h, w, c), jnp.float32)

    scale = 0.05
    params = {
        # nn.LayerNorm(dim).{weight,bias}  (torch default init is ones/zeros; randomized here)
        "gamma": 1.0 + 0.1 * jax.random.normal(ks[1], (c,), jnp.float32),
        "beta":  0.1 * jax.random.normal(ks[2], (c,), jnp.float32),
        # Conv2d(dim, 4*dim, 1, bias=False).weight[:, :, 0, 0].T            -> (C, 4C)
        "w1":    scale * jax.random.normal(ks[3], (c, ch), jnp.float32),
        # Conv2d(4*dim, 4*dim, 3, pad=1, groups=4*dim, bias=False).weight[:, 0]
        #   transposed to (kh, kw, 4C)                                      -> (3, 3, 4C)
        "w_dw":  scale * jax.random.normal(ks[4], (3, 3, ch), jnp.float32),
        # Conv2d(4*dim, dim, 1, bias=False).weight[:, :, 0, 0].T            -> (4C, C)
        "w2":    scale * jax.random.normal(ks[5], (ch, c), jnp.float32),
    }

    out = prenorm_forward(x, params)
    jax.block_until_ready(out)
    assert out.shape == (b, h, w, c) and out.dtype == jnp.float32

    ref = _reference(x, params)
    err = float(jnp.max(jnp.abs(out - ref)))
    assert err < 5e-3, f"max abs err vs reference = {err}"
    print("KERNEL_OK")
</pallas_src>

<mosaic_0001>
module attributes {stable_mosaic.version = 11 : i64} {
  func.func @_prenorm_ff_kernel(%arg0: i32, %arg1: memref<1x16x16x32xf32, #tpu.memory_space<vmem>>, %arg2: memref<1x32xf32, #tpu.memory_space<vmem>>, %arg3: memref<1x32xf32, #tpu.memory_space<vmem>>, %arg4: memref<32x128xf32, #tpu.memory_space<vmem>>, %arg5: memref<9x1x128xf32, #tpu.memory_space<vmem>>, %arg6: memref<128x32xf32, #tpu.memory_space<vmem>>, %arg7: memref<1x16x16x32xf32, #tpu.memory_space<vmem>>, %arg8: memref<18x18x128xf32, #tpu.memory_space<vmem>>) attributes {dimension_semantics = [#tpu.dimension_semantics<parallel>], iteration_bounds = array<i64: 2>, scalar_prefetch = 0 : i64, scratch_operands = 1 : i64, tpu.core_type = #tpu.core_type<tc>, window_params = [{transform_indices = @transform_0, window_bounds = array<i64: 1, 16, 16, 32>}, {pipeline_mode = #tpu.pipeline_mode<synchronous>, transform_indices = @transform_1, window_bounds = array<i64: 1, 32>}, {pipeline_mode = #tpu.pipeline_mode<synchronous>, transform_indices = @transform_2, window_bounds = array<i64: 1, 32>}, {pipeline_mode = #tpu.pipeline_mode<synchronous>, transform_indices = @transform_3, window_bounds = array<i64: 32, 128>}, {pipeline_mode = #tpu.pipeline_mode<synchronous>, transform_indices = @transform_4, window_bounds = array<i64: 9, 1, 128>}, {pipeline_mode = #tpu.pipeline_mode<synchronous>, transform_indices = @transform_5, window_bounds = array<i64: 128, 32>}, {transform_indices = @transform_6, window_bounds = array<i64: 1, 16, 16, 32>}]} {
    %c0 = arith.constant 0 : index
    %c0_0 = arith.constant 0 : index
    %c0_1 = arith.constant 0 : index
    %c0_2 = arith.constant 0 : index
    %0 = vector.load %arg1[%c0, %c0_0, %c0_1, %c0_2] : memref<1x16x16x32xf32, #tpu.memory_space<vmem>>, vector<1x16x16x32xf32>
    %1 = vector.shape_cast %0 : vector<1x16x16x32xf32> to vector<16x16x32xf32>
    %2 = vector.shape_cast %1 : vector<16x16x32xf32> to vector<256x32xf32>
    %cst = arith.constant dense<0.000000e+00> : vector<256xf32>
    %3 = vector.multi_reduction <add>, %2, %cst [1] : vector<256x32xf32> to vector<256xf32>
    %4 = vector.shape_cast %3 : vector<256xf32> to vector<256x1xf32>
    %cst_3 = arith.constant 3.200000e+01 : f32
    %5 = vector.broadcast %cst_3 : f32 to vector<256x1xf32>
    %6 = arith.divf %4, %5 : vector<256x1xf32>
    %7 = vector.broadcast %6 : vector<256x1xf32> to vector<256x32xf32>
    %8 = arith.subf %2, %7 : vector<256x32xf32>
    %9 = arith.mulf %8, %8 : vector<256x32xf32>
    %cst_4 = arith.constant dense<0.000000e+00> : vector<256xf32>
    %10 = vector.multi_reduction <add>, %9, %cst_4 [1] : vector<256x32xf32> to vector<256xf32>
    %11 = vector.shape_cast %10 : vector<256xf32> to vector<256x1xf32>
    %cst_5 = arith.constant 3.200000e+01 : f32
    %12 = vector.broadcast %cst_5 : f32 to vector<256x1xf32>
    %13 = arith.divf %11, %12 : vector<256x1xf32>
    %cst_6 = arith.constant 9.99999974E-6 : f32
    %14 = vector.broadcast %cst_6 : f32 to vector<256x1xf32>
    %15 = arith.addf %13, %14 : vector<256x1xf32>
    %16 = math.rsqrt %15 : vector<256x1xf32>
    %17 = vector.broadcast %16 : vector<256x1xf32> to vector<256x32xf32>
    %18 = arith.mulf %8, %17 : vector<256x32xf32>
    %c0_7 = arith.constant 0 : index
    %c0_8 = arith.constant 0 : index
    %19 = vector.load %arg2[%c0_7, %c0_8] : memref<1x32xf32, #tpu.memory_space<vmem>>, vector<1x32xf32>
    %20 = vector.broadcast %19 : vector<1x32xf32> to vector<256x32xf32>
    %21 = arith.mulf %18, %20 : vector<256x32xf32>
    %c0_9 = arith.constant 0 : index
    %c0_10 = arith.constant 0 : index
    %22 = vector.load %arg3[%c0_9, %c0_10] : memref<1x32xf32, #tpu.memory_space<vmem>>, vector<1x32xf32>
    %23 = vector.broadcast %22 : vector<1x32xf32> to vector<256x32xf32>
    %24 = arith.addf %21, %23 : vector<256x32xf32>
    %c0_11 = arith.constant 0 : index
    %c0_12 = arith.constant 0 : index
    %25 = vector.load %arg4[%c0_11, %c0_12] : memref<32x128xf32, #tpu.memory_space<vmem>>, vector<32x128xf32>
    %cst_13 = arith.constant dense<0.000000e+00> : vector<256x128xf32>
    %26 = tpu.matmul %24, %25, %cst_13 {dimension_numbers = #tpu.dot_dimension_numbers<[1], [0], [0], [1], [0, 0, 1, 1], [], []>} : vector<256x32xf32>, vector<32x128xf32>, vector<256x128xf32> -> vector<256x128xf32>
    %cst_14 = arith.constant 0.707106769 : f32
    %27 = vector.broadcast %cst_14 : f32 to vector<256x128xf32>
    %28 = arith.mulf %26, %27 : vector<256x128xf32>
    %29 = math.absf %28 : vector<256x128xf32>
    %cst_15 = arith.constant 0.327591091 : f32
    %30 = vector.broadcast %cst_15 : f32 to vector<256x128xf32>
    %31 = arith.mulf %30, %29 : vector<256x128xf32>
    %cst_16 = arith.constant 1.000000e+00 : f32
    %32 = vector.broadcast %cst_16 : f32 to vector<256x128xf32>
    %33 = arith.addf %32, %31 : vector<256x128xf32>
    %cst_17 = arith.constant 1.000000e+00 : f32
    %34 = vector.broadcast %cst_17 : f32 to vector<256x128xf32>
    %35 = arith.divf %34, %33 : vector<256x128xf32>
    %cst_18 = arith.constant 1.06140542 : f32
    %36 = vector.broadcast %cst_18 : f32 to vector<256x128xf32>
    %37 = arith.mulf %35, %36 : vector<256x128xf32>
    %cst_19 = arith.constant -1.45315206 : f32
    %38 = vector.broadcast %cst_19 : f32 to vector<256x128xf32>
    %39 = arith.addf %38, %37 : vector<256x128xf32>
    %40 = arith.mulf %35, %39 : vector<256x128xf32>
    %cst_20 = arith.constant 1.42141378 : f32
    %41 = vector.broadcast %cst_20 : f32 to vector<256x128xf32>
    %42 = arith.addf %41, %40 : vector<256x128xf32>
    %43 = arith.mulf %35, %42 : vector<256x128xf32>
    %cst_21 = arith.constant -0.284496725 : f32
    %44 = vector.broadcast %cst_21 : f32 to vector<256x128xf32>
    %45 = arith.addf %44, %43 : vector<256x128xf32>
    %46 = arith.mulf %35, %45 : vector<256x128xf32>
    %cst_22 = arith.constant 0.254829586 : f32
    %47 = vector.broadcast %cst_22 : f32 to vector<256x128xf32>
    %48 = arith.addf %47, %46 : vector<256x128xf32>
    %49 = arith.mulf %35, %48 : vector<256x128xf32>
    %cst_23 = arith.constant 0.000000e+00 : f32
    %50 = vector.broadcast %cst_23 : f32 to vector<256x128xf32>
    %51 = arith.subf %50, %29 : vector<256x128xf32>
    %52 = arith.mulf %51, %29 : vector<256x128xf32>
    %53 = math.exp %52 : vector<256x128xf32>
    %54 = arith.mulf %49, %53 : vector<256x128xf32>
    %cst_24 = arith.constant 1.000000e+00 : f32
    %55 = vector.broadcast %cst_24 : f32 to vector<256x128xf32>
    %56 = arith.subf %55, %54 : vector<256x128xf32>
    %cst_25 = arith.constant 0.000000e+00 : f32
    %57 = vector.broadcast %cst_25 : f32 to vector<256x128xf32>
    %58 = arith.cmpf oge, %28, %57 : vector<256x128xf32>
    %cst_26 = arith.constant 0.000000e+00 : f32
    %59 = vector.broadcast %cst_26 : f32 to vector<256x128xf32>
    %60 = arith.subf %59, %56 : vector<256x128xf32>
    %61 = arith.select %58, %56, %60 : vector<256x128xi1>, vector<256x128xf32>
    %cst_27 = arith.constant 5.000000e-01 : f32
    %62 = vector.broadcast %cst_27 : f32 to vector<256x128xf32>
    %63 = arith.mulf %62, %26 : vector<256x128xf32>
    %cst_28 = arith.constant 1.000000e+00 : f32
    %64 = vector.broadcast %cst_28 : f32 to vector<256x128xf32>
    %65 = arith.addf %64, %61 : vector<256x128xf32>
    %66 = arith.mulf %63, %65 : vector<256x128xf32>
    %cst_29 = arith.constant 0.000000e+00 : f32
    %67 = vector.broadcast %cst_29 : f32 to vector<18x18x128xf32>
    %c0_30 = arith.constant 0 : index
    %c0_31 = arith.constant 0 : index
    %c0_32 = arith.constant 0 : index
    %68 = vector.load %arg8[%c0_30, %c0_31, %c0_32] : memref<18x18x128xf32, #tpu.memory_space<vmem>>, vector<18x18x128xf32>
    tpu.vector_store %arg8[%c0_30, %c0_31, %c0_32], %67 {strides = array<i32>} : memref<18x18x128xf32, #tpu.memory_space<vmem>>, vector<18x18x128xf32>,
    %69 = vector.shape_cast %66 : vector<256x128xf32> to vector<16x16x128xf32>
    %c1 = arith.constant 1 : index
    %c1_33 = arith.constant 1 : index
    %c0_34 = arith.constant 0 : index
    %70 = vector.load %arg8[%c1, %c1_33, %c0_34] : memref<18x18x128xf32, #tpu.memory_space<vmem>>, vector<16x16x128xf32>
    tpu.vector_store %arg8[%c1, %c1_33, %c0_34], %69 {strides = array<i32>} : memref<18x18x128xf32, #tpu.memory_space<vmem>>, vector<16x16x128xf32>,
    %cst_35 = arith.constant 0.000000e+00 : f32
    %71 = vector.broadcast %cst_35 : f32 to vector<16x16x128xf32>
    %c0_36 = arith.constant 0 : index
    %c0_37 = arith.constant 0 : index
    %c0_38 = arith.constant 0 : index
    %72 = vector.load %arg8[%c0_36, %c0_37, %c0_38] : memref<18x18x128xf32, #tpu.memory_space<vmem>>, vector<16x18x128xf32>
    %73 = vector.extract_strided_slice %72 {offsets = [0, 0, 0], sizes = [16, 16, 128], strides = [1, 1, 1]} : vector<16x18x128xf32> to vector<16x16x128xf32>
    %c0_39 = arith.constant 0 : index
    %c0_40 = arith.constant 0 : index
    %c0_41 = arith.constant 0 : index
    %74 = vector.load %arg5[%c0_39, %c0_40, %c0_41] : memref<9x1x128xf32, #tpu.memory_space<vmem>>, vector<1x1x128xf32>
    %75 = vector.shape_cast %74 : vector<1x1x128xf32> to vector<1x128xf32>
    %76 = vector.shape_cast %75 : vector<1x128xf32> to vector<1x1x128xf32>
    %77 = vector.broadcast %76 : vector<1x1x128xf32> to vector<16x16x128xf32>
    %78 = arith.mulf %73, %77 : vector<16x16x128xf32>
    %79 = arith.addf %71, %78 : vector<16x16x128xf32>
    %80 = vector.extract_strided_slice %72 {offsets = [0, 1, 0], sizes = [16, 16, 128], strides = [1, 1, 1]} : vector<16x18x128xf32> to vector<16x16x128xf32>
    %c1_42 = arith.constant 1 : index
    %c0_43 = arith.constant 0 : index
    %c0_44 = arith.constant 0 : index
    %81 = vector.load %arg5[%c1_42, %c0_43, %c0_44] : memref<9x1x128xf32, #tpu.memory_space<vmem>>, vector<1x1x128xf32>
    %82 = vector.shape_cast %81 : vector<1x1x128xf32> to vector<1x128xf32>
    %83 = vector.shape_cast %82 : vector<1x128xf32> to vector<1x1x128xf32>
    %84 = vector.broadcast %83 : vector<1x1x128xf32> to vector<16x16x128xf32>
    %85 = arith.mulf %80, %84 : vector<16x16x128xf32>
    %86 = arith.addf %79, %85 : vector<16x16x128xf32>
    %87 = vector.extract_strided_slice %72 {offsets = [0, 2, 0], sizes = [16, 16, 128], strides = [1, 1, 1]} : vector<16x18x128xf32> to vector<16x16x128xf32>
    %c2 = arith.constant 2 : index
    %c0_45 = arith.constant 0 : index
    %c0_46 = arith.constant 0 : index
    %88 = vector.load %arg5[%c2, %c0_45, %c0_46] : memref<9x1x128xf32, #tpu.memory_space<vmem>>, vector<1x1x128xf32>
    %89 = vector.shape_cast %88 : vector<1x1x128xf32> to vector<1x128xf32>
    %90 = vector.shape_cast %89 : vector<1x128xf32> to vector<1x1x128xf32>
    %91 = vector.broadcast %90 : vector<1x1x128xf32> to vector<16x16x128xf32>
    %92 = arith.mulf %87, %91 : vector<16x16x128xf32>
    %93 = arith.addf %86, %92 : vector<16x16x128xf32>
    %c1_47 = arith.constant 1 : index
    %c0_48 = arith.constant 0 : index
    %c0_49 = arith.constant 0 : index
    %94 = vector.load %arg8[%c1_47, %c0_48, %c0_49] : memref<18x18x128xf32, #tpu.memory_space<vmem>>, vector<16x18x128xf32>
    %95 = vector.extract_strided_slice %94 {offsets = [0, 0, 0], sizes = [16, 16, 128], strides = [1, 1, 1]} : vector<16x18x128xf32> to vector<16x16x128xf32>
    %c3 = arith.constant 3 : index
    %c0_50 = arith.constant 0 : index
    %c0_51 = arith.constant 0 : index
    %96 = vector.load %arg5[%c3, %c0_50, %c0_51] : memref<9x1x128xf32, #tpu.memory_space<vmem>>, vector<1x1x128xf32>
    %97 = vector.shape_cast %96 : vector<1x1x128xf32> to vector<1x128xf32>
    %98 = vector.shape_cast %97 : vector<1x128xf32> to vector<1x1x128xf32>
    %99 = vector.broadcast %98 : vector<1x1x128xf32> to vector<16x16x128xf32>
    %100 = arith.mulf %95, %99 : vector<16x16x128xf32>
    %101 = arith.addf %93, %100 : vector<16x16x128xf32>
    %102 = vector.extract_strided_slice %94 {offsets = [0, 1, 0], sizes = [16, 16, 128], strides = [1, 1, 1]} : vector<16x18x128xf32> to vector<16x16x128xf32>
    %c4 = arith.constant 4 : index
    %c0_52 = arith.constant 0 : index
    %c0_53 = arith.constant 0 : index
    %103 = vector.load %arg5[%c4, %c0_52, %c0_53] : memref<9x1x128xf32, #tpu.memory_space<vmem>>, vector<1x1x128xf32>
    %104 = vector.shape_cast %103 : vector<1x1x128xf32> to vector<1x128xf32>
    %105 = vector.shape_cast %104 : vector<1x128xf32> to vector<1x1x128xf32>
    %106 = vector.broadcast %105 : vector<1x1x128xf32> to vector<16x16x128xf32>
    %107 = arith.mulf %102, %106 : vector<16x16x128xf32>
    %108 = arith.addf %101, %107 : vector<16x16x128xf32>
    %109 = vector.extract_strided_slice %94 {offsets = [0, 2, 0], sizes = [16, 16, 128], strides = [1, 1, 1]} : vector<16x18x128xf32> to vector<16x16x128xf32>
    %c5 = arith.constant 5 : index
    %c0_54 = arith.constant 0 : index
    %c0_55 = arith.constant 0 : index
    %110 = vector.load %arg5[%c5, %c0_54, %c0_55] : memref<9x1x128xf32, #tpu.memory_space<vmem>>, vector<1x1x128xf32>
    %111 = vector.shape_cast %110 : vector<1x1x128xf32> to vector<1x128xf32>
    %112 = vector.shape_cast %111 : vector<1x128xf32> to vector<1x1x128xf32>
    %113 = vector.broadcast %112 : vector<1x1x128xf32> to vector<16x16x128xf32>
    %114 = arith.mulf %109, %113 : vector<16x16x128xf32>
    %115 = arith.addf %108, %114 : vector<16x16x128xf32>
    %c2_56 = arith.constant 2 : index
    %c0_57 = arith.constant 0 : index
    %c0_58 = arith.constant 0 : index
    %116 = vector.load %arg8[%c2_56, %c0_57, %c0_58] : memref<18x18x128xf32, #tpu.memory_space<vmem>>, vector<16x18x128xf32>
    %117 = vector.extract_strided_slice %116 {offsets = [0, 0, 0], sizes = [16, 16, 128], strides = [1, 1, 1]} : vector<16x18x128xf32> to vector<16x16x128xf32>
    %c6 = arith.constant 6 : index
    %c0_59 = arith.constant 0 : index
    %c0_60 = arith.constant 0 : index
    %118 = vector.load %arg5[%c6, %c0_59, %c0_60] : memref<9x1x128xf32, #tpu.memory_space<vmem>>, vector<1x1x128xf32>
    %119 = vector.shape_cast %118 : vector<1x1x128xf32> to vector<1x128xf32>
    %120 = vector.shape_cast %119 : vector<1x128xf32> to vector<1x1x128xf32>
    %121 = vector.broadcast %120 : vector<1x1x128xf32> to vector<16x16x128xf32>
    %122 = arith.mulf %117, %121 : vector<16x16x128xf32>
    %123 = arith.addf %115, %122 : vector<16x16x128xf32>
    %124 = vector.extract_strided_slice %116 {offsets = [0, 1, 0], sizes = [16, 16, 128], strides = [1, 1, 1]} : vector<16x18x128xf32> to vector<16x16x128xf32>
    %c7 = arith.constant 7 : index
    %c0_61 = arith.constant 0 : index
    %c0_62 = arith.constant 0 : index
    %125 = vector.load %arg5[%c7, %c0_61, %c0_62] : memref<9x1x128xf32, #tpu.memory_space<vmem>>, vector<1x1x128xf32>
    %126 = vector.shape_cast %125 : vector<1x1x128xf32> to vector<1x128xf32>
    %127 = vector.shape_cast %126 : vector<1x128xf32> to vector<1x1x128xf32>
    %128 = vector.broadcast %127 : vector<1x1x128xf32> to vector<16x16x128xf32>
    %129 = arith.mulf %124, %128 : vector<16x16x128xf32>
    %130 = arith.addf %123, %129 : vector<16x16x128xf32>
    %131 = vector.extract_strided_slice %116 {offsets = [0, 2, 0], sizes = [16, 16, 128], strides = [1, 1, 1]} : vector<16x18x128xf32> to vector<16x16x128xf32>
    %c8 = arith.constant 8 : index
    %c0_63 = arith.constant 0 : index
    %c0_64 = arith.constant 0 : index
    %132 = vector.load %arg5[%c8, %c0_63, %c0_64] : memref<9x1x128xf32, #tpu.memory_space<vmem>>, vector<1x1x128xf32>
    %133 = vector.shape_cast %132 : vector<1x1x128xf32> to vector<1x128xf32>
    %134 = vector.shape_cast %133 : vector<1x128xf32> to vector<1x1x128xf32>
    %135 = vector.broadcast %134 : vector<1x1x128xf32> to vector<16x16x128xf32>
    %136 = arith.mulf %131, %135 : vector<16x16x128xf32>
    %137 = arith.addf %130, %136 : vector<16x16x128xf32>
    %cst_65 = arith.constant 0.707106769 : f32
    %138 = vector.broadcast %cst_65 : f32 to vector<16x16x128xf32>
    %139 = arith.mulf %137, %138 : vector<16x16x128xf32>
    %140 = math.absf %139 : vector<16x16x128xf32>
    %cst_66 = arith.constant 0.327591091 : f32
    %141 = vector.broadcast %cst_66 : f32 to vector<16x16x128xf32>
    %142 = arith.mulf %141, %140 : vector<16x16x128xf32>
    %cst_67 = arith.constant 1.000000e+00 : f32
    %143 = vector.broadcast %cst_67 : f32 to vector<16x16x128xf32>
    %144 = arith.addf %143, %142 : vector<16x16x128xf32>
    %cst_68 = arith.constant 1.000000e+00 : f32
    %145 = vector.broadcast %cst_68 : f32 to vector<16x16x128xf32>
    %146 = arith.divf %145, %144 : vector<16x16x128xf32>
    %cst_69 = arith.constant 1.06140542 : f32
    %147 = vector.broadcast %cst_69 : f32 to vector<16x16x128xf32>
    %148 = arith.mulf %146, %147 : vector<16x16x128xf32>
    %cst_70 = arith.constant -1.45315206 : f32
    %149 = vector.broadcast %cst_70 : f32 to vector<16x16x128xf32>
    %150 = arith.addf %149, %148 : vector<16x16x128xf32>
    %151 = arith.mulf %146, %150 : vector<16x16x128xf32>
    %cst_71 = arith.constant 1.42141378 : f32
    %152 = vector.broadcast %cst_71 : f32 to vector<16x16x128xf32>
    %153 = arith.addf %152, %151 : vector<16x16x128xf32>
    %154 = arith.mulf %146, %153 : vector<16x16x128xf32>
    %cst_72 = arith.constant -0.284496725 : f32
    %155 = vector.broadcast %cst_72 : f32 to vector<16x16x128xf32>
    %156 = arith.addf %155, %154 : vector<16x16x128xf32>
    %157 = arith.mulf %146, %156 : vector<16x16x128xf32>
    %cst_73 = arith.constant 0.254829586 : f32
    %158 = vector.broadcast %cst_73 : f32 to vector<16x16x128xf32>
    %159 = arith.addf %158, %157 : vector<16x16x128xf32>
    %160 = arith.mulf %146, %159 : vector<16x16x128xf32>
    %cst_74 = arith.constant 0.000000e+00 : f32
    %161 = vector.broadcast %cst_74 : f32 to vector<16x16x128xf32>
    %162 = arith.subf %161, %140 : vector<16x16x128xf32>
    %163 = arith.mulf %162, %140 : vector<16x16x128xf32>
    %164 = math.exp %163 : vector<16x16x128xf32>
    %165 = arith.mulf %160, %164 : vector<16x16x128xf32>
    %cst_75 = arith.constant 1.000000e+00 : f32
    %166 = vector.broadcast %cst_75 : f32 to vector<16x16x128xf32>
    %167 = arith.subf %166, %165 : vector<16x16x128xf32>
    %cst_76 = arith.constant 0.000000e+00 : f32
    %168 = vector.broadcast %cst_76 : f32 to vector<16x16x128xf32>
    %169 = arith.cmpf oge, %139, %168 : vector<16x16x128xf32>
    %cst_77 = arith.constant 0.000000e+00 : f32
    %170 = vector.broadcast %cst_77 : f32 to vector<16x16x128xf32>
    %171 = arith.subf %170, %167 : vector<16x16x128xf32>
    %172 = arith.select %169, %167, %171 : vector<16x16x128xi1>, vector<16x16x128xf32>
    %cst_78 = arith.constant 5.000000e-01 : f32
    %173 = vector.broadcast %cst_78 : f32 to vector<16x16x128xf32>
    %174 = arith.mulf %173, %137 : vector<16x16x128xf32>
    %cst_79 = arith.constant 1.000000e+00 : f32
    %175 = vector.broadcast %cst_79 : f32 to vector<16x16x128xf32>
    %176 = arith.addf %175, %172 : vector<16x16x128xf32>
    %177 = arith.mulf %174, %176 : vector<16x16x128xf32>
    %178 = vector.shape_cast %177 : vector<16x16x128xf32> to vector<256x128xf32>
    %c0_80 = arith.constant 0 : index
    %c0_81 = arith.constant 0 : index
    %179 = vector.load %arg6[%c0_80, %c0_81] : memref<128x32xf32, #tpu.memory_space<vmem>>, vector<128x32xf32>
    %cst_82 = arith.constant dense<0.000000e+00> : vector<256x32xf32>
    %180 = tpu.matmul %178, %179, %cst_82 {dimension_numbers = #tpu.dot_dimension_numbers<[1], [0], [0], [1], [0, 0, 1, 1], [], []>} : vector<256x128xf32>, vector<128x32xf32>, vector<256x32xf32> -> vector<256x32xf32>
    %181 = vector.shape_cast %180 : vector<256x32xf32> to vector<16x16x32xf32>
    %c0_83 = arith.constant 0 : index
    %c0_84 = arith.constant 0 : index
    %c0_85 = arith.constant 0 : index
    %c0_86 = arith.constant 0 : index
    %182 = vector.load %arg7[%c0_83, %c0_84, %c0_85, %c0_86] : memref<1x16x16x32xf32, #tpu.memory_space<vmem>>, vector<1x16x16x32xf32>
    %183 = vector.shape_cast %182 : vector<1x16x16x32xf32> to vector<16x16x32xf32>
    %184 = vector.shape_cast %181 : vector<16x16x32xf32> to vector<1x16x16x32xf32>
    tpu.vector_store %arg7[%c0_83, %c0_84, %c0_85, %c0_86], %184 {strides = array<i32>} : memref<1x16x16x32xf32, #tpu.memory_space<vmem>>, vector<1x16x16x32xf32>,
    return
  }
  func.func @transform_0(%arg0: i32) -> (i32, i32, i32, i32) {
    %c0_i32 = arith.constant 0 : i32
    %c0_i32_0 = arith.constant 0 : i32
    %c0_i32_1 = arith.constant 0 : i32
    %c0_i32_2 = arith.constant 0 : i32
    return %arg0, %c0_i32, %c0_i32_0, %c0_i32_1 : i32, i32, i32, i32
  }
  func.func @transform_1(%arg0: i32) -> (i32, i32) {
    %c0_i32 = arith.constant 0 : i32
    %c0_i32_0 = arith.constant 0 : i32
    %c0_i32_1 = arith.constant 0 : i32
    return %c0_i32, %c0_i32_0 : i32, i32
  }
  func.func @transform_2(%arg0: i32) -> (i32, i32) {
    %c0_i32 = arith.constant 0 : i32
    %c0_i32_0 = arith.constant 0 : i32
    %c0_i32_1 = arith.constant 0 : i32
    return %c0_i32, %c0_i32_0 : i32, i32
  }
  func.func @transform_3(%arg0: i32) -> (i32, i32) {
    %c0_i32 = arith.constant 0 : i32
    %c0_i32_0 = arith.constant 0 : i32
    %c0_i32_1 = arith.constant 0 : i32
    return %c0_i32, %c0_i32_0 : i32, i32
  }
  func.func @transform_4(%arg0: i32) -> (i32, i32, i32) {
    %c0_i32 = arith.constant 0 : i32
    %c0_i32_0 = arith.constant 0 : i32
    %c0_i32_1 = arith.constant 0 : i32
    %c0_i32_2 = arith.constant 0 : i32
    return %c0_i32, %c0_i32_0, %c0_i32_1 : i32, i32, i32
  }
  func.func @transform_5(%arg0: i32) -> (i32, i32) {
    %c0_i32 = arith.constant 0 : i32
    %c0_i32_0 = arith.constant 0 : i32
    %c0_i32_1 = arith.constant 0 : i32
    return %c0_i32, %c0_i32_0 : i32, i32
  }
  func.func @transform_6(%arg0: i32) -> (i32, i32, i32, i32) {
    %c0_i32 = arith.constant 0 : i32
    %c0_i32_0 = arith.constant 0 : i32
    %c0_i32_1 = arith.constant 0 : i32
    %c0_i32_2 = arith.constant 0 : i32
    return %arg0, %c0_i32, %c0_i32_0, %c0_i32_1 : i32, i32, i32, i32
  }
}

</mosaic_0001>

<bundles_post_ra>
// kernel: tpu_custom_call.1
= control target key start
LH: loop header
LB: loop body
LE: loop exit
PB: predicated region body
PF: predicated region fallthrough
CT: control target
= control target key end

     0   :  { %11 = vsyncpa [#allocation4], 0  ;;  %s9707_s0 = inlined_call_operand.hbm [shape: f32[2,16,16,32], index: 0, kind: input, shape index: {}]   ;;  %s9708_s1 = inlined_call_operand.vmem [shape: f32[1,32], index: 1, kind: input, shape index: {}]   ;;  %s9709_s2 = inlined_call_operand.vmem [shape: f32[1,32], index: 2, kind: input, shape index: {}]   ;;  %s9710_s3 = inlined_call_operand.vmem [shape: f32[32,128], index: 3, kind: input, shape index: {}]   ;;  %s9711_s4 = inlined_call_operand.vmem [shape: f32[9,1,128], index: 4, kind: input, shape index: {}]   ;;  %s9712_s5 = inlined_call_operand.vmem [shape: f32[128,32], index: 5, kind: input, shape index: {}]   ;;  %s9713_s6 = inlined_call_operand.hbm [shape: f32[2,16,16,32], index: 6, kind: output, shape index: {}]  }
   0x1   :  { %13 = vsyncpa [#allocation4 + $0x1], 0 }
   0x2   :  { %14 = vsyncpa [#allocation5], 0 }
   0x3   :  { %16 = vsyncpa [#allocation5 + $0x1], 0  ;;  %s6003_s21 = smov 0   ;;  %s6005_s22 = smov 0  }
   0x4   :  { %s6007_s23 = smov 0   ;;  %s6009_s24 = smov 0  }
   0x5 LB: > { %s6024_s25 = sadd.s32 4294967295, %s5959_s24   ;;  %s5148_s26 = sadd.s32 4294967294, %s5959_s24   ;;  %s5959_s24 = sphi %s6009_s24, %s9728_s24   ;;  %s5955_s23 = sphi %s6007_s23, %s9727_s23   ;;  %s5951_s22 = sphi %s6005_s22, %s9726_s22   ;;  %s5947_s21 = sphi %s6003_s21, %s9725_s21  }
   0x6   : > { %s6028_s27 = sadd.s32 1, %s5959_s24   ;;  %s29_s28 = sadd.s32 1, %s5955_s23 }
   0x7   : > { %s26_s29 = ssub.s32 %s5959_s24, %s6028_s27  ;;  %p36_p0 = scmp.ne.s32.totalorder %s5955_s23, %s5951_s22 }
   0x8   : > { %p27_p1 = scmp.eq.s32.totalorder %s26_s29, 0  ;;  %p37_p2 = scmp.eq.s32.totalorder %s5959_s24, 0 }
   0x9   : > { %p42_p3 = scmp.ne.s32.totalorder %s5951_s22, %s5947_s21  ;;  %p43_p4 = scmp.eq.s32.totalorder %s6024_s25, 0 }
   0xa   : > { %s6040_s30 = scalar_select %p27_p1, %s5955_s23, %s29_s28  }
   0xb   : > { %p6042_p5 = por %p37_p2, %p36_p0  ;;  %p6046_p6 = por %p43_p4, %p42_p3 }
   0xc   : > { %p171_p7 = scmp.eq.s32.totalorder %s6024_s25, 1  ;;  %p177_p8 = scmp.eq.s32.totalorder %s5148_s26, 1 }
   0xd   : > { %s9717_s8 = scalar_select %p6046_p6, 1, 0 }
   0xe   : > { %p5479_p10 = scmp.lt.s32.totalorder %s5959_s24, 2  ;;  %p6053_p11 = por %p171_p7, %p36_p0 }
   0xf   : > { %p6057_p12 = por %p177_p8, %p42_p3  ;;  %s212_s11 = sand.u32 1, %s5955_s23  }
  0x10   : > { %s9718_s9 = scalar_select %p6053_p11, 1, 0 }
  0x11   : > { %s9719_s10 = scalar_select %p6057_p12, 1, 0 }
  0x12   : > { %s5213_s12 = sshll.u32 %s5959_s24, 12  ;;  %s5151_s13 = sshll.u32 %s212_s11, 8 }
  0x13   : > { %s6066_s16 = scalar_lea.hbm %s9707_s0, %s5213_s12  ;;  %s216_s17 = scalar_lea.vmem [#allocation3], %s5151_s13 }
  0x14   : > { %s223_s18 = sshll.u32 %s216_s17, 4  ;;  %p6070_p13 = pnand %p5479_p10, %p6042_p5  ;;  %s6074_s18 = int_to_ptr.vmem [resolvable:$true] %s223_s18 }
  0x15   : > { %s6076_s20 = scalar_lea.sflag [#allocation4], %s212_s11  ;;  %s5867_s26 = scalar_lea.hbm %s6066_s16, 4096 }
  0x16   : > { %p5868_p0 = scmp.ne.s32.totalorder %s6066_s16, %s5867_s26  ;;  %p5869_p1 = pneg %p6070_p13 }
  0x17   : > { %s5872_s12 = scalar_lea.hbm %s9707_s0, 8192  ;;  %p5873_p4 = scmp.lt.s32.totalorder %s6066_s16, %s9707_s0 }
  0x18   : > { %p5870_p2 = pnand %p5869_p1, %p5868_p0  ;;  %p5874_p5 = scmp.lt.s32.totalorder %s5872_s12, %s5867_s26 }
  0x1a   : > { %p5871_p3 = pneg %p5870_p2  ;;  %p5875_p7 = por %p5874_p5, %p5873_p4 }
  0x1c   : > { %p5876_p8 = pnand %p5875_p7, %p5871_p3 }
  0x1e   : > { %5879 = shalt.err (!%p5876_p8)
}
  0x1f   : > { %s5880_s11 = scalar_lea.vmem %s6074_s18, 4096  ;;  %s5961_s14 = smov [#allocation3]  }
  0x20   : > { %p5881_p10 = scmp.ne.s32.totalorder %s6074_s18, %s5880_s11  ;;  %s5885_s15 = sshll.u32 %s5961_s14, 4  ;;  %s5886_s15 = int_to_ptr.vmem [resolvable:$false] %s5885_s15 }
  0x21   : > { %s5887_s17 = scalar_lea.vmem %s5886_s15, 8192  ;;  %p5888_p2 = scmp.lt.s32.totalorder %s6074_s18, %s5886_s15 }
  0x22   : > { %p5883_p9 = pnand %p5881_p10, %p5869_p1  ;;  %p5889_p12 = scmp.lt.s32.totalorder %s5887_s17, %s5880_s11 }
  0x24   : > { %p5884_p0 = pneg %p5883_p9  ;;  %p5890_p11 = por %p5889_p12, %p5888_p2 }
  0x26   : > { %p5891_p6 = pnand %p5890_p11, %p5884_p0 }
  0x28   : > { %5894 = shalt.err (!%p5891_p6)
}
  0x29   : > { %s5962_s26 = smov 128   ;;  %s5963_s28 = smov 8  }
  0x2a   : > { %5474 = dma.hbm_to_vmem [thread:$0]  (!%p6070_p13), %s6066_s16, 4096, %s6074_s18, %s6076_s20, %s5962_s26, %s5962_s26, %s5963_s28  }
  0x2b   : > { %p5154_p9 = scmp.ge.s32.totalorder %s5959_s24, 1  ;;  %p231_p1 = scmp.lt.s32.totalorder %s5959_s24, 3 }
  0x2d   : > { %p232_p3 = pnand %p5154_p9, %p231_p1 }
  0x2e   : > { %s6100_s29 = sand.u32 (!%p232_p3), 1, %s5951_s22   ;;  %p9721_p6 = scmp.ne.s32.totalorder (!%p232_p3), %s9717_s8, 0 }
  0x2f   : > { %235 = sbr.rel (%p232_p3) target bundleno = 1505 (0x5e1), region = 44  ;;  %s5155_s12 = sshll.u32 (!%p232_p3), %s6100_s29, 8 }
  0x30   : > { %s238_s7 = scalar_lea.sflag (!%p232_p3), [#allocation4], %s6100_s29  ;;  %s6106_s13 = scalar_lea.vmem (!%p232_p3), [#allocation3], %s5155_s12 }
  0x34   : > { %5938 = dma.done.wait (%p9721_p6), %s238_s7, 4096  }
  0x35   : > { %5940 = vsyncadd (%p9721_p6), %s238_s7, 4294963200  ;;  %vm302_vm0 = vcmask 261120   ;;  %v6113_v0 = vld [vmem:[%s6106_s13] sm:$0xff]  ;;  %v6116_v1 = vld [vmem:[%s6106_s13 + $0x10] sm:$0xff]  ;;  %s5062_s20 = scalar_lea.sflag [#allocation5], %s6100_s29  ;;  %p9722_p12 = scmp.ne.s32.totalorder %s9718_s9, 0 }
  0x36   : > { %v6119_v2 = vld [vmem:[%s6106_s13 + $0x8] sm:$0xff]  ;;  %v303_v3 = vsel %vm302_vm0, %v6113_v0, 0.0  ;;  %v309_v4 = vsel %vm302_vm0, %v6116_v1, 0.0  ;;  %v6126_v5 = vld [vmem:[%s6106_s13 + $0x18] sm:$0xff]  ;;  %v6133_v8 = vld [vmem:[%s6106_s13 + $0x20] sm:$0xff] }
  0x37   : > { %304 = vadd.xlane.f32.xlu0 %v303_v3  ;;  %310 = vadd.xlane.f32.xlu1 %v309_v4  ;;  %v306_v6 = vsel %vm302_vm0, %v6119_v2, 0.0  ;;  %v312_v7 = vsel %vm302_vm0, %v6126_v5, 0.0  ;;  %v6136_v9 = vld [vmem:[%s6106_s13 + $0x28] sm:$0xff]  ;;  %v315_v10 = vsel %vm302_vm0, %v6133_v8, 0.0  ;;  %v6143_v12 = vld [vmem:[%s6106_s13 + $0x30] sm:$0xff]  ;;  %v6146_v13 = vld [vmem:[%s6106_s13 + $0x38] sm:$0xff] }
  0x38   : > { %v318_v11 = vsel %vm302_vm0, %v6136_v9, 0.0  ;;  %v321_v14 = vsel %vm302_vm0, %v6143_v12, 0.0  ;;  %v324_v15 = vsel %vm302_vm0, %v6146_v13, 0.0  ;;  %v6153_v16 = vld [vmem:[%s6106_s13 + $0x40] sm:$0xff]  ;;  %v6156_v17 = vld [vmem:[%s6106_s13 + $0x48] sm:$0xff]  ;;  %v6163_v20 = vld [vmem:[%s6106_s13 + $0x50] sm:$0xff] }
  0x39   : > { %v327_v18 = vsel %vm302_vm0, %v6153_v16, 0.0  ;;  %v330_v19 = vsel %vm302_vm0, %v6156_v17, 0.0  ;;  %v6166_v21 = vld [vmem:[%s6106_s13 + $0x58] sm:$0xff]  ;;  %v333_v22 = vsel %vm302_vm0, %v6163_v20, 0.0  ;;  %v6173_v24 = vld [vmem:[%s6106_s13 + $0x60] sm:$0xff]  ;;  %v6176_v25 = vld [vmem:[%s6106_s13 + $0x68] sm:$0xff] }
  0x3a   : > { %v336_v23 = vsel %vm302_vm0, %v6166_v21, 0.0  ;;  %v339_v26 = vsel %vm302_vm0, %v6173_v24, 0.0  ;;  %v342_v27 = vsel %vm302_vm0, %v6176_v25, 0.0  ;;  %v6183_v28 = vld [vmem:[%s6106_s13 + $0x70] sm:$0xff]  ;;  %v6186_v29 = vld [vmem:[%s6106_s13 + $0x78] sm:$0xff]  ;;  %v6193_v32 = vld [vmem:[%s6106_s13 + $0x80] sm:$0xff] }
  0x3b   : > { %307 = vadd.xlane.f32.xlu0 %v306_v6  ;;  %313 = vadd.xlane.f32.xlu1 %v312_v7  ;;  %v345_v30 = vsel %vm302_vm0, %v6183_v28, 0.0  ;;  %v348_v31 = vsel %vm302_vm0, %v6186_v29, 0.0  ;;  %v6196_v33 = vld [vmem:[%s6106_s13 + $0x88] sm:$0xff]  ;;  %v351_v34 = vsel %vm302_vm0, %v6193_v32, 0.0  ;;  %v6203_v36 = vld [vmem:[%s6106_s13 + $0x90] sm:$0xff]  ;;  %v6206_v37 = vld [vmem:[%s6106_s13 + $0x98] sm:$0xff] }
  0x3c   : > { %v354_v35 = vsel %vm302_vm0, %v6196_v33, 0.0  ;;  %v357_v38 = vsel %vm302_vm0, %v6203_v36, 0.0  ;;  %v360_v39 = vsel %vm302_vm0, %v6206_v37, 0.0  ;;  %v6213_v40 = vld [vmem:[%s6106_s13 + $0xa0] sm:$0xff]  ;;  %v6216_v41 = vld [vmem:[%s6106_s13 + $0xa8] sm:$0xff]  ;;  %v6223_v44 = vld [vmem:[%s6106_s13 + $0xb0] sm:$0xff] }
  0x3d   : > { %v363_v42 = vsel %vm302_vm0, %v6213_v40, 0.0  ;;  %v366_v43 = vsel %vm302_vm0, %v6216_v41, 0.0  ;;  %v6226_v45 = vld [vmem:[%s6106_s13 + $0xb8] sm:$0xff]  ;;  %v369_v46 = vsel %vm302_vm0, %v6223_v44, 0.0  ;;  %v6233_v48 = vld [vmem:[%s6106_s13 + $0xc0] sm:$0xff]  ;;  %v6236_v49 = vld [vmem:[%s6106_s13 + $0xc8] sm:$0xff] }
  0x3e   : > { %v372_v47 = vsel %vm302_vm0, %v6226_v45, 0.0  ;;  %v375_v50 = vsel %vm302_vm0, %v6233_v48, 0.0  ;;  %v378_v51 = vsel %vm302_vm0, %v6236_v49, 0.0  ;;  %v6243_v52 = vld [vmem:[%s6106_s13 + $0xd0] sm:$0xff]  ;;  %v6246_v53 = vld [vmem:[%s6106_s13 + $0xd8] sm:$0xff]  ;;  %v6253_v56 = vld [vmem:[%s6106_s13 + $0xe0] sm:$0xff] }
  0x3f   : > { %316 = vadd.xlane.f32.xlu0 %v315_v10  ;;  %319 = vadd.xlane.f32.xlu1 %v318_v11  ;;  %v381_v54 = vsel %vm302_vm0, %v6243_v52, 0.0  ;;  %v384_v55 = vsel %vm302_vm0, %v6246_v53, 0.0  ;;  %v6256_v57 = vld [vmem:[%s6106_s13 + $0xe8] sm:$0xff]  ;;  %v387_v58 = vsel %vm302_vm0, %v6253_v56, 0.0  ;;  %v6263_v60 = vld [vmem:[%s6106_s13 + $0xf0] sm:$0xff]  ;;  %v6266_v61 = vld [vmem:[%s6106_s13 + $0xf8] sm:$0xff] }
  0x40   : > { %v390_v59 = vsel %vm302_vm0, %v6256_v57, 0.0  ;;  %v393_v62 = vsel %vm302_vm0, %v6263_v60, 0.0  ;;  %v396_v63 = vsel %vm302_vm0, %v6266_v61, 0.0  ;;  %s9283_s13 = scalar_lea.vmem [#allocation6], %s5155_s12  ;;  %s5214_s12 = sshll.u32 %s6024_s25, 12 }
  0x41   : > { %s5075_s8 = sshll.u32 %s9283_s13, 4  ;;  %s9658_s19 = scalar_lea.hbm %s9713_s6, %s5214_s12  ;;  %s9660_s8 = int_to_ptr.vmem [resolvable:$true] %s5075_s8 }
  0x42   : > { %s5895_s11 = scalar_lea.vmem %s9660_s8, 4096  ;;  %s5965_s25 = smov [#allocation6]  }
  0x43   : > { %322 = vadd.xlane.f32.xlu0 %v321_v14  ;;  %325 = vadd.xlane.f32.xlu1 %v324_v15  ;;  %p5896_p11 = scmp.ne.s32.totalorder %s9660_s8, %s5895_s11  ;;  %s5899_s14 = sshll.u32 %s5965_s25, 4  ;;  %s5900_s14 = int_to_ptr.vmem [resolvable:$false] %s5899_s14 }
  0x44   : > { %s5901_s15 = scalar_lea.vmem %s5900_s14, 8192  ;;  %p5902_p5 = scmp.lt.s32.totalorder %s9660_s8, %s5900_s14 }
  0x45   : > { %p5897_p13 = pnand %p5896_p11, %p9722_p12  ;;  %p5903_p7 = scmp.lt.s32.totalorder %s5901_s15, %s5895_s11 }
  0x47   : > { %328 = vadd.xlane.f32.xlu0 %v327_v18  ;;  %331 = vadd.xlane.f32.xlu1 %v330_v19  ;;  %p5898_p4 = pneg %p5897_p13  ;;  %p5904_p8 = por %p5903_p7, %p5902_p5 }
  0x49   : > { %p5905_p10 = pnand %p5904_p8, %p5898_p4 }
  0x4b   : > { %334 = vadd.xlane.f32.xlu0 %v333_v22  ;;  %337 = vadd.xlane.f32.xlu1 %v336_v23 }
  0x4f   : > { %340 = vadd.xlane.f32.xlu0 %v339_v26  ;;  %343 = vadd.xlane.f32.xlu1 %v342_v27 }
  0x53   : > { %346 = vadd.xlane.f32.xlu0 %v345_v30  ;;  %349 = vadd.xlane.f32.xlu1 %v348_v31 }
  0x57   : > { %352 = vadd.xlane.f32.xlu0 %v351_v34  ;;  %355 = vadd.xlane.f32.xlu1 %v354_v35 }
  0x5b   : > { %358 = vadd.xlane.f32.xlu0 %v357_v38  ;;  %361 = vadd.xlane.f32.xlu1 %v360_v39 }
  0x5f   : > { %364 = vadd.xlane.f32.xlu0 %v363_v42  ;;  %367 = vadd.xlane.f32.xlu1 %v366_v43 }
  0x63   : > { %370 = vadd.xlane.f32.xlu0 %v369_v46  ;;  %373 = vadd.xlane.f32.xlu1 %v372_v47 }
  0x67   : > { %376 = vadd.xlane.f32.xlu0 %v375_v50  ;;  %379 = vadd.xlane.f32.xlu1 %v378_v51 }
  0x6b   : > { %382 = vadd.xlane.f32.xlu0 %v381_v54  ;;  %385 = vadd.xlane.f32.xlu1 %v384_v55 }
  0x6f   : > { %388 = vadd.xlane.f32.xlu0 %v387_v58  ;;  %391 = vadd.xlane.f32.xlu1 %v390_v59 }
  0x73   : > { %394 = vadd.xlane.f32.xlu0 %v393_v62  ;;  %397 = vadd.xlane.f32.xlu1 %v396_v63 }
  0xc0   : > { %v305_v3 = vpop.xlane.xlu0 %304  ;;  %v311_v4 = vpop.xlane.xlu1 %310 }
  0xc1   : > { %v400_v6 = vmul.f32 0.03125, %v305_v3  ;;  %v402_v7 = vmul.f32 0.03125, %v311_v4 }
  0xc3   : > { %v6273_v10 = vsub.f32 %v6113_v0, %v400_v6  ;;  %v6276_v11 = vsub.f32 %v6116_v1, %v402_v7 }
  0xc4   : > { %v308_v14 = vpop.xlane.xlu0 %307  ;;  %v314_v15 = vpop.xlane.xlu1 %313 }
  0xc5   : > { %v401_v18 = vmul.f32 0.03125, %v308_v14  ;;  %v403_v19 = vmul.f32 0.03125, %v314_v15  ;;  %v464_v22 = vmul.f32 %v6273_v10, %v6273_v10  ;;  %v466_v23 = vmul.f32 %v6276_v11, %v6276_v11 }
  0xc7   : > { %v6283_v26 = vsub.f32 %v6119_v2, %v401_v18  ;;  %v6286_v27 = vsub.f32 %v6126_v5, %v403_v19  ;;  %v496_v0 = vsel %vm302_vm0, %v464_v22, 0.0  ;;  %v502_v31 = vsel %vm302_vm0, %v466_v23, 0.0 }
  0xc8   : > { %497 = vadd.xlane.f32.xlu0 %v496_v0  ;;  %v317_v1 = vpop.xlane.xlu0 %316  ;;  %v320_v30 = vpop.xlane.xlu1 %319 }
  0xc9   : > { %v404_v34 = vmul.f32 0.03125, %v317_v1  ;;  %v405_v35 = vmul.f32 0.03125, %v320_v30  ;;  %v465_v38 = vmul.f32 %v6283_v26, %v6283_v26  ;;  %v467_v39 = vmul.f32 %v6286_v27, %v6286_v27 }
  0xcb   : > { %v6295_v2 = vsub.f32 %v6133_v8, %v404_v34  ;;  %v6298_v5 = vsub.f32 %v6136_v9, %v405_v35  ;;  %v499_v42 = vsel %vm302_vm0, %v465_v38, 0.0  ;;  %v505_v47 = vsel %vm302_vm0, %v467_v39, 0.0 }
  0xcc   : > { %503 = vadd.xlane.f32.xlu0 %v502_v31  ;;  %500 = vadd.xlane.f32.xlu1 %v499_v42  ;;  %v323_v43 = vpop.xlane.xlu0 %322  ;;  %v326_v46 = vpop.xlane.xlu1 %325 }
  0xcd   : > { %v406_v50 = vmul.f32 0.03125, %v323_v43  ;;  %v407_v51 = vmul.f32 0.03125, %v326_v46  ;;  %v468_v54 = vmul.f32 %v6295_v2, %v6295_v2  ;;  %v469_v8 = vmul.f32 %v6298_v5, %v6298_v5 }
  0xcf   : > { %v6307_v55 = vsub.f32 %v6143_v12, %v406_v50  ;;  %v6310_v9 = vsub.f32 %v6146_v13, %v407_v51  ;;  %v508_v58 = vsel %vm302_vm0, %v468_v54, 0.0  ;;  %v511_v63 = vsel %vm302_vm0, %v469_v8, 0.0 }
  0xd0   : > { %506 = vadd.xlane.f32.xlu1 %v505_v47  ;;  %509 = vadd.xlane.f32.xlu0 %v508_v58  ;;  %v329_v59 = vpop.xlane.xlu0 %328  ;;  %v332_v62 = vpop.xlane.xlu1 %331 }
  0xd1   : > { %v408_v3 = vmul.f32 0.03125, %v329_v59  ;;  %v409_v4 = vmul.f32 0.03125, %v332_v62  ;;  %v470_v6 = vmul.f32 %v6307_v55, %v6307_v55  ;;  %v471_v12 = vmul.f32 %v6310_v9, %v6310_v9 }
  0xd3   : > { %v6319_v7 = vsub.f32 %v6153_v16, %v408_v3  ;;  %v6322_v13 = vsub.f32 %v6156_v17, %v409_v4  ;;  %v514_v14 = vsel %vm302_vm0, %v470_v6, 0.0  ;;  %v517_v19 = vsel %vm302_vm0, %v471_v12, 0.0 }
  0xd4   : > { %512 = vadd.xlane.f32.xlu1 %v511_v63  ;;  %515 = vadd.xlane.f32.xlu0 %v514_v14  ;;  %v335_v15 = vpop.xlane.xlu0 %334  ;;  %v338_v18 = vpop.xlane.xlu1 %337 }
  0xd5   : > { %v410_v22 = vmul.f32 0.03125, %v335_v15  ;;  %v411_v23 = vmul.f32 0.03125, %v338_v18  ;;  %v472_v0 = vmul.f32 %v6319_v7, %v6319_v7  ;;  %v473_v16 = vmul.f32 %v6322_v13, %v6322_v13 }
  0xd7   : > { %v6331_v1 = vsub.f32 %v6163_v20, %v410_v22  ;;  %v6334_v17 = vsub.f32 %v6166_v21, %v411_v23  ;;  %v520_v30 = vsel %vm302_vm0, %v472_v0, 0.0  ;;  %v523_v35 = vsel %vm302_vm0, %v473_v16, 0.0 }
  0xd8   : > { %518 = vadd.xlane.f32.xlu1 %v517_v19  ;;  %521 = vadd.xlane.f32.xlu0 %v520_v30  ;;  %v341_v31 = vpop.xlane.xlu0 %340  ;;  %v344_v34 = vpop.xlane.xlu1 %343 }
  0xd9   : > { %v412_v38 = vmul.f32 0.03125, %v341_v31  ;;  %v413_v39 = vmul.f32 0.03125, %v344_v34  ;;  %v474_v42 = vmul.f32 %v6331_v1, %v6331_v1  ;;  %v475_v20 = vmul.f32 %v6334_v17, %v6334_v17 }
  0xdb   : > { %v6343_v43 = vsub.f32 %v6173_v24, %v412_v38  ;;  %v6346_v21 = vsub.f32 %v6176_v25, %v413_v39  ;;  %v526_v46 = vsel %vm302_vm0, %v474_v42, 0.0  ;;  %v529_v51 = vsel %vm302_vm0, %v475_v20, 0.0  ;;  %v800_v20 = vld [vmem:[%s9710_s3 + $0x10] sm:$0xff] }
  0xdc   : > { %524 = vadd.xlane.f32.xlu1 %v523_v35  ;;  %527 = vadd.xlane.f32.xlu0 %v526_v46  ;;  %v347_v47 = vpop.xlane.xlu0 %346  ;;  %v350_v50 = vpop.xlane.xlu1 %349 }
  0xdd   : > { %v414_v54 = vmul.f32 0.03125, %v347_v47  ;;  %v415_v8 = vmul.f32 0.03125, %v350_v50  ;;  %v476_v58 = vmul.f32 %v6343_v43, %v6343_v43  ;;  %v477_v24 = vmul.f32 %v6346_v21, %v6346_v21  ;;  %v799_v50 = vld [vmem:[%s9710_s3 + $0x8] sm:$0xff] }
  0xdf   : > { %v6355_v59 = vsub.f32 %v6183_v28, %v414_v54  ;;  %v6358_v25 = vsub.f32 %v6186_v29, %v415_v8  ;;  %v532_v62 = vsel %vm302_vm0, %v476_v58, 0.0  ;;  %v535_v4 = vsel %vm302_vm0, %v477_v24, 0.0 }
  0xe0   : > { %530 = vadd.xlane.f32.xlu1 %v529_v51  ;;  %533 = vadd.xlane.f32.xlu0 %v532_v62  ;;  %v353_v63 = vpop.xlane.xlu0 %352  ;;  %v356_v3 = vpop.xlane.xlu1 %355 }
  0xe1   : > { %v416_v6 = vmul.f32 0.03125, %v353_v63  ;;  %v417_v12 = vmul.f32 0.03125, %v356_v3  ;;  %v478_v14 = vmul.f32 %v6355_v59, %v6355_v59  ;;  %v479_v28 = vmul.f32 %v6358_v25, %v6358_v25  ;;  %v798_v63 = vld [vmem:[%s9710_s3] sm:$0xff] }
  0xe3   : > { %v6367_v15 = vsub.f32 %v6193_v32, %v416_v6  ;;  %v6370_v29 = vsub.f32 %v6196_v33, %v417_v12  ;;  %v538_v18 = vsel %vm302_vm0, %v478_v14, 0.0  ;;  %v541_v23 = vsel %vm302_vm0, %v479_v28, 0.0  ;;  %v801_v33 = vld [vmem:[%s9710_s3 + $0x18] sm:$0xff] }
  0xe4   : > { %536 = vadd.xlane.f32.xlu1 %v535_v4  ;;  %539 = vadd.xlane.f32.xlu0 %v538_v18  ;;  %v359_v19 = vpop.xlane.xlu0 %358  ;;  %v362_v22 = vpop.xlane.xlu1 %361 }
  0xe5   : > { %v418_v0 = vmul.f32 0.03125, %v359_v19  ;;  %v419_v16 = vmul.f32 0.03125, %v362_v22  ;;  %v480_v30 = vmul.f32 %v6367_v15, %v6367_v15  ;;  %v481_v32 = vmul.f32 %v6370_v29, %v6370_v29  ;;  %5299 = vmatprep.subr.mxu0 %v801_v33 }
  0xe6   : > { %5300 = vmatpush3.msra.mxu0 %v801_v33 }
  0xe7   : > { %v6382_v31 = vsub.f32 %v6203_v36, %v418_v0  ;;  %v6385_v34 = vsub.f32 %v6206_v37, %v419_v16  ;;  %v544_v35 = vsel %vm302_vm0, %v480_v30, 0.0  ;;  %v547_v42 = vsel %vm302_vm0, %v481_v32, 0.0  ;;  %5301 = vmatprep.subr.mxu0 %v800_v20 }
  0xe8   : > { %542 = vadd.xlane.f32.xlu1 %v541_v23  ;;  %545 = vadd.xlane.f32.xlu0 %v544_v35  ;;  %v365_v38 = vpop.xlane.xlu0 %364  ;;  %v368_v39 = vpop.xlane.xlu1 %367 }
  0xe9   : > { %v420_v46 = vmul.f32 0.03125, %v365_v38  ;;  %v421_v47 = vmul.f32 0.03125, %v368_v39  ;;  %v482_v36 = vmul.f32 %v6382_v31, %v6382_v31  ;;  %v483_v37 = vmul.f32 %v6385_v34, %v6385_v34  ;;  %5302 = vmatpush3.msra.mxu0 %v800_v20 }
  0xea   : > { %5303 = vmatprep.subr.mxu0 %v799_v50 }
  0xeb   : > { %v6400_v51 = vsub.f32 %v6213_v40, %v420_v46  ;;  %v6403_v54 = vsub.f32 %v6216_v41, %v421_v47  ;;  %v550_v8 = vsel %vm302_vm0, %v482_v36, 0.0  ;;  %v553_v62 = vsel %vm302_vm0, %v483_v37, 0.0  ;;  %5304 = vmatpush3.msra.mxu0 %v799_v50 }
  0xec   : > { %548 = vadd.xlane.f32.xlu1 %v547_v42  ;;  %551 = vadd.xlane.f32.xlu0 %v550_v8  ;;  %v371_v58 = vpop.xlane.xlu0 %370  ;;  %v374_v24 = vpop.xlane.xlu1 %373 }
  0xed   : > { %v422_v3 = vmul.f32 0.03125, %v371_v58  ;;  %v423_v4 = vmul.f32 0.03125, %v374_v24  ;;  %v484_v40 = vmul.f32 %v6400_v51, %v6400_v51  ;;  %v485_v41 = vmul.f32 %v6403_v54, %v6403_v54  ;;  %5305 = vmatprep.subr.mxu0 %v798_v63 }
  0xee   : > { %5306 = vmatpush3.msra.mxu0 %v798_v63 }
  0xef   : > { %v6415_v6 = vsub.f32 %v6223_v44, %v422_v3  ;;  %v6418_v12 = vsub.f32 %v6226_v45, %v423_v4  ;;  %v556_v14 = vsel %vm302_vm0, %v484_v40, 0.0  ;;  %v559_v19 = vsel %vm302_vm0, %v485_v41, 0.0 }
  0xf0   : > { %554 = vadd.xlane.f32.xlu1 %v553_v62  ;;  %557 = vadd.xlane.f32.xlu0 %v556_v14  ;;  %v377_v28 = vpop.xlane.xlu0 %376  ;;  %v380_v18 = vpop.xlane.xlu1 %379 }
  0xf1   : > { %v424_v22 = vmul.f32 0.03125, %v377_v28  ;;  %v425_v23 = vmul.f32 0.03125, %v380_v18  ;;  %v486_v0 = vmul.f32 %v6415_v6, %v6415_v6  ;;  %v487_v44 = vmul.f32 %v6418_v12, %v6418_v12 }
  0xf3   : > { %v6427_v45 = vsub.f32 %v6233_v48, %v424_v22  ;;  %v6430_v16 = vsub.f32 %v6236_v49, %v425_v23  ;;  %v562_v30 = vsel %vm302_vm0, %v486_v0, 0.0  ;;  %v565_v35 = vsel %vm302_vm0, %v487_v44, 0.0 }
  0xf4   : > { %560 = vadd.xlane.f32.xlu1 %v559_v19  ;;  %563 = vadd.xlane.f32.xlu0 %v562_v30  ;;  %v383_v32 = vpop.xlane.xlu0 %382  ;;  %v386_v33 = vpop.xlane.xlu1 %385 }
  0xf5   : > { %v426_v38 = vmul.f32 0.03125, %v383_v32  ;;  %v427_v39 = vmul.f32 0.03125, %v386_v33  ;;  %v488_v42 = vmul.f32 %v6427_v45, %v6427_v45  ;;  %v489_v48 = vmul.f32 %v6430_v16, %v6430_v16 }
  0xf7   : > { %v6439_v20 = vsub.f32 %v6243_v52, %v426_v38  ;;  %v6442_v49 = vsub.f32 %v6246_v53, %v427_v39  ;;  %v568_v46 = vsel %vm302_vm0, %v488_v42, 0.0  ;;  %v571_v37 = vsel %vm302_vm0, %v489_v48, 0.0 }
  0xf8   : > { %566 = vadd.xlane.f32.xlu1 %v565_v35  ;;  %569 = vadd.xlane.f32.xlu0 %v568_v46  ;;  %v389_v47 = vpop.xlane.xlu0 %388  ;;  %v392_v36 = vpop.xlane.xlu1 %391 }
  0xf9   : > { %v428_v50 = vmul.f32 0.03125, %v389_v47  ;;  %v429_v8 = vmul.f32 0.03125, %v392_v36  ;;  %v490_v58 = vmul.f32 %v6439_v20, %v6439_v20  ;;  %v491_v52 = vmul.f32 %v6442_v49, %v6442_v49 }
  0xfb   : > { %v6451_v24 = vsub.f32 %v6253_v56, %v428_v50  ;;  %v6454_v53 = vsub.f32 %v6256_v57, %v429_v8  ;;  %v574_v62 = vsel %vm302_vm0, %v490_v58, 0.0  ;;  %v577_v4 = vsel %vm302_vm0, %v491_v52, 0.0 }
  0xfc   : > { %572 = vadd.xlane.f32.xlu1 %v571_v37  ;;  %575 = vadd.xlane.f32.xlu0 %v574_v62  ;;  %v395_v63 = vpop.xlane.xlu0 %394  ;;  %v398_v3 = vpop.xlane.xlu1 %397 }
  0xfd   : > { %v430_v40 = vmul.f32 0.03125, %v395_v63  ;;  %v431_v41 = vmul.f32 0.03125, %v398_v3  ;;  %v492_v14 = vmul.f32 %v6451_v24, %v6451_v24  ;;  %v493_v56 = vmul.f32 %v6454_v53, %v6454_v53 }
  0xff   : > { %v6463_v28 = vsub.f32 %v6263_v60, %v430_v40  ;;  %v6466_v57 = vsub.f32 %v6266_v61, %v431_v41  ;;  %v580_v18 = vsel %vm302_vm0, %v492_v14, 0.0  ;;  %v583_v19 = vsel %vm302_vm0, %v493_v56, 0.0 }
 0x100   : > { %578 = vadd.xlane.f32.xlu1 %v577_v4  ;;  %581 = vadd.xlane.f32.xlu0 %v580_v18  ;;  %v6479_v18 = vld [vmem:[%s9708_s1] ss:$0 sm:$0xff] }
 0x101   : > { %v494_v22 = vmul.f32 %v6463_v28, %v6463_v28  ;;  %v495_v23 = vmul.f32 %v6466_v57, %v6466_v57 }
 0x103   : > { %v586_v0 = vsel %vm302_vm0, %v494_v22, 0.0  ;;  %v589_v60 = vsel %vm302_vm0, %v495_v23, 0.0 }
 0x104   : > { %584 = vadd.xlane.f32.xlu1 %v583_v19  ;;  %587 = vadd.xlane.f32.xlu0 %v586_v0 }
 0x108   : > { %590 = vadd.xlane.f32.xlu1 %v589_v60 }
 0x151   : > { %v498_v61 = vpop.xlane.xlu0 %497 }
 0x152   : > { %v592_v44 = vmul.f32 0.03125, %v498_v61  ;;  %v6485_v61 = vld [vmem:[%s9709_s2] ss:$0 sm:$0xff] }
 0x154   : > { %v624_v30 = vadd.f32 1e-05, %v592_v44 }
 0x155   : > { %v501_v32 = vpop.xlane.xlu1 %500  ;;  %v504_v33 = vpop.xlane.xlu0 %503 }
 0x156   : > { %5518 = vrsqrt.f32 %v624_v30  ;;  %v593_v35 = vmul.f32 0.03125, %v501_v32  ;;  %v594_v38 = vmul.f32 0.03125, %v504_v33 }
 0x158   : > { %v625_v39 = vadd.f32 1e-05, %v593_v35  ;;  %v626_v42 = vadd.f32 1e-05, %v594_v38 }
 0x159   : > { %v507_v48 = vpop.xlane.xlu1 %506  ;;  %v510_v46 = vpop.xlane.xlu0 %509 }
 0x15a   : > { %5520 = vrsqrt.f32 %v625_v39  ;;  %v595_v47 = vmul.f32 0.03125, %v507_v48  ;;  %v596_v36 = vmul.f32 0.03125, %v510_v46 }
 0x15b   : > { %5522 = vrsqrt.f32 %v626_v42 }
 0x15c   : > { %v627_v37 = vadd.f32 1e-05, %v595_v47  ;;  %v628_v50 = vadd.f32 1e-05, %v596_v36 }
 0x15d   : > { %v513_v8 = vpop.xlane.xlu1 %512  ;;  %v516_v58 = vpop.xlane.xlu0 %515 }
 0x15e   : > { %5524 = vrsqrt.f32 %v627_v37  ;;  %v597_v52 = vmul.f32 0.03125, %v513_v8  ;;  %v598_v62 = vmul.f32 0.03125, %v516_v58 }
 0x15f   : > { %5526 = vrsqrt.f32 %v628_v50 }
 0x160   : > { %v629_v63 = vadd.f32 1e-05, %v597_v52  ;;  %v630_v3 = vadd.f32 1e-05, %v598_v62 }
 0x161   : > { %v519_v4 = vpop.xlane.xlu1 %518  ;;  %v522_v40 = vpop.xlane.xlu0 %521 }
 0x162   : > { %5528 = vrsqrt.f32 %v629_v63  ;;  %v599_v41 = vmul.f32 0.03125, %v519_v4  ;;  %v600_v14 = vmul.f32 0.03125, %v522_v40 }
 0x163   : > { %v5519_v56 = vpop.eup %5518  ;;  %5530 = vrsqrt.f32 %v630_v3 }
 0x164   : > { %v631_v19 = vadd.f32 1e-05, %v599_v41  ;;  %v632_v22 = vadd.f32 1e-05, %v600_v14  ;;  %v688_v23 = vmul.f32 %v5519_v56, %v6273_v10 }
 0x165   : > { %v525_v0 = vpop.xlane.xlu1 %524  ;;  %v528_v60 = vpop.xlane.xlu0 %527 }
 0x166   : > { %5532 = vrsqrt.f32 %v631_v19  ;;  %v601_v44 = vmul.f32 0.03125, %v525_v0  ;;  %v602_v30 = vmul.f32 0.03125, %v528_v60  ;;  %v727_v32 = vmul.f32 %v6479_v18, %v688_v23 }
 0x167   : > { %v5521_v33 = vpop.eup %5520  ;;  %5534 = vrsqrt.f32 %v632_v22 }
 0x168   : > { %v5523_v35 = vpop.eup %5522  ;;  %v633_v38 = vadd.f32 1e-05, %v601_v44  ;;  %v634_v39 = vadd.f32 1e-05, %v602_v30  ;;  %v766_v42 = vadd.f32 %v6485_v61, %v727_v32  ;;  %v689_v10 = vmul.f32 %v5521_v33, %v6283_v26 }
 0x169   : > { %v531_v48 = vpop.xlane.xlu1 %530  ;;  %v534_v46 = vpop.xlane.xlu0 %533  ;;  %v690_v47 = vmul.f32 %v5523_v35, %v6276_v11 }
 0x16a   : > { %5536 = vrsqrt.f32 %v633_v38  ;;  %v603_v36 = vmul.f32 0.03125, %v531_v48  ;;  %v604_v37 = vmul.f32 0.03125, %v534_v46  ;;  %5307 = vmatprep.mubr.msk.f32.mxu0 %vm302_vm0, %v766_v42  ;;  %v728_v50 = vmul.f32 %v6479_v18, %v689_v10 }
 0x16b   : > { %v5525_v8 = vpop.eup %5524  ;;  %5538 = vrsqrt.f32 %v634_v39  ;;  %v729_v58 = vmul.f32 %v6479_v18, %v690_v47 }
 0x16c   : > { %v5527_v52 = vpop.eup %5526  ;;  %v635_v62 = vadd.f32 1e-05, %v603_v36  ;;  %v636_v63 = vadd.f32 1e-05, %v604_v37  ;;  %v767_v26 = vadd.f32 %v6485_v61, %v728_v50  ;;  %v691_v3 = vmul.f32 %v5525_v8, %v6286_v27 }
 0x16d   : > { %v537_v4 = vpop.xlane.xlu1 %536  ;;  %v540_v11 = vpop.xlane.xlu0 %539  ;;  %v768_v40 = vadd.f32 %v6485_v61, %v729_v58  ;;  %v692_v41 = vmul.f32 %v5527_v52, %v6295_v2 }
 0x16e   : > { %5540 = vrsqrt.f32 %v635_v62  ;;  %v605_v14 = vmul.f32 0.03125, %v537_v4  ;;  %v606_v56 = vmul.f32 0.03125, %v540_v11  ;;  %5308 = vmatmul.mubr.msk.f32.vlgmr.msra.gmra.mxu0 %vm302_vm0, %v767_v26  ;;  %v730_v19 = vmul.f32 %v6479_v18, %v691_v3 }
 0x16f   : > { %v5529_v22 = vpop.eup %5528  ;;  %5542 = vrsqrt.f32 %v636_v63  ;;  %5310 = vmatprep.mubr.msk.f32.mxu0 %vm302_vm0, %v768_v40  ;;  %v731_v23 = vmul.f32 %v6479_v18, %v692_v41 }
 0x170   : > { %v5531_v27 = vpop.eup %5530  ;;  %v637_v0 = vadd.f32 1e-05, %v605_v14  ;;  %v638_v60 = vadd.f32 1e-05, %v606_v56  ;;  %v769_v44 = vadd.f32 %v6485_v61, %v730_v19  ;;  %v693_v2 = vmul.f32 %v5529_v22, %v6298_v5 }
 0x171   : > { %v543_v30 = vpop.xlane.xlu1 %542  ;;  %v546_v32 = vpop.xlane.xlu0 %545  ;;  %v770_v33 = vadd.f32 %v6485_v61, %v731_v23  ;;  %v694_v35 = vmul.f32 %v5531_v27, %v6307_v55 }
 0x172   : > { %5544 = vrsqrt.f32 %v637_v0  ;;  %v607_v38 = vmul.f32 0.03125, %v543_v30  ;;  %v608_v39 = vmul.f32 0.03125, %v546_v32  ;;  %5311 = vmatmul.mubr.msk.f32.gmra.mxu0 %vm302_vm0, %v769_v44  ;;  %v732_v42 = vmul.f32 %v6479_v18, %v693_v2 }
 0x173   : > { %v5533_v10 = vpop.eup %5532  ;;  %5546 = vrsqrt.f32 %v638_v60  ;;  %5313 = vmatprep.mubr.msk.f32.mxu0 %vm302_vm0, %v770_v33  ;;  %v733_v48 = vmul.f32 %v6479_v18, %v694_v35 }
 0x174   : > { %v5535_v5 = vpop.eup %5534  ;;  %v639_v46 = vadd.f32 1e-05, %v607_v38  ;;  %v640_v47 = vadd.f32 1e-05, %v608_v39  ;;  %v771_v36 = vadd.f32 %v6485_v61, %v732_v42  ;;  %v695_v55 = vmul.f32 %v5533_v10, %v6310_v9 }
 0x175   : > { %v549_v37 = vpop.xlane.xlu1 %548  ;;  %v552_v50 = vpop.xlane.xlu0 %551  ;;  %v772_v8 = vadd.f32 %v6485_v61, %v733_v48  ;;  %v696_v58 = vmul.f32 %v5535_v5, %v6319_v7 }
 0x176   : > { %5548 = vrsqrt.f32 %v639_v46  ;;  %v609_v52 = vmul.f32 0.03125, %v549_v37  ;;  %v610_v62 = vmul.f32 0.03125, %v552_v50  ;;  %5314 = vmatmul.mubr.msk.f32.gmra.mxu0 %vm302_vm0, %v771_v36  ;;  %v734_v63 = vmul.f32 %v6479_v18, %v695_v55 }
 0x177   : > { %v5537_v26 = vpop.eup %5536  ;;  %5550 = vrsqrt.f32 %v640_v47  ;;  %5316 = vmatprep.mubr.msk.f32.mxu0 %vm302_vm0, %v772_v8  ;;  %v735_v3 = vmul.f32 %v6479_v18, %v696_v58 }
 0x178   : > { %v5539_v9 = vpop.eup %5538  ;;  %v641_v4 = vadd.f32 1e-05, %v609_v52  ;;  %v642_v11 = vadd.f32 1e-05, %v610_v62  ;;  %v773_v40 = vadd.f32 %v6485_v61, %v734_v63  ;;  %v697_v7 = vmul.f32 %v5537_v26, %v6322_v13 }
 0x179   : > { %v555_v41 = vpop.xlane.xlu1 %554  ;;  %v558_v14 = vpop.xlane.xlu0 %557  ;;  %v774_v56 = vadd.f32 %v6485_v61, %v735_v3  ;;  %v698_v19 = vmul.f32 %v5539_v9, %v6331_v1 }
 0x17a   : > { %5552 = vrsqrt.f32 %v641_v4  ;;  %v611_v22 = vmul.f32 0.03125, %v555_v41  ;;  %v612_v23 = vmul.f32 0.03125, %v558_v14  ;;  %5317 = vmatmul.mubr.msk.f32.gmra.mxu0 %vm302_vm0, %v773_v40  ;;  %v736_v27 = vmul.f32 %v6479_v18, %v697_v7 }
 0x17b   : > { %v5541_v0 = vpop.eup %5540  ;;  %5554 = vrsqrt.f32 %v642_v11  ;;  %5319 = vmatprep.mubr.msk.f32.mxu0 %vm302_vm0, %v774_v56  ;;  %v737_v60 = vmul.f32 %v6479_v18, %v698_v19 }
 0x17c   : > { %v5543_v13 = vpop.eup %5542  ;;  %v643_v44 = vadd.f32 1e-05, %v611_v22  ;;  %v644_v2 = vadd.f32 1e-05, %v612_v23  ;;  %v775_v30 = vadd.f32 %v6485_v61, %v736_v27  ;;  %v699_v1 = vmul.f32 %v5541_v0, %v6334_v17 }
 0x17d   : > { %v561_v32 = vpop.xlane.xlu1 %560  ;;  %v564_v33 = vpop.xlane.xlu0 %563  ;;  %v776_v35 = vadd.f32 %v6485_v61, %v737_v60  ;;  %v700_v38 = vmul.f32 %v5543_v13, %v6343_v43 }
 0x17e   : > { %5556 = vrsqrt.f32 %v643_v44  ;;  %v613_v39 = vmul.f32 0.03125, %v561_v32  ;;  %v614_v42 = vmul.f32 0.03125, %v564_v33  ;;  %5320 = vmatmul.mubr.msk.f32.gmra.mxu0 %vm302_vm0, %v775_v30  ;;  %v738_v10 = vmul.f32 %v6479_v18, %v699_v1 }
 0x17f   : > { %v5545_v48 = vpop.eup %5544  ;;  %5558 = vrsqrt.f32 %v644_v2  ;;  %5322 = vmatprep.mubr.msk.f32.mxu0 %vm302_vm0, %v776_v35  ;;  %v739_v5 = vmul.f32 %v6479_v18, %v700_v38 }
 0x180   : > { %v5547_v17 = vpop.eup %5546  ;;  %v645_v46 = vadd.f32 1e-05, %v613_v39  ;;  %v646_v47 = vadd.f32 1e-05, %v614_v42  ;;  %v777_v36 = vadd.f32 %v6485_v61, %v738_v10  ;;  %v701_v43 = vmul.f32 %v5545_v48, %v6346_v21 }
 0x181   : > { %v567_v55 = vpop.xlane.xlu1 %566  ;;  %v570_v37 = vpop.xlane.xlu0 %569  ;;  %v778_v50 = vadd.f32 %v6485_v61, %v739_v5  ;;  %v702_v8 = vmul.f32 %v5547_v17, %v6355_v59 }
 0x182   : > { %5560 = vrsqrt.f32 %v645_v46  ;;  %v615_v58 = vmul.f32 0.03125, %v567_v55  ;;  %v616_v52 = vmul.f32 0.03125, %v570_v37  ;;  %5323 = vmatmul.mubr.msk.f32.gmra.mxu0 %vm302_vm0, %v777_v36  ;;  %v740_v62 = vmul.f32 %v6479_v18, %v701_v43 }
 0x183   : > { %v5549_v63 = vpop.eup %5548  ;;  %5562 = vrsqrt.f32 %v646_v47  ;;  %5325 = vmatprep.mubr.msk.f32.mxu0 %vm302_vm0, %v778_v50  ;;  %v741_v26 = vmul.f32 %v6479_v18, %v702_v8 }
 0x184   : > { %v5551_v21 = vpop.eup %5550  ;;  %v647_v3 = vadd.f32 1e-05, %v615_v58  ;;  %v648_v9 = vadd.f32 1e-05, %v616_v52  ;;  %v779_v4 = vadd.f32 %v6485_v61, %v740_v62  ;;  %v703_v59 = vmul.f32 %v5549_v63, %v6358_v25 }
 0x185   : > { %v573_v11 = vpop.xlane.xlu1 %572  ;;  %v576_v40 = vpop.xlane.xlu0 %575  ;;  %v780_v7 = vadd.f32 %v6485_v61, %v741_v26  ;;  %v704_v41 = vmul.f32 %v5551_v21, %v6367_v15 }
 0x186   : > { %5564 = vrsqrt.f32 %v647_v3  ;;  %v617_v14 = vmul.f32 0.03125, %v573_v11  ;;  %v618_v56 = vmul.f32 0.03125, %v576_v40  ;;  %5326 = vmatmul.mubr.msk.f32.gmra.mxu0 %vm302_vm0, %v779_v4  ;;  %v742_v19 = vmul.f32 %v6479_v18, %v703_v59 }
 0x187   : > { %v5553_v22 = vpop.eup %5552  ;;  %5566 = vrsqrt.f32 %v648_v9  ;;  %5328 = vmatprep.mubr.msk.f32.mxu0 %vm302_vm0, %v780_v7  ;;  %v743_v23 = vmul.f32 %v6479_v18, %v704_v41 }
 0x188   : > { %v5555_v25 = vpop.eup %5554  ;;  %v649_v27 = vadd.f32 1e-05, %v617_v14  ;;  %v650_v0 = vadd.f32 1e-05, %v618_v56  ;;  %v781_v60 = vadd.f32 %v6485_v61, %v742_v19  ;;  %v705_v15 = vmul.f32 %v5553_v22, %v6370_v29 }
 0x189   : > { %v579_v13 = vpop.xlane.xlu1 %578  ;;  %v582_v44 = vpop.xlane.xlu0 %581  ;;  %v782_v2 = vadd.f32 %v6485_v61, %v743_v23  ;;  %v706_v30 = vmul.f32 %v5555_v25, %v6382_v31 }
 0x18a   : > { %5568 = vrsqrt.f32 %v649_v27  ;;  %v619_v1 = vmul.f32 0.03125, %v579_v13  ;;  %v620_v32 = vmul.f32 0.03125, %v582_v44  ;;  %5329 = vmatmul.mubr.msk.f32.gmra.mxu0 %vm302_vm0, %v781_v60  ;;  %v744_v33 = vmul.f32 %v6479_v18, %v705_v15 }
 0x18b   : > { %v5557_v35 = vpop.eup %5556  ;;  %5570 = vrsqrt.f32 %v650_v0  ;;  %5331 = vmatprep.mubr.msk.f32.mxu0 %vm302_vm0, %v782_v2  ;;  %v745_v38 = vmul.f32 %v6479_v18, %v706_v30 }
 0x18c   : > { %v5559_v29 = vpop.eup %5558  ;;  %v651_v39 = vadd.f32 1e-05, %v619_v1  ;;  %v652_v42 = vadd.f32 1e-05, %v620_v32  ;;  %v783_v10 = vadd.f32 %v6485_v61, %v744_v33  ;;  %v707_v31 = vmul.f32 %v5557_v35, %v6385_v34 }
 0x18d   : > { %v585_v48 = vpop.xlane.xlu1 %584  ;;  %v588_v5 = vpop.xlane.xlu0 %587  ;;  %v784_v17 = vadd.f32 %v6485_v61, %v745_v38  ;;  %v708_v46 = vmul.f32 %v5559_v29, %v6400_v51 }
 0x18e   : > { %5572 = vrsqrt.f32 %v651_v39  ;;  %v621_v47 = vmul.f32 0.03125, %v585_v48  ;;  %v622_v36 = vmul.f32 0.03125, %v588_v5  ;;  %5332 = vmatmul.mubr.msk.f32.gmra.mxu0 %vm302_vm0, %v783_v10  ;;  %v746_v43 = vmul.f32 %v6479_v18, %v707_v31 }
 0x18f   : > { %v5561_v55 = vpop.eup %5560  ;;  %5574 = vrsqrt.f32 %v652_v42  ;;  %5334 = vmatprep.mubr.msk.f32.mxu0 %vm302_vm0, %v784_v17  ;;  %v747_v37 = vmul.f32 %v6479_v18, %v708_v46  ;;  %v5964_v10 = vmov 0.0  }
 0x190   : > { %v5563_v34 = vpop.eup %5562  ;;  %v653_v50 = vadd.f32 1e-05, %v621_v47  ;;  %v654_v8 = vadd.f32 1e-05, %v622_v36  ;;  %v785_v58 = vadd.f32 %v6485_v61, %v746_v43  ;;  %v709_v51 = vmul.f32 %v5561_v55, %v6403_v54  ;;  %1991 = vst [vmem:[#allocation2 + $0x20] sm:$0xff] %v5964_v10  ;;  %1987 = vst [vmem:[#allocation2] sm:$0xff] %v5964_v10 }
 0x191   : > { %v591_v52 = vpop.xlane.xlu1 %590  ;;  %v786_v62 = vadd.f32 %v6485_v61, %v747_v37  ;;  %v710_v63 = vmul.f32 %v5563_v34, %v6415_v6  ;;  %1992 = vst [vmem:[#allocation2 + $0x28] sm:$0x3] %v5964_v10  ;;  %1989 = vst [vmem:[#allocation2 + $0x10] sm:$0x3] %v5964_v10 }
 0x192   : > { %5576 = vrsqrt.f32 %v653_v50  ;;  %v623_v26 = vmul.f32 0.03125, %v591_v52  ;;  %5335 = vmatmul.mubr.msk.f32.gmra.mxu0 %vm302_vm0, %v785_v58  ;;  %v748_v21 = vmul.f32 %v6479_v18, %v709_v51  ;;  %1990 = vst [vmem:[#allocation2 + $0x18] sm:$0xff] %v5964_v10  ;;  %1993 = vst [vmem:[#allocation2 + $0x30] sm:$0xff] %v5964_v10 }
 0x193   : > { %v5565_v3 = vpop.eup %5564  ;;  %5578 = vrsqrt.f32 %v654_v8  ;;  %5337 = vmatprep.mubr.msk.f32.mxu0 %vm302_vm0, %v786_v62  ;;  %v749_v9 = vmul.f32 %v6479_v18, %v710_v63  ;;  %1994 = vst [vmem:[#allocation2 + $0x38] sm:$0xff] %v5964_v10  ;;  %1995 = vst [vmem:[#allocation2 + $0x40] sm:$0x3] %v5964_v10 }
 0x194   : > { %v5567_v4 = vpop.eup %5566  ;;  %v655_v59 = vadd.f32 1e-05, %v623_v26  ;;  %v787_v54 = vadd.f32 %v6485_v61, %v748_v21  ;;  %v711_v11 = vmul.f32 %v5565_v3, %v6418_v12  ;;  %1996 = vst [vmem:[#allocation2 + $0x48] sm:$0xff] %v5964_v10  ;;  %1997 = vst [vmem:[#allocation2 + $0x50] sm:$0xff] %v5964_v10 }
 0x195   : > { %v788_v6 = vadd.f32 %v6485_v61, %v749_v9  ;;  %v712_v40 = vmul.f32 %v5567_v4, %v6427_v45  ;;  %1998 = vst [vmem:[#allocation2 + $0x58] sm:$0x3] %v5964_v10  ;;  %1999 = vst [vmem:[#allocation2 + $0x60] sm:$0xff] %v5964_v10 }
 0x196   : > { %5580 = vrsqrt.f32 %v655_v59  ;;  %5338 = vmatmul.mubr.msk.f32.gmra.mxu0 %vm302_vm0, %v787_v54  ;;  %v750_v7 = vmul.f32 %v6479_v18, %v711_v11  ;;  %2000 = vst [vmem:[#allocation2 + $0x68] sm:$0xff] %v5964_v10  ;;  %2001 = vst [vmem:[#allocation2 + $0x70] sm:$0x3] %v5964_v10 }
 0x197   : > { %v5569_v41 = vpop.eup %5568  ;;  %5340 = vmatprep.mubr.msk.f32.mxu0 %vm302_vm0, %v788_v6  ;;  %v751_v14 = vmul.f32 %v6479_v18, %v712_v40  ;;  %2002 = vst [vmem:[#allocation2 + $0x78] sm:$0xff] %v5964_v10  ;;  %2003 = vst [vmem:[#allocation2 + $0x80] sm:$0xff] %v5964_v10 }
 0x198   : > { %v5571_v56 = vpop.eup %5570  ;;  %v789_v19 = vadd.f32 %v6485_v61, %v750_v7  ;;  %v713_v22 = vmul.f32 %v5569_v41, %v6430_v16  ;;  %2004 = vst [vmem:[#allocation2 + $0x88] sm:$0x3] %v5964_v10  ;;  %2005 = vst [vmem:[#allocation2 + $0x90] sm:$0xff] %v5964_v10 }
 0x199   : > { %v790_v12 = vadd.f32 %v6485_v61, %v751_v14  ;;  %v714_v23 = vmul.f32 %v5571_v56, %v6439_v20  ;;  %2006 = vst [vmem:[#allocation2 + $0x98] sm:$0xff] %v5964_v10  ;;  %2007 = vst [vmem:[#allocation2 + $0xa0] sm:$0x3] %v5964_v10 }
 0x19a   : > { %5341 = vmatmul.mubr.msk.f32.gmra.mxu0 %vm302_vm0, %v789_v19  ;;  %v752_v45 = vmul.f32 %v6479_v18, %v713_v22  ;;  %2008 = vst [vmem:[#allocation2 + $0xa8] sm:$0xff] %v5964_v10  ;;  %2009 = vst [vmem:[#allocation2 + $0xb0] sm:$0xff] %v5964_v10 }
 0x19b   : > { %v5573_v25 = vpop.eup %5572  ;;  %5343 = vmatprep.mubr.msk.f32.mxu0 %vm302_vm0, %v790_v12  ;;  %v753_v27 = vmul.f32 %v6479_v18, %v714_v23  ;;  %2010 = vst [vmem:[#allocation2 + $0xb8] sm:$0x3] %v5964_v10  ;;  %2011 = vst [vmem:[#allocation2 + $0xc0] sm:$0xff] %v5964_v10 }
 0x19c   : > { %v5575_v0 = vpop.eup %5574  ;;  %v791_v60 = vadd.f32 %v6485_v61, %v752_v45  ;;  %v715_v15 = vmul.f32 %v5573_v25, %v6442_v49  ;;  %2012 = vst [vmem:[#allocation2 + $0xc8] sm:$0xff] %v5964_v10  ;;  %2013 = vst [vmem:[#allocation2 + $0xd0] sm:$0x3] %v5964_v10 }
 0x19d   : > { %v792_v16 = vadd.f32 %v6485_v61, %v753_v27  ;;  %v716_v13 = vmul.f32 %v5575_v0, %v6451_v24  ;;  %2014 = vst [vmem:[#allocation2 + $0xd8] sm:$0xff] %v5964_v10  ;;  %2015 = vst [vmem:[#allocation2 + $0xe0] sm:$0xff] %v5964_v10 }
 0x19e   : > { %5344 = vmatmul.mubr.msk.f32.gmra.mxu0 %vm302_vm0, %v791_v60  ;;  %v754_v20 = vmul.f32 %v6479_v18, %v715_v15  ;;  %2016 = vst [vmem:[#allocation2 + $0xe8] sm:$0x3] %v5964_v10  ;;  %2017 = vst [vmem:[#allocation2 + $0xf0] sm:$0xff] %v5964_v10 }
 0x19f   : > { %v5577_v44 = vpop.eup %5576  ;;  %5346 = vmatprep.mubr.msk.f32.mxu0 %vm302_vm0, %v792_v16  ;;  %v755_v2 = vmul.f32 %v6479_v18, %v716_v13  ;;  %2018 = vst [vmem:[#allocation2 + $0xf8] sm:$0xff] %v5964_v10  ;;  %2019 = vst [vmem:[#allocation2 + $0x100] sm:$0x3] %v5964_v10 }
 0x1a0   : > { %v5579_v30 = vpop.eup %5578  ;;  %v793_v1 = vadd.f32 %v6485_v61, %v754_v20  ;;  %v717_v32 = vmul.f32 %v5577_v44, %v6454_v53  ;;  %2020 = vst [vmem:[#allocation2 + $0x108] sm:$0xff] %v5964_v10  ;;  %2021 = vst [vmem:[#allocation2 + $0x110] sm:$0xff] %v5964_v10 }
 0x1a1   : > { %v794_v49 = vadd.f32 %v6485_v61, %v755_v2  ;;  %v718_v33 = vmul.f32 %v5579_v30, %v6463_v28  ;;  %2022 = vst [vmem:[#allocation2 + $0x118] sm:$0x3] %v5964_v10  ;;  %2023 = vst [vmem:[#allocation2 + $0x120] sm:$0xff] %v5964_v10 }
 0x1a2   : > { %5347 = vmatmul.mubr.msk.f32.gmra.mxu0 %vm302_vm0, %v793_v1  ;;  %v756_v24 = vmul.f32 %v6479_v18, %v717_v32  ;;  %2024 = vst [vmem:[#allocation2 + $0x128] sm:$0xff] %v5964_v10  ;;  %2025 = vst [vmem:[#allocation2 + $0x130] sm:$0x3] %v5964_v10 }
 0x1a3   : > { %v5581_v35 = vpop.eup %5580  ;;  %5349 = vmatprep.mubr.msk.f32.mxu0 %vm302_vm0, %v794_v49  ;;  %v757_v38 = vmul.f32 %v6479_v18, %v718_v33  ;;  %2026 = vst [vmem:[#allocation2 + $0x138] sm:$0xff] %v5964_v10  ;;  %2027 = vst [vmem:[#allocation2 + $0x140] sm:$0xff] %v5964_v10 }
 0x1a4   : > { %v795_v29 = vadd.f32 %v6485_v61, %v756_v24  ;;  %v719_v39 = vmul.f32 %v5581_v35, %v6466_v57  ;;  %2028 = vst [vmem:[#allocation2 + $0x148] sm:$0x3] %v5964_v10  ;;  %2029 = vst [vmem:[#allocation2 + $0x150] sm:$0xff] %v5964_v10 }
 0x1a5   : > { %v796_v42 = vadd.f32 %v6485_v61, %v757_v38  ;;  %2030 = vst [vmem:[#allocation2 + $0x158] sm:$0xff] %v5964_v10  ;;  %2031 = vst [vmem:[#allocation2 + $0x160] sm:$0x3] %v5964_v10 }
 0x1a6   : > { %5350 = vmatmul.mubr.msk.f32.gmra.mxu0 %vm302_vm0, %v795_v29  ;;  %v758_v53 = vmul.f32 %v6479_v18, %v719_v39  ;;  %2032 = vst [vmem:[#allocation2 + $0x168] sm:$0xff] %v5964_v10  ;;  %2033 = vst [vmem:[#allocation2 + $0x170] sm:$0xff] %v5964_v10 }
 0x1a7   : > { %5352 = vmatprep.mubr.msk.f32.mxu0 %vm302_vm0, %v796_v42  ;;  %2034 = vst [vmem:[#allocation2 + $0x178] sm:$0x3] %v5964_v10  ;;  %2035 = vst [vmem:[#allocation2 + $0x180] sm:$0xff] %v5964_v10 }
 0x1a8   : > { %v797_v28 = vadd.f32 %v6485_v61, %v758_v53  ;;  %2036 = vst [vmem:[#allocation2 + $0x188] sm:$0xff] %v5964_v10  ;;  %2037 = vst [vmem:[#allocation2 + $0x190] sm:$0x3] %v5964_v10 }
 0x1a9   : > { %2040 = vst [vmem:[#allocation2 + $0x1a8] sm:$0x3] %v5964_v10 }
 0x1aa   : > { %5353 = vmatmul.mubr.msk.f32.gmra.mxu0 %vm302_vm0, %v797_v28 }
 0x22e   : > { %v5309_v57 = vpop.f32.mrf.mxu0 }
 0x22f   : > { %v6614_v18 = vmul.f32 0.70710677, %v5309_v57  ;;  %v6660_v33 = vmul.f32 0.5, %v5309_v57 }
 0x230   : > { %v6616_v61 = vpop.f32.mrf.mxu0 }
 0x231   : > { %v1156_v31 = vand.u32 2147483647, %v6614_v18  ;;  %v6620_v48 = vmul.f32 0.70710677, %v6616_v61  ;;  %v6668_v39 = vmul.f32 0.5, %v6616_v61  ;;  %vm1796_vm1 = vcmp.ge.f32.partialorder %v6614_v18, 0.0 }
 0x232   : > { %v6622_v5 = vpop.f32.mrf.mxu0 }
 0x233   : > { %v1188_v17 = vmul.f32 0.3275911, %v1156_v31  ;;  %v1604_v46 = vsub.f32 0.0, %v1156_v31  ;;  %v1155_v47 = vand.u32 2147483647, %v6620_v48  ;;  %vm1795_vm2 = vcmp.ge.f32.partialorder %v6620_v48, 0.0 }
 0x234   : > { %v6626_v36 = vmul.f32 0.70710677, %v6622_v5  ;;  %v6628_v43 = vpop.f32.mrf.mxu0 }
 0x235   : > { %v1220_v55 = vadd.f32 1.0, %v1188_v17  ;;  %v1636_v37 = vmul.f32 %v1604_v46, %v1156_v31  ;;  %v1187_v34 = vmul.f32 0.3275911, %v1155_v47  ;;  %v1603_v50 = vsub.f32 0.0, %v1155_v47 }
 0x236   : > { %v1158_v8 = vand.u32 2147483647, %v6626_v36  ;;  %v6632_v58 = vmul.f32 0.70710677, %v6628_v43  ;;  %v6634_v51 = vpop.f32.mrf.mxu0  ;;  %v6672_v17 = vmul.f32 0.5, %v6622_v5  ;;  %vm1798_vm3 = vcmp.ge.f32.partialorder %v6626_v36, 0.0 }
 0x237   : > { %5582 = vrcp.f32 %v1220_v55  ;;  %v1219_v52 = vadd.f32 1.0, %v1187_v34  ;;  %v1635_v62 = vmul.f32 %v1603_v50, %v1155_v47  ;;  %v1669_v9 = vmul.f32 1.442695, %v1636_v37 }
 0x238   : > { %v1190_v63 = vmul.f32 0.3275911, %v1158_v8  ;;  %v1606_v26 = vsub.f32 0.0, %v1158_v8  ;;  %v1157_v21 = vand.u32 2147483647, %v6632_v58  ;;  %v6637_v3 = vpop.f32.mrf.mxu0  ;;  %v6683_v37 = vmul.f32 0.5, %v6628_v43 }
 0x239   : > { %v6640_v4 = vmul.f32 0.70710677, %v6634_v51  ;;  %5584 = vrcp.f32 %v1219_v52  ;;  %v1667_v41 = vmul.f32 1.442695, %v1635_v62  ;;  %v6646_v56 = vmul.f32 0.70710677, %v6637_v3 }
 0x23a   : > { %v1222_v59 = vadd.f32 1.0, %v1190_v63  ;;  %v1638_v54 = vmul.f32 %v1606_v26, %v1158_v8  ;;  %v1189_v11 = vmul.f32 0.3275911, %v1157_v21  ;;  %v6642_v6 = vpop.f32.mrf.mxu0  ;;  %v1605_v40 = vsub.f32 0.0, %v1157_v21 }
 0x23b   : > { %v1160_v7 = vand.u32 2147483647, %v6640_v4  ;;  %v1159_v25 = vand.u32 2147483647, %v6646_v56  ;;  %v6652_v27 = vmul.f32 0.70710677, %v6642_v6 }
 0x23c   : > { %5586 = vrcp.f32 %v1222_v59  ;;  %v1221_v14 = vadd.f32 1.0, %v1189_v11  ;;  %v6648_v19 = vpop.f32.mrf.mxu0  ;;  %v1673_v22 = vmul.f32 1.442695, %v1638_v54  ;;  %v1637_v12 = vmul.f32 %v1605_v40, %v1157_v21 }
 0x23d   : > { %v1192_v23 = vmul.f32 0.3275911, %v1160_v7  ;;  %v1608_v45 = vsub.f32 0.0, %v1160_v7  ;;  %5588 = vpow2.f32 %v1669_v9  ;;  %v1191_v13 = vmul.f32 0.3275911, %v1159_v25 }
 0x23e   : > { %5590 = vrcp.f32 %v1221_v14  ;;  %v1671_v0 = vmul.f32 1.442695, %v1637_v12  ;;  %v6654_v16 = vpop.f32.mrf.mxu0  ;;  %v1607_v20 = vsub.f32 0.0, %v1159_v25  ;;  %v1162_v44 = vand.u32 2147483647, %v6652_v27 }
 0x23f   : > { %v1224_v60 = vadd.f32 1.0, %v1192_v23  ;;  %v1640_v15 = vmul.f32 %v1608_v45, %v1160_v7  ;;  %5592 = vpow2.f32 %v1667_v41  ;;  %v6658_v30 = vmul.f32 0.70710677, %v6648_v19 }
 0x240   : > { %5594 = vpow2.f32 %v1673_v22  ;;  %v1223_v1 = vadd.f32 1.0, %v1191_v13  ;;  %v1639_v32 = vmul.f32 %v1607_v20, %v1159_v25  ;;  %v1194_v49 = vmul.f32 0.3275911, %v1162_v44  ;;  %v6663_v38 = vpop.f32.mrf.mxu0 }
 0x241   : > { %v1677_v2 = vmul.f32 1.442695, %v1640_v15  ;;  %5596 = vrcp.f32 %v1224_v60  ;;  %v1610_v24 = vsub.f32 0.0, %v1162_v44  ;;  %v1161_v35 = vand.u32 2147483647, %v6658_v30 }
 0x242   : > { %5598 = vpow2.f32 %v1671_v0  ;;  %v1675_v42 = vmul.f32 1.442695, %v1639_v32  ;;  %v1226_v53 = vadd.f32 1.0, %v1194_v49  ;;  %v6675_v46 = vmul.f32 0.70710677, %v6654_v16 }
 0x243   : > { %5600 = vrcp.f32 %v1223_v1  ;;  %v1642_v10 = vmul.f32 %v1610_v24, %v1162_v44  ;;  %v1193_v31 = vmul.f32 0.3275911, %v1161_v35  ;;  %v1609_v57 = vsub.f32 0.0, %v1161_v35 }
 0x244   : > { %v6665_v29 = vpop.eup %5582  ;;  %5602 = vpow2.f32 %v1677_v2  ;;  %v6678_v47 = vmul.f32 0.70710677, %v6663_v38  ;;  %v1164_v52 = vand.u32 2147483647, %v6675_v46  ;;  %v6691_v26 = vmul.f32 0.5, %v6634_v51 }
 0x245   : > { %v1316_v28 = vmul.f32 1.0614054, %v6665_v29  ;;  %5604 = vrcp.f32 %v1226_v53  ;;  %v1225_v34 = vadd.f32 1.0, %v1193_v31  ;;  %v1681_v8 = vmul.f32 1.442695, %v1642_v10 }
 0x246   : > { %v6680_v61 = vpop.eup %5584  ;;  %v1641_v5 = vmul.f32 %v1609_v57, %v1161_v35  ;;  %5606 = vpow2.f32 %v1675_v42  ;;  %v1163_v21 = vand.u32 2147483647, %v6678_v47  ;;  %v1196_v40 = vmul.f32 0.3275911, %v1164_v52 }
 0x247   : > { %v1348_v55 = vadd.f32 -1.4531521, %v1316_v28  ;;  %v1315_v50 = vmul.f32 1.0614054, %v6680_v61  ;;  %5608 = vrcp.f32 %v1225_v34  ;;  %v1612_v7 = vsub.f32 0.0, %v1164_v52 }
 0x248   : > { %v1679_v59 = vmul.f32 1.442695, %v1641_v5  ;;  %v1611_v41 = vsub.f32 0.0, %v1163_v21  ;;  %5610 = vpow2.f32 %v1681_v8  ;;  %v1195_v51 = vmul.f32 0.3275911, %v1163_v21 }
 0x249   : > { %v6687_v62 = vpop.eup %5586  ;;  %v1380_v63 = vmul.f32 %v6665_v29, %v1348_v55  ;;  %v1347_v43 = vadd.f32 -1.4531521, %v1315_v50  ;;  %v1228_v0 = vadd.f32 1.0, %v1196_v40  ;;  %v1644_v60 = vmul.f32 %v1612_v7, %v1164_v52  ;;  %v6720_v52 = vpop.f32.mrf.mxu0 }
 0x24a   : > { %v1318_v9 = vmul.f32 1.0614054, %v6687_v62  ;;  %v5589_v54 = vpop.eup %5588  ;;  %5612 = vpow2.f32 %v1679_v59  ;;  %v1227_v44 = vadd.f32 1.0, %v1195_v51  ;;  %v1643_v24 = vmul.f32 %v1611_v41, %v1163_v21 }
 0x24b   : > { %v1412_v11 = vadd.f32 1.4214138, %v1380_v63  ;;  %v6695_v14 = vpop.eup %5590  ;;  %v1379_v22 = vmul.f32 %v6680_v61, %v1347_v43  ;;  %v1685_v49 = vmul.f32 1.442695, %v1644_v60  ;;  %5614 = vrcp.f32 %v1228_v0 }
 0x24c   : > { %v1350_v12 = vadd.f32 -1.4531521, %v1318_v9  ;;  %v6698_v23 = vpop.eup %5592  ;;  %v1317_v25 = vmul.f32 1.0614054, %v6695_v14  ;;  %v6716_v55 = vmul.f32 0.5, %v6637_v3  ;;  %5616 = vrcp.f32 %v1227_v44 }
 0x24d   : > { %v1444_v45 = vmul.f32 %v6665_v29, %v1412_v11  ;;  %v6702_v15 = vpop.eup %5594  ;;  %v1411_v13 = vadd.f32 1.4214138, %v1379_v22  ;;  %5618 = vpow2.f32 %v1685_v49  ;;  %v1683_v9 = vmul.f32 1.442695, %v1643_v24 }
 0x24e   : > { %v1382_v20 = vmul.f32 %v6687_v62, %v1350_v12  ;;  %v6705_v2 = vpop.eup %5596  ;;  %v1349_v32 = vadd.f32 -1.4531521, %v1317_v25  ;;  %v6733_v51 = vmul.f32 0.70710677, %v6720_v52  ;;  %vm1797_vm4 = vcmp.ge.f32.partialorder %v6632_v58, 0.0 }
 0x24f   : > { %v1476_v1 = vadd.f32 -0.28449672, %v1444_v45  ;;  %v6707_v35 = vpop.eup %5598  ;;  %v1443_v42 = vmul.f32 %v6680_v61, %v1411_v13  ;;  %v1320_v28 = vmul.f32 1.0614054, %v6705_v2  ;;  %5620 = vpow2.f32 %v1683_v9 }
 0x250   : > { %v1414_v53 = vadd.f32 1.4214138, %v1382_v20  ;;  %v6711_v10 = vpop.eup %5600  ;;  %v1381_v57 = vmul.f32 %v6695_v14, %v1349_v32  ;;  %v6743_v32 = vand.u32 2147483647, %v6733_v51  ;;  %vm1800_vm5 = vcmp.ge.f32.partialorder %v6640_v4, 0.0 }
 0x251   : > { %v1508_v31 = vmul.f32 %v6665_v29, %v1476_v1  ;;  %v1475_v34 = vadd.f32 -0.28449672, %v1443_v42  ;;  %v1352_v8 = vadd.f32 -1.4531521, %v1320_v28  ;;  %v1319_v5 = vmul.f32 1.0614054, %v6711_v10  ;;  %v6722_v63 = vpop.eup %5602 }
 0x252   : > { %v1446_v50 = vmul.f32 %v6687_v62, %v1414_v53  ;;  %v1413_v43 = vadd.f32 1.4214138, %v1381_v57  ;;  %v6724_v59 = vpop.eup %5604  ;;  %vm1799_vm6 = vcmp.ge.f32.partialorder %v6646_v56, 0.0  ;;  %vm1802_vm7 = vcmp.ge.f32.partialorder %v6652_v27, 0.0 }
 0x253   : > { %v1540_v21 = vadd.f32 0.2548296, %v1508_v31  ;;  %v1507_v3 = vmul.f32 %v6680_v61, %v1475_v34  ;;  %v1384_v40 = vmul.f32 %v6705_v2, %v1352_v8  ;;  %v1351_v7 = vadd.f32 -1.4531521, %v1319_v5  ;;  %v6735_v45 = vpop.eup %5606 }
 0x254   : > { %v1478_v11 = vadd.f32 -0.28449672, %v1446_v50  ;;  %v1445_v22 = vmul.f32 %v6695_v14, %v1413_v43  ;;  %v1322_v12 = vmul.f32 1.0614054, %v6724_v59  ;;  %v6739_v20 = vpop.eup %5608  ;;  %vm1801_vm8 = vcmp.ge.f32.partialorder %v6658_v30, 0.0 }
 0x255   : > { %v1572_v41 = vmul.f32 %v6665_v29, %v1540_v21  ;;  %v1539_v25 = vadd.f32 0.2548296, %v1507_v3  ;;  %v1416_v60 = vadd.f32 1.4214138, %v1384_v40  ;;  %v1383_v13 = vmul.f32 %v6711_v10, %v1351_v7  ;;  %v6747_v28 = vpop.eup %5610 }
 0x256   : > { %v1510_v0 = vmul.f32 %v6687_v62, %v1478_v11  ;;  %v1477_v29 = vadd.f32 -0.28449672, %v1445_v22  ;;  %v1354_v1 = vadd.f32 -1.4531521, %v1322_v12  ;;  %v1321_v34 = vmul.f32 1.0614054, %v6739_v20 }
 0x257   : > { %v1732_v44 = vmul.f32 %v5589_v54, %v1572_v41  ;;  %v1571_v49 = vmul.f32 %v6680_v61, %v1539_v25  ;;  %v1448_v42 = vmul.f32 %v6705_v2, %v1416_v60  ;;  %v1415_v53 = vadd.f32 1.4214138, %v1383_v13  ;;  %v6756_v21 = vpop.eup %5612 }
 0x258   : > { %v1542_v24 = vadd.f32 0.2548296, %v1510_v0  ;;  %v1509_v54 = vmul.f32 %v6695_v14, %v1477_v29  ;;  %v1386_v57 = vmul.f32 %v6724_v59, %v1354_v1  ;;  %v1353_v0 = vadd.f32 -1.4531521, %v1321_v34 }
 0x259   : > { %v1764_v31 = vsub.f32 1.0, %v1732_v44  ;;  %v1731_v50 = vmul.f32 %v6698_v23, %v1571_v49  ;;  %v1480_v61 = vadd.f32 -0.28449672, %v1448_v42  ;;  %v1447_v5 = vmul.f32 %v6711_v10, %v1415_v53  ;;  %v6761_v23 = vpop.eup %5614 }
 0x25a   : > { %v1574_v8 = vmul.f32 %v6687_v62, %v1542_v24  ;;  %v1541_v3 = vadd.f32 0.2548296, %v1509_v54  ;;  %v1418_v11 = vadd.f32 1.4214138, %v1386_v57  ;;  %v6767_v60 = vpop.eup %5616  ;;  %v1385_v18 = vmul.f32 %v6739_v20, %v1353_v0 }
 0x25b   : > { %v1828_v43 = vsub.f32 0.0, %v1764_v31  ;;  %v1763_v40 = vsub.f32 1.0, %v1731_v50  ;;  %v1512_v41 = vmul.f32 %v6705_v2, %v1480_v61  ;;  %v1479_v22 = vadd.f32 -0.28449672, %v1447_v5  ;;  %v6773_v24 = vpop.eup %5618 }
 0x25c   : > { %v1734_v7 = vmul.f32 %v6702_v15, %v1574_v8  ;;  %v1573_v12 = vmul.f32 %v6695_v14, %v1541_v3  ;;  %v1450_v25 = vmul.f32 %v6724_v59, %v1418_v11  ;;  %v1417_v61 = vadd.f32 1.4214138, %v1385_v18 }
 0x25d   : > { %v1860_v62 = vsel %vm1796_vm1, %v1764_v31, %v1828_v43  ;;  %v1827_v13 = vsub.f32 0.0, %v1763_v40  ;;  %v1544_v44 = vadd.f32 0.2548296, %v1512_v41  ;;  %v1511_v1 = vmul.f32 %v6711_v10, %v1479_v22 }
 0x25e   : > { %v1924_v9 = vadd.f32 1.0, %v1860_v62  ;;  %v1766_v15 = vsub.f32 1.0, %v1734_v7  ;;  %v1733_v29 = vmul.f32 %v6707_v35, %v1573_v12  ;;  %v1482_v49 = vadd.f32 -0.28449672, %v1450_v25 }
 0x25f   : > { %v1859_v42 = vsel %vm1795_vm2, %v1763_v40, %v1827_v13  ;;  %v1576_v31 = vmul.f32 %v6705_v2, %v1544_v44  ;;  %v1543_v35 = vadd.f32 0.2548296, %v1511_v1  ;;  %v1449_v40 = vmul.f32 %v6739_v20, %v1417_v61 }
 0x260   : > { %v1956_v14 = vmul.f32 %v1924_v9, %v6660_v33  ;;  %v1830_v53 = vsub.f32 0.0, %v1766_v15  ;;  %v1923_v54 = vadd.f32 1.0, %v1859_v42  ;;  %v1765_v57 = vsub.f32 1.0, %v1733_v29 }
 0x261   : > { %v1514_v34 = vmul.f32 %v6724_v59, %v1482_v49  ;;  %v1736_v8 = vmul.f32 %v6722_v63, %v1576_v31  ;;  %v1324_v33 = vmul.f32 1.0614054, %v6761_v23  ;;  %v1575_v2 = vmul.f32 %v6711_v10, %v1543_v35 }
 0x262   : > { %2043 = vst [vmem:[#allocation2 + $0x21] sm:$0xff] %v1956_v14  ;;  %v1862_v50 = vsel %vm1798_vm3, %v1766_v15, %v1830_v53  ;;  %v1955_v48 = vmul.f32 %v1923_v54, %v6668_v39  ;;  %v1829_v43 = vsub.f32 0.0, %v1765_v57  ;;  %v1323_v22 = vmul.f32 1.0614054, %v6767_v60 }
 0x263   : > { %v1926_v5 = vadd.f32 1.0, %v1862_v50  ;;  %v1768_v3 = vsub.f32 1.0, %v1736_v8  ;;  %v1546_v11 = vadd.f32 0.2548296, %v1514_v34  ;;  %v1356_v7 = vadd.f32 -1.4531521, %v1324_v33 }
 0x264   : > { %2042 = vst [vmem:[#allocation2 + $0x19] sm:$0xff] %v1955_v48  ;;  %v1861_v63 = vsel %vm1797_vm4, %v1765_v57, %v1829_v43  ;;  %v1735_v41 = vmul.f32 %v6735_v45, %v1575_v2  ;;  %v1481_v10 = vadd.f32 -0.28449672, %v1449_v40  ;;  %v1355_v9 = vadd.f32 -1.4531521, %v1323_v22 }
 0x265   : > { %v1958_v36 = vmul.f32 %v1926_v5, %v6672_v17  ;;  %v1925_v39 = vadd.f32 1.0, %v1861_v63  ;;  %v1832_v62 = vsub.f32 0.0, %v1768_v3  ;;  %v1578_v12 = vmul.f32 %v6724_v59, %v1546_v11  ;;  %v6795_v17 = vpop.eup %5620  ;;  %v6802_v59 = vpop.f32.mrf.mxu0 }
 0x266   : > { %v1767_v25 = vsub.f32 1.0, %v1735_v41  ;;  %v1388_v0 = vmul.f32 %v6761_v23, %v1356_v7  ;;  %v1198_v13 = vmul.f32 0.3275911, %v6743_v32  ;;  %v1513_v44 = vmul.f32 %v6739_v20, %v1481_v10 }
 0x267   : > { %2045 = vst [vmem:[#allocation2 + $0x39] sm:$0xff] %v1958_v36  ;;  %v1957_v58 = vmul.f32 %v1925_v39, %v6683_v37  ;;  %v1864_v45 = vsel %vm1800_vm5, %v1768_v3, %v1832_v62  ;;  %v1738_v15 = vmul.f32 %v6747_v28, %v1578_v12  ;;  %v1387_v18 = vmul.f32 %v6767_v60, %v1355_v9  ;;  %v6809_v34 = vpop.f32.mrf.mxu0 }
 0x268   : > { %v1928_v29 = vadd.f32 1.0, %v1864_v45  ;;  %v1831_v1 = vsub.f32 0.0, %v1767_v25  ;;  %v1420_v49 = vadd.f32 1.4214138, %v1388_v0  ;;  %v1545_v42 = vadd.f32 0.2548296, %v1513_v44 }
 0x269   : > { %2044 = vst [vmem:[#allocation2 + $0x31] sm:$0xff] %v1957_v58  ;;  %v1770_v14 = vsub.f32 1.0, %v1738_v15  ;;  %v1230_v37 = vadd.f32 1.0, %v1198_v13  ;;  %v1419_v31 = vadd.f32 1.4214138, %v1387_v18  ;;  %v1898_v33 = vmul.f32 0.5, %v6642_v6 }
 0x26a   : > { %v1960_v4 = vmul.f32 %v1928_v29, %v6691_v26  ;;  %v1863_v53 = vsel %vm1799_vm6, %v1767_v25, %v1831_v1  ;;  %v1452_v28 = vmul.f32 %v6761_v23, %v1420_v49  ;;  %v1577_v35 = vmul.f32 %v6739_v20, %v1545_v42 }
 0x26b   : > { %v1927_v54 = vadd.f32 1.0, %v1863_v53  ;;  %v1834_v57 = vsub.f32 0.0, %v1770_v14  ;;  %5622 = vrcp.f32 %v1230_v37  ;;  %v1451_v50 = vmul.f32 %v6767_v60, %v1419_v31 }
 0x26c   : > { %2047 = vst [vmem:[#allocation2 + $0x51] sm:$0xff] %v1960_v4  ;;  %v1484_v56 = vadd.f32 -0.28449672, %v1452_v28  ;;  %v1737_v61 = vmul.f32 %v6756_v21, %v1577_v35  ;;  %v1614_v2 = vsub.f32 0.0, %v6743_v32  ;;  %v6819_v27 = vmul.f32 0.70710677, %v6802_v59 }
 0x26d   : > { %v1959_v8 = vmul.f32 %v1927_v54, %v6716_v55  ;;  %v1866_v26 = vsel %vm1802_vm7, %v1770_v14, %v1834_v57  ;;  %v1483_v20 = vadd.f32 -0.28449672, %v1451_v50  ;;  %v6822_v3 = vmul.f32 0.70710677, %v6809_v34  ;;  %v6824_v55 = vpop.f32.mrf.mxu0 }
 0x26e   : > { %v1930_v48 = vadd.f32 1.0, %v1866_v26  ;;  %v1516_v5 = vmul.f32 %v6761_v23, %v1484_v56  ;;  %v1769_v43 = vsub.f32 1.0, %v1737_v61  ;;  %v1165_v7 = vand.u32 2147483647, %v6819_v27 }
 0x26f   : > { %2046 = vst [vmem:[#allocation2 + $0x49] sm:$0xff] %v1959_v8  ;;  %v1515_v6 = vmul.f32 %v6767_v60, %v1483_v20  ;;  %v1168_v36 = vand.u32 2147483647, %v6822_v3  ;;  %v1897_v63 = vmul.f32 0.5, %v6648_v19  ;;  %v6833_v39 = vmul.f32 0.70710677, %v6824_v55  ;;  %v6836_v30 = vpop.f32.mrf.mxu0 }
 0x270   : > { %v1962_v11 = vmul.f32 %v1930_v48, %v1898_v33  ;;  %v1548_v21 = vadd.f32 0.2548296, %v1516_v5  ;;  %v1833_v40 = vsub.f32 0.0, %v1769_v43  ;;  %v1646_v12 = vmul.f32 %v1614_v2, %v6743_v32 }
 0x271   : > { %v1547_v22 = vadd.f32 0.2548296, %v1515_v6  ;;  %v1197_v10 = vmul.f32 0.3275911, %v1165_v7  ;;  %v1200_v25 = vmul.f32 0.3275911, %v1168_v36  ;;  %v6842_v18 = vpop.f32.mrf.mxu0 }
 0x272   : > { %2049 = vst [vmem:[#allocation2 + $0x69] sm:$0xff] %v1962_v11  ;;  %v1580_v41 = vmul.f32 %v6761_v23, %v1548_v21  ;;  %v1865_v62 = vsel %vm1801_vm8, %v1769_v43, %v1833_v40  ;;  %v1613_v58 = vsub.f32 0.0, %v1165_v7  ;;  %v1167_v23 = vand.u32 2147483647, %v6833_v39 }
 0x273   : > { %v1929_v0 = vadd.f32 1.0, %v1865_v62  ;;  %v1579_v13 = vmul.f32 %v6767_v60, %v1547_v22  ;;  %v1229_v19 = vadd.f32 1.0, %v1197_v10  ;;  %v1232_v45 = vadd.f32 1.0, %v1200_v25  ;;  %v6851_v56 = vpop.f32.mrf.mxu0 }
 0x274   : > { %v1740_v9 = vmul.f32 %v6773_v24, %v1580_v41  ;;  %v1689_v1 = vmul.f32 1.442695, %v1646_v12  ;;  %v1616_v32 = vsub.f32 0.0, %v1168_v36  ;;  %v1199_v49 = vmul.f32 0.3275911, %v1167_v23 }
 0x275   : > { %v1961_v15 = vmul.f32 %v1929_v0, %v1897_v63  ;;  %v1739_v29 = vmul.f32 %v6795_v17, %v1579_v13  ;;  %5624 = vrcp.f32 %v1229_v19  ;;  %v1645_v42 = vmul.f32 %v1613_v58, %v1165_v7  ;;  %v6864_v2 = vpop.f32.mrf.mxu0 }
 0x276   : > { %v1772_v44 = vsub.f32 1.0, %v1740_v9  ;;  %5626 = vrcp.f32 %v1232_v45  ;;  %vm1804_vm9 = vcmp.ge.f32.partialorder %v6675_v46, 0.0  ;;  %v1900_v37 = vmul.f32 0.5, %v6654_v16 }
 0x277   : > { %2048 = vst [vmem:[#allocation2 + $0x61] sm:$0xff] %v1961_v15  ;;  %v1771_v60 = vsub.f32 1.0, %v1739_v29  ;;  %v1231_v17 = vadd.f32 1.0, %v1199_v49  ;;  %vm1803_vm10 = vcmp.ge.f32.partialorder %v6678_v47, 0.0  ;;  %v1899_v31 = vmul.f32 0.5, %v6663_v38 }
 0x278   : > { %v6844_v14 = vpop.eup %5622  ;;  %v1836_v24 = vsub.f32 0.0, %v1772_v44  ;;  %v1648_v35 = vmul.f32 %v1616_v32, %v1168_v36  ;;  %v1687_v46 = vmul.f32 1.442695, %v1645_v42  ;;  %v6854_v16 = vmul.f32 0.70710677, %v6836_v30 }
 0x279   : > { %v1326_v4 = vmul.f32 1.0614054, %v6844_v14  ;;  %v1835_v28 = vsub.f32 0.0, %v1771_v60  ;;  %5628 = vrcp.f32 %v1231_v17  ;;  %v1615_v47 = vsub.f32 0.0, %v1167_v23 }
 0x27a   : > { %v1868_v53 = vsel %vm1804_vm9, %v1772_v44, %v1836_v24  ;;  %5630 = vpow2.f32 %v1689_v1  ;;  %v1170_v33 = vand.u32 2147483647, %v6854_v16  ;;  %v6859_v38 = vmul.f32 0.70710677, %v6842_v18 }
 0x27b   : > { %v1932_v54 = vadd.f32 1.0, %v1868_v53  ;;  %v1358_v57 = vadd.f32 -1.4531521, %v1326_v4  ;;  %v1867_v50 = vsel %vm1803_vm10, %v1771_v60, %v1835_v28  ;;  %v1693_v20 = vmul.f32 1.442695, %v1648_v35 }
 0x27c   : > { %v1931_v26 = vadd.f32 1.0, %v1867_v50  ;;  %v6862_v43 = vmul.f32 0.70710677, %v6851_v56  ;;  %v6867_v11 = vmul.f32 0.5, %v6720_v52  ;;  %v1202_v21 = vmul.f32 0.3275911, %v1170_v33 }
 0x27d   : > { %v1964_v8 = vmul.f32 %v1932_v54, %v1900_v37  ;;  %v1390_v61 = vmul.f32 %v6844_v14, %v1358_v57  ;;  %v1169_v6 = vand.u32 2147483647, %v6859_v38  ;;  %5632 = vpow2.f32 %v1687_v46  ;;  %v6898_v54 = vpop.f32.mrf.mxu0 }
 0x27e   : > { %v1963_v48 = vmul.f32 %v1931_v26, %v1899_v31  ;;  %v1647_v7 = vmul.f32 %v1615_v47, %v1167_v23  ;;  %v1172_v36 = vand.u32 2147483647, %v6862_v43  ;;  %v1234_v63 = vadd.f32 1.0, %v1202_v21 }
 0x27f   : > { %2051 = vst [vmem:[#allocation2 + $0x81] sm:$0xff] %v1964_v8  ;;  %v1422_v5 = vadd.f32 1.4214138, %v1390_v61  ;;  %v1618_v41 = vsub.f32 0.0, %v1170_v33  ;;  %v1201_v22 = vmul.f32 0.3275911, %v1169_v6  ;;  %5634 = vpow2.f32 %v1693_v20 }
 0x280   : > { %2050 = vst [vmem:[#allocation2 + $0x79] sm:$0xff] %v1963_v48  ;;  %v6873_v62 = vmul.f32 0.70710677, %v6864_v2  ;;  %v1617_v52 = vsub.f32 0.0, %v1169_v6  ;;  %v1204_v10 = vmul.f32 0.3275911, %v1172_v36  ;;  %5636 = vrcp.f32 %v1234_v63  ;;  %v6913_v63 = vpop.f32.mrf.mxu0 }
 0x281   : > { %v1454_v40 = vmul.f32 %v6844_v14, %v1422_v5  ;;  %v6878_v0 = vmul.f32 0.5, %v6802_v59  ;;  %v6881_v9 = vmul.f32 0.5, %v6809_v34  ;;  %v1233_v13 = vadd.f32 1.0, %v1201_v22 }
 0x282   : > { %v6875_v25 = vpop.eup %5624  ;;  %v1691_v23 = vmul.f32 1.442695, %v1647_v7  ;;  %v1236_v15 = vadd.f32 1.0, %v1204_v10  ;;  %v1650_v29 = vmul.f32 %v1618_v41, %v1170_v33  ;;  %v1620_v1 = vsub.f32 0.0, %v1172_v36 }
 0x283   : > { %v1486_v12 = vadd.f32 -0.28449672, %v1454_v40  ;;  %v6883_v58 = vpop.eup %5626  ;;  %v1325_v45 = vmul.f32 1.0614054, %v6875_v25  ;;  %v1171_v59 = vand.u32 2147483647, %v6873_v62  ;;  %5638 = vrcp.f32 %v1233_v13 }
 0x284   : > { %v1328_v44 = vmul.f32 1.0614054, %v6883_v58  ;;  %v1649_v34 = vmul.f32 %v1617_v52, %v1169_v6  ;;  %vm1806_vm11 = vcmp.ge.f32.partialorder %v6733_v51, 0.0  ;;  %v6893_v42 = vmul.f32 0.5, %v6824_v55 }
 0x285   : > { %v1518_v19 = vmul.f32 %v6844_v14, %v1486_v12  ;;  %v1357_v49 = vadd.f32 -1.4531521, %v1325_v45  ;;  %v1203_v37 = vmul.f32 0.3275911, %v1171_v59  ;;  %v1619_v4 = vsub.f32 0.0, %v1171_v59 }
 0x286   : > { %v6889_v24 = vpop.eup %5628  ;;  %v1360_v60 = vadd.f32 -1.4531521, %v1328_v44  ;;  %5640 = vrcp.f32 %v1236_v15  ;;  %v1697_v35 = vmul.f32 1.442695, %v1650_v29  ;;  %v1652_v50 = vmul.f32 %v1620_v1, %v1172_v36 }
 0x287   : > { %v1550_v32 = vadd.f32 0.2548296, %v1518_v19  ;;  %v5631_v17 = vpop.eup %5630  ;;  %v1389_v28 = vmul.f32 %v6875_v25, %v1357_v49  ;;  %v1327_v31 = vmul.f32 1.0614054, %v6889_v24  ;;  %v1235_v46 = vadd.f32 1.0, %v1203_v37 }
 0x288   : > { %v1392_v57 = vmul.f32 %v6883_v58, %v1360_v60  ;;  %v1695_v61 = vmul.f32 1.442695, %v1649_v34  ;;  %v1651_v33 = vmul.f32 %v1619_v4, %v1171_v59  ;;  %v6908_v40 = vmul.f32 0.5, %v6836_v30 }
 0x289   : > { %v1582_v53 = vmul.f32 %v6844_v14, %v1550_v32  ;;  %v1421_v55 = vadd.f32 1.4214138, %v1389_v28  ;;  %v1359_v26 = vadd.f32 -1.4531521, %v1327_v31  ;;  %5642 = vrcp.f32 %v1235_v46 }
 0x28a   : > { %v1424_v47 = vadd.f32 1.4214138, %v1392_v57  ;;  %v6902_v14 = vmul.f32 0.70710677, %v6898_v54  ;;  %5644 = vpow2.f32 %v1691_v23  ;;  %v5633_v21 = vpop.eup %5632  ;;  %v1701_v7 = vmul.f32 1.442695, %v1652_v50 }
 0x28b   : > { %v1742_v8 = vmul.f32 %v5631_v17, %v1582_v53  ;;  %v1453_v5 = vmul.f32 %v6875_v25, %v1421_v55  ;;  %v1391_v20 = vmul.f32 %v6889_v24, %v1359_v26  ;;  %5646 = vpow2.f32 %v1697_v35  ;;  %v4803_v53 = vld [vmem:[%s9712_s5 + $0x78] sm:$0xff] }
 0x28c   : > { %v1456_v6 = vmul.f32 %v6883_v58, %v1424_v47  ;;  %v6911_v36 = vand.u32 2147483647, %v6902_v14  ;;  %v5635_v52 = vpop.eup %5634  ;;  %5648 = vpow2.f32 %v1695_v61  ;;  %v1699_v13 = vmul.f32 1.442695, %v1651_v33  ;;  %5355 = vmatprep.subr.mxu0 %v4803_v53  ;;  %5435 = vmatprep.subr.mxu1 %v4803_v53 }
 0x28d   : > { %v1774_v48 = vsub.f32 1.0, %v1742_v8  ;;  %v1485_v22 = vadd.f32 -0.28449672, %v1453_v5  ;;  %v1423_v12 = vadd.f32 1.4214138, %v1391_v20  ;;  %v6916_v45 = vpop.eup %5636  ;;  %5650 = vpow2.f32 %v1701_v7  ;;  %5356 = vmatpush3.msra.mxu0 %v4803_v53  ;;  %v4802_v8 = vld [vmem:[%s9712_s5 + $0x70] sm:$0xff]  ;;  %5451 = vmatpush3.msra.mxu1 %v4803_v53 }
 0x28e   : > { %v1488_v10 = vadd.f32 -0.28449672, %v1456_v6  ;;  %v1206_v19 = vmul.f32 0.3275911, %v6911_v36  ;;  %v6923_v44 = vmul.f32 0.70710677, %v6913_v63  ;;  %5357 = vmatprep.subr.mxu0 %v4802_v8  ;;  %5436 = vmatprep.subr.mxu1 %v4802_v8 }
 0x28f   : > { %v1838_v41 = vsub.f32 0.0, %v1774_v48  ;;  %v1517_v23 = vmul.f32 %v6875_v25, %v1485_v22  ;;  %v1455_v15 = vmul.f32 %v6889_v24, %v1423_v12  ;;  %v1330_v59 = vmul.f32 1.0614054, %v6916_v45  ;;  %5358 = vmatpush3.msra.mxu0 %v4802_v8  ;;  %v4801_v20 = vld [vmem:[%s9712_s5 + $0x68] sm:$0xff]  ;;  %5452 = vmatpush3.msra.mxu1 %v4802_v8 }
 0x290   : > { %v1520_v1 = vmul.f32 %v6883_v58, %v1488_v10  ;;  %v1238_v32 = vadd.f32 1.0, %v1206_v19  ;;  %v6928_v60 = vand.u32 2147483647, %v6923_v44  ;;  %v6930_v51 = vpop.eup %5638  ;;  %vm1805_vm12 = vcmp.ge.f32.partialorder %v6819_v27, 0.0  ;;  %5359 = vmatprep.subr.mxu0 %v4801_v20  ;;  %5437 = vmatprep.subr.mxu1 %v4801_v20  ;;  %v4800_v19 = vld [vmem:[%s9712_s5 + $0x60] sm:$0xff]  ;;  %v4798_v27 = vld [vmem:[%s9712_s5 + $0x50] sm:$0xff] }
 0x291   : > { %v1870_v30 = vsel %vm1806_vm11, %v1774_v48, %v1838_v41  ;;  %v1549_v49 = vadd.f32 0.2548296, %v1517_v23  ;;  %v1487_v34 = vadd.f32 -0.28449672, %v1455_v15  ;;  %v1362_v17 = vadd.f32 -1.4531521, %v1330_v59  ;;  %5360 = vmatpush3.msra.mxu0 %v4801_v20  ;;  %5453 = vmatpush3.msra.mxu1 %v4801_v20 }
 0x292   : > { %v1934_v29 = vadd.f32 1.0, %v1870_v30  ;;  %v1552_v4 = vadd.f32 0.2548296, %v1520_v1  ;;  %5652 = vrcp.f32 %v1238_v32  ;;  %vm1808_vm13 = vcmp.ge.f32.partialorder %v6822_v3, 0.0  ;;  %5361 = vmatprep.subr.mxu0 %v4800_v19  ;;  %5438 = vmatprep.subr.mxu1 %v4800_v19 }
 0x293   : > { %v1581_v28 = vmul.f32 %v6875_v25, %v1549_v49  ;;  %v1519_v31 = vmul.f32 %v6889_v24, %v1487_v34  ;;  %v1329_v57 = vmul.f32 1.0614054, %v6930_v51  ;;  %5654 = vpow2.f32 %v1699_v13  ;;  %5362 = vmatpush3.msra.mxu0 %v4800_v19  ;;  %v4799_v34 = vld [vmem:[%s9712_s5 + $0x58] sm:$0xff]  ;;  %5454 = vmatpush3.msra.mxu1 %v4800_v19 }
 0x294   : > { %v1966_v37 = vmul.f32 %v1934_v29, %v6867_v11  ;;  %v6941_v11 = vpop.eup %5640  ;;  %v1584_v35 = vmul.f32 %v6883_v58, %v1552_v4  ;;  %v1394_v50 = vmul.f32 %v6916_v45, %v1362_v17  ;;  %v1622_v46 = vsub.f32 0.0, %v6911_v36  ;;  %5363 = vmatprep.subr.mxu0 %v4799_v34  ;;  %5439 = vmatprep.subr.mxu1 %v4799_v34 }
 0x295   : > { %v1205_v25 = vmul.f32 0.3275911, %v6928_v60  ;;  %v1741_v55 = vmul.f32 %v5633_v21, %v1581_v28  ;;  %v1551_v26 = vadd.f32 0.2548296, %v1519_v31  ;;  %v1361_v61 = vadd.f32 -1.4531521, %v1329_v57  ;;  %5364 = vmatpush3.msra.mxu0 %v4799_v34  ;;  %5455 = vmatpush3.msra.mxu1 %v4799_v34 }
 0x296   : > { %2053 = vst [vmem:[#allocation2 + $0x99] sm:$0xff] %v1966_v37  ;;  %v1332_v47 = vmul.f32 1.0614054, %v6941_v11  ;;  %v1744_v58 = vmul.f32 %v5635_v52, %v1584_v35  ;;  %vm1807_vm14 = vcmp.ge.f32.partialorder %v6833_v39, 0.0  ;;  %v1426_v33 = vadd.f32 1.4214138, %v1394_v50  ;;  %v6956_v21 = vpop.eup %5642  ;;  %5365 = vmatprep.subr.mxu0 %v4798_v27  ;;  %5440 = vmatprep.subr.mxu1 %v4798_v27 }
 0x297   : > { %v1237_v48 = vadd.f32 1.0, %v1205_v25  ;;  %v1621_v5 = vsub.f32 0.0, %v6928_v60  ;;  %v1773_v6 = vsub.f32 1.0, %v1741_v55  ;;  %v1583_v7 = vmul.f32 %v6889_v24, %v1551_v26  ;;  %v5645_v12 = vpop.eup %5644  ;;  %5366 = vmatpush3.msra.mxu0 %v4798_v27  ;;  %5456 = vmatpush3.msra.mxu1 %v4798_v27 }
 0x298   : > { %v1393_v41 = vmul.f32 %v6930_v51, %v1361_v61  ;;  %v1364_v22 = vadd.f32 -1.4531521, %v1332_v47  ;;  %v1776_v52 = vsub.f32 1.0, %v1744_v58  ;;  %v1458_v10 = vmul.f32 %v6916_v45, %v1426_v33  ;;  %v5647_v29 = vpop.eup %5646 }
 0x299   : > { %v1331_v13 = vmul.f32 1.0614054, %v6956_v21  ;;  %5656 = vrcp.f32 %v1237_v48  ;;  %v1837_v30 = vsub.f32 0.0, %v1773_v6  ;;  %v1743_v24 = vmul.f32 %v5645_v12, %v1583_v7  ;;  %v6970_v37 = vpop.eup %5648  ;;  %v4796_v7 = vld [vmem:[%s9712_s5 + $0x40] sm:$0xff] }
 0x29a   : > { %v1425_v23 = vadd.f32 1.4214138, %v1393_v41  ;;  %v1396_v15 = vmul.f32 %v6941_v11, %v1364_v22  ;;  %v1840_v1 = vsub.f32 0.0, %v1776_v52  ;;  %v1490_v59 = vadd.f32 -0.28449672, %v1458_v10  ;;  %v6983_v55 = vpop.eup %5650 }
 0x29b   : > { %v1363_v32 = vadd.f32 -1.4531521, %v1331_v13  ;;  %v1654_v49 = vmul.f32 %v1622_v46, %v6911_v36  ;;  %v1869_v4 = vsel %vm1805_vm12, %v1773_v6, %v1837_v30  ;;  %v1775_v17 = vsub.f32 1.0, %v1743_v24 }
 0x29c   : > { %v1457_v53 = vmul.f32 %v6930_v51, %v1425_v23  ;;  %v1428_v28 = vadd.f32 1.4214138, %v1396_v15  ;;  %v1933_v31 = vadd.f32 1.0, %v1869_v4  ;;  %v1872_v36 = vsel %vm1808_vm13, %v1776_v52, %v1840_v1  ;;  %v7004_v52 = vpop.f32.mrf.mxu0 }
 0x29d   : > { %v1522_v57 = vmul.f32 %v6916_v45, %v1490_v59  ;;  %v1395_v35 = vmul.f32 %v6956_v21, %v1363_v32  ;;  %v1936_v50 = vadd.f32 1.0, %v1872_v36  ;;  %v1839_v46 = vsub.f32 0.0, %v1775_v17 }
 0x29e   : > { %v1489_v25 = vadd.f32 -0.28449672, %v1457_v53  ;;  %v1460_v8 = vmul.f32 %v6941_v11, %v1428_v28  ;;  %v1965_v3 = vmul.f32 %v1933_v31, %v6878_v0  ;;  %v1705_v47 = vmul.f32 1.442695, %v1654_v49  ;;  %v4797_v0 = vld [vmem:[%s9712_s5 + $0x48] sm:$0xff]  ;;  %v7034_v53 = vpop.f32.mrf.mxu0 }
 0x29f   : > { %v1554_v26 = vadd.f32 0.2548296, %v1522_v57  ;;  %v1427_v61 = vadd.f32 1.4214138, %v1395_v35  ;;  %v6986_v58 = vpop.eup %5652  ;;  %v1968_v33 = vmul.f32 %v1936_v50, %v6881_v9  ;;  %v1871_v48 = vsel %vm1807_vm14, %v1775_v17, %v1839_v46  ;;  %5367 = vmatprep.subr.mxu0 %v4797_v0  ;;  %5441 = vmatprep.subr.mxu1 %v4797_v0  ;;  %v4793_v28 = vld [vmem:[%s9712_s5 + $0x28] sm:$0xff]  ;;  %v4792_v50 = vld [vmem:[%s9712_s5 + $0x20] sm:$0xff] }
 0x2a0   : > { %vm1810_vm15 = vcmp.ge.f32.partialorder %v6854_v16, 0.0  ;;  %v1521_v20 = vmul.f32 %v6930_v51, %v1489_v25  ;;  %v1492_v6 = vadd.f32 -0.28449672, %v1460_v8  ;;  %v6999_v41 = vpop.eup %5654  ;;  %2052 = vst [vmem:[#allocation2 + $0x91] sm:$0xff] %v1965_v3  ;;  %v1935_v9 = vadd.f32 1.0, %v1871_v48  ;;  %5368 = vmatpush3.msra.mxu0 %v4797_v0  ;;  %5457 = vmatpush3.msra.mxu1 %v4797_v0 }
 0x2a1   : > { %v1586_v39 = vmul.f32 %v6916_v45, %v1554_v26  ;;  %v1459_v22 = vmul.f32 %v6956_v21, %v1427_v61  ;;  %v1334_v12 = vmul.f32 1.0614054, %v6986_v58  ;;  %2055 = vst [vmem:[#allocation2 + $0xb1] sm:$0xff] %v1968_v33  ;;  %v7007_v13 = vmul.f32 0.5, %v6842_v18  ;;  %v4795_v45 = vld [vmem:[%s9712_s5 + $0x38] sm:$0xff]  ;;  %5369 = vmatprep.subr.mxu0 %v4796_v7  ;;  %5442 = vmatprep.subr.mxu1 %v4796_v7 }
 0x2a2   : > { %v1553_v10 = vadd.f32 0.2548296, %v1521_v20  ;;  %v1524_v19 = vmul.f32 %v6941_v11, %v1492_v6  ;;  %v1653_v30 = vmul.f32 %v1621_v5, %v6928_v60  ;;  %v1967_v24 = vmul.f32 %v1935_v9, %v6893_v42  ;;  %5370 = vmatpush3.msra.mxu0 %v4796_v7  ;;  %v4794_v5 = vld [vmem:[%s9712_s5 + $0x30] sm:$0xff]  ;;  %5458 = vmatpush3.msra.mxu1 %v4796_v7  ;;  %v4791_v33 = vld [vmem:[%s9712_s5 + $0x18] sm:$0xff]  ;;  %v7057_v20 = vpop.f32.mrf.mxu0 }
 0x2a3   : > { %v1746_v23 = vmul.f32 %v5647_v29, %v1586_v39  ;;  %v1491_v15 = vadd.f32 -0.28449672, %v1459_v22  ;;  %v1366_v1 = vadd.f32 -1.4531521, %v1334_v12  ;;  %vm1809_vm1 = vcmp.ge.f32.partialorder %v6859_v38, 0.0  ;;  %5371 = vmatprep.subr.mxu0 %v4795_v45  ;;  %5443 = vmatprep.subr.mxu1 %v4795_v45 }
 0x2a4   : > { %v1585_v18 = vmul.f32 %v6930_v51, %v1553_v10  ;;  %v1556_v59 = vadd.f32 0.2548296, %v1524_v19  ;;  %v7020_v60 = vmul.f32 0.70710677, %v7004_v52  ;;  %2054 = vst [vmem:[#allocation2 + $0xa9] sm:$0xff] %v1967_v24  ;;  %5658 = vpow2.f32 %v1705_v47  ;;  %5372 = vmatpush3.msra.mxu0 %v4795_v45  ;;  %5459 = vmatpush3.msra.mxu1 %v4795_v45 }
 0x2a5   : > { %v1778_v42 = vsub.f32 1.0, %v1746_v23  ;;  %v1523_v29 = vmul.f32 %v6956_v21, %v1491_v15  ;;  %v1398_v32 = vmul.f32 %v6986_v58, %v1366_v1  ;;  %v1703_v4 = vmul.f32 1.442695, %v1653_v30  ;;  %5373 = vmatprep.subr.mxu0 %v4794_v5  ;;  %5444 = vmatprep.subr.mxu1 %v4794_v5  ;;  %v4789_v30 = vld [vmem:[%s9712_s5 + $0x8] sm:$0xff]  ;;  %v7075_v1 = vpop.f32.mrf.mxu0 }
 0x2a6   : > { %v7027_v51 = vpop.eup %5656  ;;  %v1745_v49 = vmul.f32 %v6970_v37, %v1585_v18  ;;  %v1588_v34 = vmul.f32 %v6941_v11, %v1556_v59  ;;  %v7032_v17 = vand.u32 2147483647, %v7020_v60  ;;  %vm1812_vm2 = vcmp.ge.f32.partialorder %v6862_v43, 0.0  ;;  %5374 = vmatpush3.msra.mxu0 %v4794_v5  ;;  %5460 = vmatpush3.msra.mxu1 %v4794_v5  ;;  %v4788_v59 = vld [vmem:[%s9712_s5] sm:$0xff] }
 0x2a7   : > { %v1842_v31 = vsub.f32 0.0, %v1778_v42  ;;  %v1555_v36 = vadd.f32 0.2548296, %v1523_v29  ;;  %v1430_v57 = vadd.f32 1.4214138, %v1398_v32  ;;  %5375 = vmatprep.subr.mxu0 %v4793_v28  ;;  %5445 = vmatprep.subr.mxu1 %v4793_v28  ;;  %5660 = vpow2.f32 %v1703_v4 }
 0x2a8   : > { %v1777_v11 = vsub.f32 1.0, %v1745_v49  ;;  %v1748_v37 = vmul.f32 %v6983_v55, %v1588_v34  ;;  %v1333_v35 = vmul.f32 1.0614054, %v7027_v51  ;;  %v1208_v27 = vmul.f32 0.3275911, %v7032_v17  ;;  %5376 = vmatpush3.msra.mxu0 %v4793_v28  ;;  %5461 = vmatpush3.msra.mxu1 %v4793_v28 }
 0x2a9   : > { %v1874_v46 = vsel %vm1810_vm15, %v1778_v42, %v1842_v31  ;;  %v1587_v25 = vmul.f32 %v6956_v21, %v1555_v36  ;;  %v1462_v8 = vmul.f32 %v6986_v58, %v1430_v57  ;;  %v7051_v3 = vmul.f32 0.70710677, %v7034_v53  ;;  %5377 = vmatprep.subr.mxu0 %v4792_v50  ;;  %5446 = vmatprep.subr.mxu1 %v4792_v50  ;;  %v7091_v31 = vpop.f32.mrf.mxu0 }
 0x2aa   : > { %v1938_v55 = vadd.f32 1.0, %v1874_v46  ;;  %v1841_v26 = vsub.f32 0.0, %v1777_v11  ;;  %v1780_v61 = vsub.f32 1.0, %v1748_v37  ;;  %v1365_v47 = vadd.f32 -1.4531521, %v1333_v35  ;;  %5378 = vmatpush3.msra.mxu0 %v4792_v50  ;;  %5462 = vmatpush3.msra.mxu1 %v4792_v50 }
 0x2ab   : > { %v1747_v16 = vmul.f32 %v6999_v41, %v1587_v25  ;;  %v1494_v21 = vadd.f32 -0.28449672, %v1462_v8  ;;  %v1240_v48 = vadd.f32 1.0, %v1208_v27  ;;  %v4790_v41 = vld [vmem:[%s9712_s5 + $0x10] sm:$0xff]  ;;  %5379 = vmatprep.subr.mxu0 %v4791_v33  ;;  %5447 = vmatprep.subr.mxu1 %v4791_v33  ;;  %v1175_v19 = vand.u32 2147483647, %v7051_v3 }
 0x2ac   : > { %v1970_v6 = vmul.f32 %v1938_v55, %v6908_v40  ;;  %v1873_v0 = vsel %vm1809_vm1, %v1777_v11, %v1841_v26  ;;  %v1844_v7 = vsub.f32 0.0, %v1780_v61  ;;  %v1397_v9 = vmul.f32 %v7027_v51, %v1365_v47  ;;  %5380 = vmatpush3.msra.mxu0 %v4791_v33  ;;  %5463 = vmatpush3.msra.mxu1 %v4791_v33 }
 0x2ad   : > { %v1937_v39 = vadd.f32 1.0, %v1873_v0  ;;  %v1779_v22 = vsub.f32 1.0, %v1747_v16  ;;  %v1526_v12 = vmul.f32 %v6986_v58, %v1494_v21  ;;  %5662 = vrcp.f32 %v1240_v48  ;;  %5381 = vmatprep.subr.mxu0 %v4790_v41  ;;  %5448 = vmatprep.subr.mxu1 %v4790_v41  ;;  %v7109_v48 = vpop.f32.mrf.mxu0 }
 0x2ae   : > { %2057 = vst [vmem:[#allocation2 + $0xc9] sm:$0xff] %v1970_v6  ;;  %v1876_v38 = vsel %vm1812_vm2, %v1780_v61, %v1844_v7  ;;  %v1908_v40 = vmul.f32 0.5, %v6851_v56  ;;  %v1429_v10 = vadd.f32 1.4214138, %v1397_v9  ;;  %vm1811_vm3 = vcmp.ge.f32.partialorder %v6873_v62, 0.0  ;;  %5382 = vmatpush3.msra.mxu0 %v4790_v41  ;;  %5464 = vmatpush3.msra.mxu1 %v4790_v41 }
 0x2af   : > { %v1969_v45 = vmul.f32 %v1937_v39, %v7007_v13  ;;  %v1940_v24 = vadd.f32 1.0, %v1876_v38  ;;  %v1843_v23 = vsub.f32 0.0, %v1779_v22  ;;  %v1558_v15 = vadd.f32 0.2548296, %v1526_v12  ;;  %5383 = vmatprep.subr.mxu0 %v4789_v30  ;;  %5449 = vmatprep.subr.mxu1 %v4789_v30 }
 0x2b0   : > { %v1907_v56 = vmul.f32 0.5, %v6864_v2  ;;  %v1461_v43 = vmul.f32 %v7027_v51, %v1429_v10  ;;  %v1207_v18 = vmul.f32 0.3275911, %v1175_v19  ;;  %v7085_v29 = vmul.f32 0.70710677, %v7057_v20  ;;  %5384 = vmatpush3.msra.mxu0 %v4789_v30  ;;  %5465 = vmatpush3.msra.mxu1 %v4789_v30 }
 0x2b1   : > { %2056 = vst [vmem:[#allocation2 + $0xc1] sm:$0xff] %v1969_v45  ;;  %v1972_v13 = vmul.f32 %v1940_v24, %v1908_v40  ;;  %v1875_v5 = vsel %vm1811_vm3, %v1779_v22, %v1843_v23  ;;  %v1590_v42 = vmul.f32 %v6986_v58, %v1558_v15  ;;  %v5659_v2 = vpop.eup %5658  ;;  %v1910_v32 = vmul.f32 0.5, %v6898_v54  ;;  %5385 = vmatprep.subr.mxu0 %v4788_v59 }
 0x2b2   : > { %v1939_v62 = vadd.f32 1.0, %v1875_v5  ;;  %v1493_v49 = vadd.f32 -0.28449672, %v1461_v43  ;;  %v1239_v34 = vadd.f32 1.0, %v1207_v18  ;;  %vm1814_vm4 = vcmp.ge.f32.partialorder %v6902_v14, 0.0  ;;  %5450 = vmatprep.subr.mxu1 %v4788_v59  ;;  %5386 = vmatpush3.msra.mxu0 %v4788_v59  ;;  %v7116_v14 = vpop.f32.mrf.mxu0 }
 0x2b3   : > { %2059 = vst [vmem:[#allocation2 + $0xe1] sm:$0xff] %v1972_v13  ;;  %v1750_v4 = vmul.f32 %v5659_v2, %v1590_v42  ;;  %v1624_v28 = vsub.f32 0.0, %v7032_v17  ;;  %v1178_v58 = vand.u32 2147483647, %v7085_v29  ;;  %v1623_v54 = vsub.f32 0.0, %v1175_v19  ;;  %5466 = vmatpush3.msra.mxu1 %v4788_v59 }
 0x2b4   : > { %v1971_v36 = vmul.f32 %v1939_v62, %v1907_v56  ;;  %v1525_v57 = vmul.f32 %v7027_v51, %v1493_v49  ;;  %5664 = vrcp.f32 %v1239_v34  ;;  %v7095_v27 = vmul.f32 0.70710677, %v7075_v1  ;;  %v5661_v33 = vpop.eup %5660 }
 0x2b5   : > { %v1782_v11 = vsub.f32 1.0, %v1750_v4  ;;  %v1210_v37 = vmul.f32 0.3275911, %v1178_v58  ;;  %v1626_v35 = vsub.f32 0.0, %v1178_v58  ;;  %v1909_v46 = vmul.f32 0.5, %v6913_v63 }
 0x2b6   : > { %2058 = vst [vmem:[#allocation2 + $0xd9] sm:$0xff] %v1971_v36  ;;  %v1557_v50 = vadd.f32 0.2548296, %v1525_v57  ;;  %v7099_v25 = vmul.f32 0.5, %v7004_v52  ;;  %v7102_v8 = vmul.f32 0.70710677, %v7091_v31  ;;  %v1656_v26 = vmul.f32 %v1624_v28, %v7032_v17 }
 0x2b7   : > { %v1846_v55 = vsub.f32 0.0, %v1782_v11  ;;  %v1242_v61 = vadd.f32 1.0, %v1210_v37  ;;  %v1177_v47 = vand.u32 2147483647, %v7095_v27  ;;  %vm1813_vm5 = vcmp.ge.f32.partialorder %v6923_v44, 0.0  ;;  %v7138_v44 = vpop.f32.mrf.mxu0 }
 0x2b8   : > { %v1589_v16 = vmul.f32 %v7027_v51, %v1557_v50  ;;  %v1655_v21 = vmul.f32 %v1623_v54, %v1175_v19  ;;  %v1180_v63 = vand.u32 2147483647, %v7102_v8  ;;  %v1658_v6 = vmul.f32 %v1626_v35, %v1178_v58 }
 0x2b9   : > { %v1878_v52 = vsel %vm1814_vm4, %v1782_v11, %v1846_v55  ;;  %5666 = vrcp.f32 %v1242_v61  ;;  %v1209_v0 = vmul.f32 0.3275911, %v1177_v47  ;;  %v1625_v41 = vsub.f32 0.0, %v1177_v47 }
 0x2ba   : > { %v7113_v17 = vpop.eup %5662  ;;  %v1942_v7 = vadd.f32 1.0, %v1878_v52  ;;  %v1749_v9 = vmul.f32 %v5661_v33, %v1589_v16  ;;  %v1212_v39 = vmul.f32 0.3275911, %v1180_v63  ;;  %v1709_v22 = vmul.f32 1.442695, %v1656_v26 }
 0x2bb   : > { %v1336_v51 = vmul.f32 1.0614054, %v7113_v17  ;;  %v1241_v12 = vadd.f32 1.0, %v1209_v0  ;;  %v1628_v38 = vsub.f32 0.0, %v1180_v63  ;;  %v1657_v19 = vmul.f32 %v1625_v41, %v1177_v47 }
 0x2bc   : > { %v1974_v40 = vmul.f32 %v1942_v7, %v1910_v32  ;;  %v1781_v10 = vsub.f32 1.0, %v1749_v9  ;;  %v1244_v30 = vadd.f32 1.0, %v1212_v39  ;;  %v1707_v24 = vmul.f32 1.442695, %v1655_v21  ;;  %v7150_v21 = vpop.f32.mrf.mxu0 }
 0x2bd   : > { %v1368_v45 = vadd.f32 -1.4531521, %v1336_v51  ;;  %v7119_v23 = vmul.f32 0.5, %v7034_v53  ;;  %5668 = vrcp.f32 %v1241_v12  ;;  %v1713_v56 = vmul.f32 1.442695, %v1658_v6 }
 0x2be   : > { %2061 = vst [vmem:[#allocation2 + $0xf9] sm:$0xff] %v1974_v40  ;;  %v1845_v15 = vsub.f32 0.0, %v1781_v10  ;;  %5670 = vrcp.f32 %v1244_v30  ;;  %v7122_v43 = vmul.f32 0.70710677, %v7109_v48  ;;  %v1660_v59 = vmul.f32 %v1628_v38, %v1180_v63 }
 0x2bf   : > { %v1400_v18 = vmul.f32 %v7113_v17, %v1368_v45  ;;  %5672 = vpow2.f32 %v1709_v22  ;;  %v7126_v13 = vmul.f32 0.70710677, %v7116_v14  ;;  %v7131_v53 = vmul.f32 0.5, %v7057_v20 }
 0x2c0   : > { %v1877_v5 = vsel %vm1813_vm5, %v1781_v10, %v1845_v15  ;;  %v1711_v42 = vmul.f32 1.442695, %v1657_v19  ;;  %v1179_v2 = vand.u32 2147483647, %v7122_v43  ;;  %5674 = vpow2.f32 %v1707_v24 }
 0x2c1   : > { %v7134_v62 = vpop.eup %5664  ;;  %v1941_v32 = vadd.f32 1.0, %v1877_v5  ;;  %v1432_v49 = vadd.f32 1.4214138, %v1400_v18  ;;  %v1182_v34 = vand.u32 2147483647, %v7126_v13  ;;  %5676 = vpow2.f32 %v1713_v56 }
 0x2c2   : > { %v1335_v4 = vmul.f32 1.0614054, %v7134_v62  ;;  %v1211_v28 = vmul.f32 0.3275911, %v1179_v2  ;;  %v1627_v58 = vsub.f32 0.0, %v1179_v2  ;;  %5678 = vpow2.f32 %v1711_v42 }
 0x2c3   : > { %v1973_v36 = vmul.f32 %v1941_v32, %v1909_v46  ;;  %v1464_v20 = vmul.f32 %v7113_v17, %v1432_v49  ;;  %v1717_v57 = vmul.f32 1.442695, %v1660_v59  ;;  %v1214_v54 = vmul.f32 0.3275911, %v1182_v34 }
 0x2c4   : > { %v1367_v11 = vadd.f32 -1.4531521, %v1335_v4  ;;  %v1243_v37 = vadd.f32 1.0, %v1211_v28  ;;  %v1659_v35 = vmul.f32 %v1627_v58, %v1179_v2  ;;  %v1630_v26 = vsub.f32 0.0, %v1182_v34 }
 0x2c5   : > { %2060 = vst [vmem:[#allocation2 + $0xf1] sm:$0xff] %v1973_v36  ;;  %v1496_v50 = vadd.f32 -0.28449672, %v1464_v20  ;;  %v1246_v55 = vadd.f32 1.0, %v1214_v54  ;;  %v7142_v61 = vmul.f32 0.70710677, %v7138_v44 }
 0x2c6   : > { %v7144_v47 = vpop.eup %5666  ;;  %v1399_v33 = vmul.f32 %v7134_v62, %v1367_v11  ;;  %v7148_v46 = vmul.f32 0.5, %v7075_v1  ;;  %5680 = vrcp.f32 %v1243_v37  ;;  %v1715_v16 = vmul.f32 1.442695, %v1659_v35  ;;  %v7179_v35 = vpop.f32.mrf.mxu0 }
 0x2c7   : > { %v1528_v63 = vmul.f32 %v7113_v17, %v1496_v50  ;;  %v1338_v52 = vmul.f32 1.0614054, %v7144_v47  ;;  %v7155_v6 = vmul.f32 0.5, %v7091_v31  ;;  %5682 = vrcp.f32 %v1246_v55 }
 0x2c8   : > { %v1431_v0 = vadd.f32 1.4214138, %v1399_v33  ;;  %5684 = vpow2.f32 %v1717_v57  ;;  %v7158_v7 = vmul.f32 0.5, %v7109_v48  ;;  %v1181_v1 = vand.u32 2147483647, %v7142_v61 }
 0x2c9   : > { %v1560_v9 = vadd.f32 0.2548296, %v1528_v63  ;;  %v1370_v41 = vadd.f32 -1.4531521, %v1338_v52  ;;  %v1662_v39 = vmul.f32 %v1630_v26, %v1182_v34  ;;  %v7162_v51 = vmul.f32 0.70710677, %v7150_v21 }
 0x2ca   : > { %v7164_v22 = vpop.eup %5668  ;;  %vm1816_vm6 = vcmp.ge.f32.partialorder %v7020_v60, 0.0  ;;  %v1463_v31 = vmul.f32 %v7134_v62, %v1431_v0  ;;  %5686 = vpow2.f32 %v1715_v16  ;;  %v1213_v12 = vmul.f32 0.3275911, %v1181_v1 }
 0x2cb   : > { %v1629_v38 = vsub.f32 0.0, %v1181_v1  ;;  %v7168_v40 = vpop.eup %5670  ;;  %v1592_v48 = vmul.f32 %v7113_v17, %v1560_v9  ;;  %v1402_v10 = vmul.f32 %v7144_v47, %v1370_v41  ;;  %v1337_v19 = vmul.f32 1.0614054, %v7164_v22 }
 0x2cc   : > { %v1184_v30 = vand.u32 2147483647, %v7162_v51  ;;  %v5673_v45 = vpop.eup %5672  ;;  %v1495_v24 = vadd.f32 -0.28449672, %v1463_v31  ;;  %v1340_v15 = vmul.f32 1.0614054, %v7168_v40 }
 0x2cd   : > { %v1245_v56 = vadd.f32 1.0, %v1213_v12  ;;  %v1661_v18 = vmul.f32 %v1629_v38, %v1181_v1  ;;  %v1752_v59 = vmul.f32 %v5673_v45, %v1592_v48  ;;  %v1434_v5 = vadd.f32 1.4214138, %v1402_v10  ;;  %v5675_v32 = vpop.eup %5674 }
 0x2ce   : > { %v1369_v42 = vadd.f32 -1.4531521, %v1337_v19  ;;  %v1216_v2 = vmul.f32 0.3275911, %v1184_v30  ;;  %v1527_v49 = vmul.f32 %v7134_v62, %v1495_v24  ;;  %v1372_v17 = vadd.f32 -1.4531521, %v1340_v15  ;;  %v5677_v4 = vpop.eup %5676 }
 0x2cf   : > { %v1721_v34 = vmul.f32 1.442695, %v1662_v39  ;;  %5688 = vrcp.f32 %v1245_v56  ;;  %v1784_v28 = vsub.f32 1.0, %v1752_v59  ;;  %v1466_v58 = vmul.f32 %v7144_v47, %v1434_v5  ;;  %v5679_v50 = vpop.eup %5678 }
 0x2d0   : > { %v1401_v36 = vmul.f32 %v7164_v22, %v1369_v42  ;;  %v1248_v20 = vadd.f32 1.0, %v1216_v2  ;;  %v1559_v57 = vadd.f32 0.2548296, %v1527_v49  ;;  %v1404_v54 = vmul.f32 %v7168_v40, %v1372_v17 }
 0x2d1   : > { %v1719_v11 = vmul.f32 1.442695, %v1661_v18  ;;  %v1632_v37 = vsub.f32 0.0, %v1184_v30  ;;  %v1848_v55 = vsub.f32 0.0, %v1784_v28  ;;  %vm1815_vm7 = vcmp.ge.f32.partialorder %v7051_v3, 0.0 }
 0x2d2   : > { %v1498_v26 = vadd.f32 -0.28449672, %v1466_v58  ;;  %v1433_v33 = vadd.f32 1.4214138, %v1401_v36  ;;  %5690 = vrcp.f32 %v1248_v20  ;;  %v1591_v16 = vmul.f32 %v7134_v62, %v1559_v57 }
 0x2d3   : > { %v1436_v63 = vadd.f32 1.4214138, %v1404_v54  ;;  %5692 = vpow2.f32 %v1721_v34  ;;  %v1664_v52 = vmul.f32 %v1632_v37, %v1184_v30  ;;  %v7183_v0 = vpop.eup %5680  ;;  %v1880_v1 = vsel %vm1816_vm6, %v1784_v28, %v1848_v55 }
 0x2d4   : > { %v1530_v9 = vmul.f32 %v7144_v47, %v1498_v26  ;;  %v1465_v41 = vmul.f32 %v7164_v22, %v1433_v33  ;;  %v7190_v39 = vmul.f32 0.70710677, %v7179_v35  ;;  %v7192_v31 = vpop.eup %5682  ;;  %v1944_v12 = vadd.f32 1.0, %v1880_v1 }
 0x2d5   : > { %v1751_v38 = vmul.f32 %v5675_v32, %v1591_v16  ;;  %v1468_v62 = vmul.f32 %v7168_v40, %v1436_v63  ;;  %v1339_v48 = vmul.f32 1.0614054, %v7183_v0  ;;  %v5685_v10 = vpop.eup %5684  ;;  %v1342_v60 = vmul.f32 1.0614054, %v7192_v31 }
 0x2d6   : > { %v1562_v19 = vadd.f32 0.2548296, %v1530_v9  ;;  %v1497_v30 = vadd.f32 -0.28449672, %v1465_v41  ;;  %5694 = vpow2.f32 %v1719_v11  ;;  %v1976_v45 = vmul.f32 %v1944_v12, %v7099_v25 }
 0x2d7   : > { %v1783_v24 = vsub.f32 1.0, %v1751_v38  ;;  %vm1818_vm8 = vcmp.ge.f32.partialorder %v7085_v29, 0.0  ;;  %v1500_v15 = vadd.f32 -0.28449672, %v1468_v62  ;;  %v1371_v56 = vadd.f32 -1.4531521, %v1339_v48  ;;  %v7199_v18 = vpop.eup %5686 }
 0x2d8   : > { %v1594_v59 = vmul.f32 %v7144_v47, %v1562_v19  ;;  %v1529_v5 = vmul.f32 %v7164_v22, %v1497_v30  ;;  %v1374_v42 = vadd.f32 -1.4531521, %v1342_v60  ;;  %v1725_v2 = vmul.f32 1.442695, %v1664_v52  ;;  %2063 = vst [vmem:[#allocation2 + $0x111] sm:$0xff] %v1976_v45 }
 0x2d9   : > { %v1847_v32 = vsub.f32 0.0, %v1783_v24  ;;  %v1532_v49 = vmul.f32 %v7168_v40, %v1500_v15  ;;  %v1403_v17 = vmul.f32 %v7183_v0, %v1371_v56  ;;  %v1183_v25 = vand.u32 2147483647, %v7190_v39 }
 0x2da   : > { %v1754_v34 = vmul.f32 %v5677_v4, %v1594_v59  ;;  %v1561_v28 = vadd.f32 0.2548296, %v1529_v5  ;;  %v1406_v58 = vmul.f32 %v7192_v31, %v1374_v42  ;;  %5696 = vpow2.f32 %v1725_v2 }
 0x2db   : > { %v1879_v47 = vsel %vm1815_vm7, %v1783_v24, %v1847_v32  ;;  %vm1817_vm9 = vcmp.ge.f32.partialorder %v7095_v27, 0.0  ;;  %v1564_v36 = vadd.f32 0.2548296, %v1532_v49  ;;  %v1435_v20 = vadd.f32 1.4214138, %v1403_v17  ;;  %v7228_v32 = vpop.f32.mrf.mxu0 }
 0x2dc   : > { %v1215_v57 = vmul.f32 0.3275911, %v1183_v25  ;;  %v7210_v54 = vpop.eup %5688  ;;  %v1943_v11 = vadd.f32 1.0, %v1879_v47  ;;  %v1786_v37 = vsub.f32 1.0, %v1754_v34  ;;  %v1593_v55 = vmul.f32 %v7164_v22, %v1561_v28 }
 0x2dd   : > { %vm1820_vm10 = vcmp.ge.f32.partialorder %v7102_v8, 0.0  ;;  %v1438_v4 = vadd.f32 1.4214138, %v1406_v58  ;;  %v1596_v26 = vmul.f32 %v7168_v40, %v1564_v36  ;;  %v1467_v33 = vmul.f32 %v7183_v0, %v1435_v20  ;;  %v7242_v8 = vpop.f32.mrf.mxu0 }
 0x2de   : > { %v1341_v3 = vmul.f32 1.0614054, %v7210_v54  ;;  %v1247_v16 = vadd.f32 1.0, %v1215_v57  ;;  %v1975_v63 = vmul.f32 %v1943_v11, %v7119_v23  ;;  %v1850_v52 = vsub.f32 0.0, %v1786_v37 }
 0x2df   : > { %v1753_v1 = vmul.f32 %v5679_v50, %v1593_v55  ;;  %v1470_v9 = vmul.f32 %v7192_v31, %v1438_v4  ;;  %v7219_v41 = vpop.eup %5690  ;;  %v1756_v12 = vmul.f32 %v5685_v10, %v1596_v26  ;;  %v1499_v22 = vadd.f32 -0.28449672, %v1467_v33 }
 0x2e0   : > { %v1373_v38 = vadd.f32 -1.4531521, %v1341_v3  ;;  %5698 = vrcp.f32 %v1247_v16  ;;  %v5693_v62 = vpop.eup %5692  ;;  %2062 = vst [vmem:[#allocation2 + $0x109] sm:$0xff] %v1975_v63  ;;  %v1882_v40 = vsel %vm1818_vm8, %v1786_v37, %v1850_v52  ;;  %v1344_v30 = vmul.f32 1.0614054, %v7219_v41 }
 0x2e1   : > { %v1785_v48 = vsub.f32 1.0, %v1753_v1  ;;  %v1502_v19 = vadd.f32 -0.28449672, %v1470_v9  ;;  %v1946_v23 = vadd.f32 1.0, %v1882_v40  ;;  %v1788_v60 = vsub.f32 1.0, %v1756_v12 }
 0x2e2   : > { %v1531_v50 = vmul.f32 %v7183_v0, %v1499_v22  ;;  %v1405_v45 = vmul.f32 %v7210_v54, %v1373_v38  ;;  %v1376_v15 = vadd.f32 -1.4531521, %v1344_v30  ;;  %v1631_v56 = vsub.f32 0.0, %v1183_v25 }
 0x2e3   : > { %v1849_v24 = vsub.f32 0.0, %v1785_v48  ;;  %v1534_v10 = vmul.f32 %v7192_v31, %v1502_v19  ;;  %v5695_v59 = vpop.eup %5694  ;;  %v1978_v5 = vmul.f32 %v1946_v23, %v7131_v53  ;;  %v1852_v29 = vsub.f32 0.0, %v1788_v60 }
 0x2e4   : > { %v1563_v42 = vadd.f32 0.2548296, %v1531_v50  ;;  %v1437_v2 = vadd.f32 1.4214138, %v1405_v45  ;;  %v1408_v34 = vmul.f32 %v7219_v41, %v1376_v15  ;;  %v1663_v28 = vmul.f32 %v1631_v56, %v1183_v25 }
 0x2e5   : > { %v1881_v49 = vsel %vm1817_vm9, %v1785_v48, %v1849_v24  ;;  %v1566_v17 = vadd.f32 0.2548296, %v1534_v10  ;;  %2065 = vst [vmem:[#allocation2 + $0x129] sm:$0xff] %v1978_v5  ;;  %v1884_v47 = vsel %vm1820_vm10, %v1788_v60, %v1852_v29  ;;  %vm1819_vm11 = vcmp.ge.f32.partialorder %v7122_v43, 0.0 }
 0x2e6   : > { %v1945_v58 = vadd.f32 1.0, %v1881_v49  ;;  %v1595_v36 = vmul.f32 %v7183_v0, %v1563_v42  ;;  %v1469_v53 = vmul.f32 %v7210_v54, %v1437_v2  ;;  %v1948_v20 = vadd.f32 1.0, %v1884_v47  ;;  %v5838_v47 = vld [vmem:[#allocation2] sm:$0xff] }
 0x2e7   : > { %v1598_v57 = vmul.f32 %v7192_v31, %v1566_v17  ;;  %v1440_v27 = vadd.f32 1.4214138, %v1408_v34  ;;  %v5697_v11 = vpop.eup %5696  ;;  %vm1822_vm12 = vcmp.ge.f32.partialorder %v7126_v13, 0.0  ;;  %v1723_v33 = vmul.f32 1.442695, %v1663_v28 }
 0x2e8   : > { %v1977_v37 = vmul.f32 %v1945_v58, %v7148_v46  ;;  %v1755_v25 = vmul.f32 %v7199_v18, %v1595_v36  ;;  %v1501_v55 = vadd.f32 -0.28449672, %v1469_v53  ;;  %v1980_v0 = vmul.f32 %v1948_v20, %v7155_v6  ;;  %v7289_v17 = vld [vmem:[%s9711_s4 + $0x2] ss:$0 sm:$0xff] }
 0x2e9   : > { %v1758_v4 = vmul.f32 %v5693_v62, %v1598_v57  ;;  %v1472_v26 = vmul.f32 %v7219_v41, %v1440_v27  ;;  %v1918_v31 = vmul.f32 0.5, %v7116_v14  ;;  %v7249_v46 = vmul.f32 0.70710677, %v7228_v32 }
 0x2ea   : > { %2064 = vst [vmem:[#allocation2 + $0x121] sm:$0xff] %v1977_v37  ;;  %v1787_v3 = vsub.f32 1.0, %v1755_v25  ;;  %v1533_v16 = vmul.f32 %v7210_v54, %v1501_v55  ;;  %2067 = vst [vmem:[#allocation2 + $0x141] sm:$0xff] %v1980_v0  ;;  %v7252_v63 = vmul.f32 0.5, %v7138_v44  ;;  %v7255_v6 = vmul.f32 0.70710677, %v7242_v8 }
 0x2eb   : > { %v1790_v18 = vsub.f32 1.0, %v1758_v4  ;;  %v1504_v52 = vadd.f32 -0.28449672, %v1472_v26  ;;  %v7258_v12 = vmul.f32 0.5, %v7150_v21  ;;  %v1186_v14 = vand.u32 2147483647, %v7249_v46 }
 0x2ec   : > { %v1851_v1 = vsub.f32 0.0, %v1787_v3  ;;  %v1565_v9 = vadd.f32 0.2548296, %v1533_v16  ;;  %vm1821_vm13 = vcmp.ge.f32.partialorder %v7142_v61, 0.0  ;;  %5700 = vpow2.f32 %v1723_v33  ;;  %v7307_v26 = vld [vmem:[#allocation2 + $0x18] sm:$0xff] }
 0x2ed   : > { %v7261_v22 = vpop.eup %5698  ;;  %v1854_v38 = vsub.f32 0.0, %v1790_v18  ;;  %v1536_v62 = vmul.f32 %v7219_v41, %v1504_v52  ;;  %v1185_v44 = vand.u32 2147483647, %v7255_v6  ;;  %v1218_v19 = vmul.f32 0.3275911, %v1186_v14 }
 0x2ee   : > { %v1883_v40 = vsel %vm1819_vm11, %v1787_v3, %v1851_v1  ;;  %v1597_v48 = vmul.f32 %v7210_v54, %v1565_v9  ;;  %v1343_v21 = vmul.f32 1.0614054, %v7261_v22  ;;  %v1634_v50 = vsub.f32 0.0, %v1186_v14  ;;  %v7277_v54 = vld [vmem:[%s9711_s4 + $0x1] ss:$0 sm:$0xff] }
 0x2ef   : > { %v1947_v30 = vadd.f32 1.0, %v1883_v40  ;;  %v1886_v23 = vsel %vm1822_vm12, %v1790_v18, %v1854_v38  ;;  %v1568_v60 = vadd.f32 0.2548296, %v1536_v62  ;;  %v1250_v15 = vadd.f32 1.0, %v1218_v19  ;;  %v7312_v61 = vld [vmem:[%s9711_s4 + $0x3] ss:$0 sm:$0xff] }
 0x2f0   : > { %v1950_v45 = vadd.f32 1.0, %v1886_v23  ;;  %v1757_v24 = vmul.f32 %v5695_v59, %v1597_v48  ;;  %v1375_v10 = vadd.f32 -1.4531521, %v1343_v21  ;;  %v1666_v5 = vmul.f32 %v1634_v50, %v1186_v14  ;;  %v7283_v59 = vld [vmem:[%s9711_s4] ss:$0 sm:$0xff]  ;;  %v7348_v21 = vld [vmem:[#allocation2 + $0x30] sm:$0xff] }
 0x2f1   : > { %v1979_v56 = vmul.f32 %v1947_v30, %v7158_v7  ;;  %v1600_v43 = vmul.f32 %v7219_v41, %v1568_v60  ;;  %v1217_v29 = vmul.f32 0.3275911, %v1185_v44  ;;  %5702 = vrcp.f32 %v1250_v15  ;;  %v7351_v23 = vld [vmem:[#allocation2 + $0x38] sm:$0xff] }
 0x2f2   : > { %v1982_v42 = vmul.f32 %v1950_v45, %v1918_v31  ;;  %v1789_v13 = vsub.f32 1.0, %v1757_v24  ;;  %v1407_v2 = vmul.f32 %v7261_v22, %v1375_v10  ;;  %vm1824_vm14 = vcmp.ge.f32.partialorder %v7162_v51, 0.0  ;;  %v7314_v31 = vld [vmem:[#allocation2 + $0x20] sm:$0xff] }
 0x2f3   : > { %2066 = vst [vmem:[#allocation2 + $0x139] sm:$0xff] %v1979_v56  ;;  %v1760_v7 = vmul.f32 %v5697_v11, %v1600_v43  ;;  %v1249_v41 = vadd.f32 1.0, %v1217_v29  ;;  %v1633_v49 = vsub.f32 0.0, %v1185_v44  ;;  %v1729_v58 = vmul.f32 1.442695, %v1666_v5 }
 0x2f4   : > { %2069 = vst [vmem:[#allocation2 + $0x159] sm:$0xff] %v1982_v42  ;;  %v1853_v34 = vsub.f32 0.0, %v1789_v13  ;;  %v1439_v28 = vadd.f32 1.4214138, %v1407_v2  ;;  %v7292_v36 = vmul.f32 %v5838_v47, %v7277_v54  ;;  %v7295_v57 = vmul.f32 %v5838_v47, %v7283_v59  ;;  %v7334_v51 = vld [vmem:[%s9711_s4 + $0x5] ss:$0 sm:$0xff] }
 0x2f5   : > { %v1792_v53 = vsub.f32 1.0, %v1760_v7  ;;  %v1665_v20 = vmul.f32 %v1633_v49, %v1185_v44  ;;  %vm2297_vm15 = vcmask 1046528   ;;  %5704 = vrcp.f32 %v1249_v41  ;;  %v7360_v10 = vld [vmem:[%s9711_s4 + $0x7] ss:$0 sm:$0xff]  ;;  %v7371_v5 = vld [vmem:[%s9711_s4 + $0x8] ss:$0 sm:$0xff] }
 0x2f6   : > { %v1885_v27 = vsel %vm1821_vm13, %v1789_v13, %v1853_v34  ;;  %v1471_v11 = vmul.f32 %v7261_v22, %v1439_v28  ;;  %v2298_v37 = vrot.slane %v7292_v36, 1  ;;  %v7302_v0 = vmul.f32 0.5, %v7179_v35  ;;  %v7381_v13 = vld [vmem:[%s9711_s4 + $0x6] ss:$0 sm:$0xff]  ;;  %v2076_v41 = vld [vmem:[#allocation2 + $0x10] sm:$0x3] }
 0x2f7   : > { %v1949_v25 = vadd.f32 1.0, %v1885_v27  ;;  %v1856_v55 = vsub.f32 0.0, %v1792_v53  ;;  %v7305_v4 = vmul.f32 %v5838_v47, %v7289_v17  ;;  %5706 = vpow2.f32 %v1729_v58  ;;  %v2693_v47 = vld [vmem:[#allocation2 + $0x28] sm:$0x3] }
 0x2f8   : > { %v1503_v33 = vadd.f32 -0.28449672, %v1471_v11  ;;  %v1727_v3 = vmul.f32 1.442695, %v1665_v20  ;;  %v2410_v18 = vadd.f32 %v2298_v37, %v7295_v57  ;;  %vm2546_vm1 = vcmask 1045504  }
 0x2f9   : > { %v1981_v16 = vmul.f32 %v1949_v25, %v7252_v63  ;;  %v1888_v35 = vsel %vm1824_vm14, %v1792_v53, %v1856_v55  ;;  %v5701_v52 = vpop.eup %5700  ;;  %v2547_v14 = vrot.slane %v7305_v4, 2  ;;  %v2747_v38 = vmul.f32 %v7312_v61, %v7307_v26  ;;  %v7329_v63 = vld [vmem:[%s9711_s4 + $0x4] ss:$0 sm:$0xff] }
 0x2fa   : > { %v1952_v1 = vadd.f32 1.0, %v1888_v35  ;;  %v1535_v9 = vmul.f32 %v7261_v22, %v1503_v33  ;;  %v2819_v62 = vmul.f32 %v7329_v63, %v7307_v26  ;;  %v7340_v44 = vmul.f32 %v7329_v63, %v7314_v31 }
 0x2fb   : > { %2068 = vst [vmem:[#allocation2 + $0x151] sm:$0xff] %v1981_v16  ;;  %v3067_v40 = vmul.f32 %v7334_v51, %v7307_v26  ;;  %v7346_v48 = vmul.f32 %v7334_v51, %v7314_v31  ;;  %5708 = vpow2.f32 %v1727_v3  ;;  %vm1823_vm2 = vcmp.ge.f32.partialorder %v7190_v39, 0.0 }
 0x2fc   : > { %v1984_v19 = vmul.f32 %v1952_v1, %v7258_v12  ;;  %v1567_v30 = vadd.f32 0.2548296, %v1535_v9  ;;  %v2659_v60 = vadd.f32 %v2547_v14, %v2410_v18  ;;  %v2915_v50 = vrot.slane %v2819_v62, 1 }
 0x2fd   : > { %v2916_v45 = vrot.slane %v7340_v44, 1  ;;  %v3163_v24 = vrot.slane %v3067_v40, 2  ;;  %v2748_v15 = vmul.f32 %v7312_v61, %v7314_v31  ;;  %v3164_v56 = vrot.slane %v7346_v48, 2 }
 0x2fe   : > { %2071 = vst [vmem:[#allocation2 + $0x171] sm:$0xff] %v1984_v19  ;;  %v1599_v12 = vmul.f32 %v7261_v22, %v1567_v30  ;;  %v3436_v43 = vmul.f32 %v7360_v10, %v7348_v21  ;;  %v7373_v29 = vpop.eup %5702  ;;  %v2779_v42 = vadd.f32 %v2747_v38, %v2659_v60  ;;  %v7385_v2 = vmul.f32 %v7360_v10, %v7351_v23 }
 0x2ff   : > { %v2917_v22 = vsel %vm2297_vm15, %v2915_v50, %v2916_v45  ;;  %v3684_v7 = vmul.f32 %v7371_v5, %v7348_v21  ;;  %v1346_v34 = vmul.f32 1.0614054, %v7373_v29  ;;  %v3165_v28 = vsel %vm2546_vm1, %v3163_v24, %v3164_v56 }
 0x300   : > { %v1759_v49 = vmul.f32 %v5701_v52, %v1599_v12  ;;  %v3532_v58 = vrot.slane %v3436_v43, 1  ;;  %v3027_v53 = vadd.f32 %v2917_v22, %v2779_v42  ;;  %v3533_v20 = vrot.slane %v7385_v2, 1  ;;  %v3310_v2 = vld [vmem:[#allocation2 + $0x40] sm:$0x3] }
 0x301   : > { %v7396_v27 = vmul.f32 %v7371_v5, %v7351_v23  ;;  %v3780_v11 = vrot.slane %v3684_v7, 2  ;;  %v1378_v55 = vadd.f32 -1.4531521, %v1346_v34  ;;  %v2203_v33 = vmul.f32 %v7277_v54, %v2076_v41 }
 0x302   : > { %v1791_v25 = vsub.f32 1.0, %v1759_v49  ;;  %v2452_v3 = vmul.f32 %v7289_v17, %v2076_v41  ;;  %v7400_v16 = vpop.eup %5704  ;;  %v3275_v35 = vadd.f32 %v3165_v28, %v3027_v53  ;;  %v3364_v18 = vmul.f32 %v7381_v13, %v7348_v21 }
 0x303   : > { %v3781_v52 = vrot.slane %v7396_v27, 2  ;;  %v2821_v1 = vmul.f32 %v7329_v63, %v2693_v47  ;;  %v1410_v38 = vmul.f32 %v7373_v29, %v1378_v55  ;;  %v1345_v62 = vmul.f32 1.0614054, %v7400_v16 }
 0x304   : > { %v1855_v9 = vsub.f32 0.0, %v1791_v25  ;;  %v2301_v40 = vrot.slane %v2203_v33, 1  ;;  %v5707_v19 = vpop.eup %5706  ;;  %v3396_v30 = vadd.f32 %v3364_v18, %v3275_v35  ;;  %v3534_v60 = vsel %vm2297_vm15, %v3532_v58, %v3533_v20 }
 0x305   : > { %v3782_v50 = vsel %vm2546_vm1, %v3780_v11, %v3781_v52  ;;  %v2550_v24 = vrot.slane %v2452_v3, 2  ;;  %v1442_v43 = vadd.f32 1.4214138, %v1410_v38  ;;  %v1377_v42 = vadd.f32 -1.4531521, %v1345_v62 }
 0x306   : > { %v1887_v12 = vsel %vm1823_vm2, %v1791_v25, %v1855_v9  ;;  %v2302_v22 = vsel %vm2297_vm15, %v2298_v37, %v2301_v40  ;;  %v3644_v41 = vadd.f32 %v3534_v60, %v3396_v30  ;;  %v2918_v58 = vrot.slane %v2821_v1, 1 }
 0x307   : > { %v1951_v7 = vadd.f32 1.0, %v1887_v12  ;;  %v2411_v49 = vadd.f32 %v2302_v22, %v7295_v57  ;;  %v2551_v34 = vsel %vm2546_vm1, %v2547_v14, %v2550_v24  ;;  %v1474_v28 = vmul.f32 %v7373_v29, %v1442_v43 }
 0x308   : > { %v1409_v39 = vmul.f32 %v7400_v16, %v1377_v42  ;;  %v3069_v53 = vmul.f32 %v7334_v51, %v2693_v47  ;;  %v5709_v27 = vpop.eup %5708  ;;  %v7423_v37 = vadd.f32 %v3782_v50, %v3644_v41  ;;  %v3438_v25 = vmul.f32 %v7360_v10, %v3310_v2 }
 0x309   : > { %v1983_v36 = vmul.f32 %v1951_v7, %v7302_v0  ;;  %v2660_v11 = vadd.f32 %v2551_v34, %v2411_v49  ;;  %v1506_v57 = vadd.f32 -0.28449672, %v1474_v28  ;;  %v2919_v4 = vsel %vm2297_vm15, %v2916_v45, %v2918_v58 }
 0x30a   : > { %v1441_v55 = vadd.f32 1.4214138, %v1409_v39  ;;  %v3686_v14 = vmul.f32 %v7371_v5, %v3310_v2  ;;  %v7431_v33 = vmul.f32 0.70710677, %v7423_v37  ;;  %v1922_v3 = vmul.f32 0.5, %v7228_v32 }
 0x30b   : > { %2070 = vst [vmem:[#allocation2 + $0x169] sm:$0xff] %v1983_v36  ;;  %v2780_v47 = vadd.f32 %v2748_v15, %v2660_v11  ;;  %v1538_v0 = vmul.f32 %v7373_v29, %v1506_v57  ;;  %v3166_v18 = vrot.slane %v3069_v53, 2  ;;  %v3365_v1 = vmul.f32 %v7381_v13, %v7351_v23 }
 0x30c   : > { %v1473_v35 = vmul.f32 %v7400_v16, %v1441_v55  ;;  %v3956_v44 = vand.u32 2147483647, %v7431_v33  ;;  %v3535_v9 = vrot.slane %v3438_v25, 1  ;;  %v3783_v40 = vrot.slane %v3686_v14, 2 }
 0x30d   : > { %v3028_v45 = vadd.f32 %v2919_v4, %v2780_v47  ;;  %v1570_v38 = vadd.f32 0.2548296, %v1538_v0  ;;  %v3167_v15 = vsel %vm2546_vm1, %v3164_v56, %v3166_v18  ;;  %vm1826_vm3 = vcmp.ge.f32.partialorder %v7249_v46, 0.0 }
 0x30e   : > { %v1505_v62 = vadd.f32 -0.28449672, %v1473_v35  ;;  %v3988_v32 = vmul.f32 0.3275911, %v3956_v44  ;;  %v3536_v60 = vsel %vm2297_vm15, %v3533_v20, %v3535_v9  ;;  %v2204_v50 = vmul.f32 %v7277_v54, %v7307_v26 }
 0x30f   : > { %v3276_v30 = vadd.f32 %v3167_v15, %v3028_v45  ;;  %v1602_v24 = vmul.f32 %v7373_v29, %v1570_v38  ;;  %v7450_v43 = vmul.f32 %v7277_v54, %v7314_v31  ;;  %v2453_v48 = vmul.f32 %v7289_v17, %v7307_v26 }
 0x310   : > { %v1537_v12 = vmul.f32 %v7400_v16, %v1505_v62  ;;  %v4020_v56 = vadd.f32 1.0, %v3988_v32  ;;  %v3784_v22 = vsel %vm2546_vm1, %v3781_v52, %v3783_v40  ;;  %v2303_v2 = vrot.slane %v2204_v50, 1  ;;  %v7490_v62 = vld [vmem:[#allocation2 + $0x48] sm:$0xff] }
 0x311   : > { %v3397_v42 = vadd.f32 %v3365_v1, %v3276_v30  ;;  %v1762_v20 = vmul.f32 %v5707_v19, %v1602_v24  ;;  %v2304_v41 = vrot.slane %v7450_v43, 1  ;;  %v7458_v29 = vmul.f32 %v7289_v17, %v7314_v31 }
 0x312   : > { %v1569_v7 = vadd.f32 0.2548296, %v1537_v12  ;;  %5710 = vrcp.f32 %v4020_v56  ;;  %v2131_v34 = vmul.f32 %v7283_v59, %v7307_v26  ;;  %v2552_v28 = vrot.slane %v2453_v48, 2  ;;  %v7497_v12 = vld [vmem:[#allocation2 + $0x50] sm:$0xff] }
 0x313   : > { %v3645_v49 = vadd.f32 %v3536_v60, %v3397_v42  ;;  %v1794_v39 = vsub.f32 1.0, %v1762_v20  ;;  %v2305_v52 = vsel %vm2297_vm15, %v2303_v2, %v2304_v41  ;;  %v2553_v19 = vrot.slane %v7458_v29, 2 }
 0x314   : > { %v1601_v58 = vmul.f32 %v7400_v16, %v1569_v7  ;;  %vm1825_vm4 = vcmp.ge.f32.partialorder %v7255_v6, 0.0  ;;  %v4404_v53 = vsub.f32 0.0, %v3956_v44  ;;  %v2412_v11 = vadd.f32 %v2305_v52, %v2131_v34  ;;  %v2079_v34 = vld [vmem:[#allocation2 + $0x28] sm:$0x3] }
 0x315   : > { %v7468_v36 = vadd.f32 %v3784_v22, %v3645_v49  ;;  %v1858_v25 = vsub.f32 0.0, %v1794_v39  ;;  %v2554_v26 = vsel %vm2546_vm1, %v2552_v28, %v2553_v19  ;;  %v2822_v16 = vmul.f32 %v7329_v63, %v7348_v21 }
 0x316   : > { %v1761_v57 = vmul.f32 %v5709_v27, %v1601_v58  ;;  %v2661_v4 = vadd.f32 %v2554_v26, %v2412_v11  ;;  %v2749_v14 = vmul.f32 %v7312_v61, %v7348_v21  ;;  %v7482_v47 = vmul.f32 %v7329_v63, %v7351_v23  ;;  %v2696_v26 = vld [vmem:[#allocation2 + $0x40] sm:$0x3] }
 0x317   : > { %v7476_v55 = vmul.f32 0.70710677, %v7468_v36  ;;  %v1890_v27 = vsel %vm1826_vm3, %v1794_v39, %v1858_v25  ;;  %v2920_v35 = vrot.slane %v2822_v16, 1  ;;  %v3070_v18 = vmul.f32 %v7334_v51, %v7348_v21 }
 0x318   : > { %v1793_v0 = vsub.f32 1.0, %v1761_v57  ;;  %v1954_v1 = vadd.f32 1.0, %v1890_v27  ;;  %v1921_v45 = vmul.f32 0.5, %v7242_v8  ;;  %v2781_v38 = vadd.f32 %v2749_v14, %v2661_v4 }
 0x319   : > { %v3957_v9 = vand.u32 2147483647, %v7476_v55  ;;  %v2921_v40 = vrot.slane %v7482_v47, 1  ;;  %v7495_v46 = vmul.f32 %v7334_v51, %v7351_v23  ;;  %v3168_v32 = vrot.slane %v3070_v18, 2 }
 0x31a   : > { %v1857_v15 = vsub.f32 0.0, %v1793_v0  ;;  %v1986_v30 = vmul.f32 %v1954_v1, %v1922_v3  ;;  %v4436_v60 = vmul.f32 %v4404_v53, %v3956_v44  ;;  %v3439_v42 = vmul.f32 %v7360_v10, %v7490_v62 }
 0x31b   : > { %v3989_v50 = vmul.f32 0.3275911, %v3957_v9  ;;  %v4405_v24 = vsub.f32 0.0, %v3957_v9  ;;  %v2922_v48 = vsel %vm2297_vm15, %v2920_v35, %v2921_v40  ;;  %v3169_v56 = vrot.slane %v7495_v46, 2  ;;  %v3313_v46 = vld [vmem:[#allocation2 + $0x58] sm:$0x3] }
 0x31c   : > { %v1889_v8 = vsel %vm1825_vm4, %v1793_v0, %v1857_v15  ;;  %2073 = vst [vmem:[#allocation2 + $0x189] sm:$0xff] %v1986_v30  ;;  %v3029_v2 = vadd.f32 %v2922_v48, %v2781_v38  ;;  %v3440_v6 = vmul.f32 %v7360_v10, %v7497_v12  ;;  %v3537_v7 = vrot.slane %v3439_v42, 1 }
 0x31d   : > { %v1953_v22 = vadd.f32 1.0, %v1889_v8  ;;  %v4021_v3 = vadd.f32 1.0, %v3989_v50  ;;  %v4437_v44 = vmul.f32 %v4405_v24, %v3957_v9  ;;  %v3170_v20 = vsel %vm2546_vm1, %v3168_v32, %v3169_v56 }
 0x31e   : > { %v3687_v49 = vmul.f32 %v7371_v5, %v7490_v62  ;;  %v3277_v39 = vadd.f32 %v3170_v20, %v3029_v2  ;;  %v3366_v58 = vmul.f32 %v7381_v13, %v7490_v62  ;;  %v4468_v53 = vmul.f32 1.442695, %v4436_v60 }
 0x31f   : > { %v1985_v28 = vmul.f32 %v1953_v22, %v1921_v45  ;;  %5712 = vrcp.f32 %v4021_v3  ;;  %v7514_v52 = vpop.eup %5710  ;;  %v3538_v11 = vrot.slane %v3440_v6, 1  ;;  %v7518_v25 = vmul.f32 %v7371_v5, %v7497_v12 }
 0x320   : > { %v3785_v57 = vrot.slane %v3687_v49, 2  ;;  %v4116_v16 = vmul.f32 1.0614054, %v7514_v52  ;;  %v7522_v4 = vmul.f32 0.5, %v7423_v37  ;;  %v3398_v14 = vadd.f32 %v3366_v58, %v3277_v39 }
 0x321   : > { %2072 = vst [vmem:[#allocation2 + $0x181] sm:$0xff] %v1985_v28  ;;  %v2206_v27 = vmul.f32 %v7277_v54, %v2079_v34  ;;  %v4470_v0 = vmul.f32 1.442695, %v4437_v44  ;;  %v3539_v35 = vsel %vm2297_vm15, %v3537_v7, %v3538_v11  ;;  %v3786_v18 = vrot.slane %v7518_v25, 2 }
 0x322   : > { %v2455_v1 = vmul.f32 %v7289_v17, %v2079_v34  ;;  %v4148_v45 = vadd.f32 -1.4531521, %v4116_v16  ;;  %v3646_v9 = vadd.f32 %v3539_v35, %v3398_v14  ;;  %v2824_v15 = vmul.f32 %v7329_v63, %v2696_v26 }
 0x323   : > { %v2306_v38 = vrot.slane %v2206_v27, 1  ;;  %5714 = vpow2.f32 %v4468_v53  ;;  %v3787_v37 = vsel %vm2546_vm1, %v3785_v57, %v3786_v18  ;;  %v2132_v32 = vmul.f32 %v7283_v59, %v7314_v31 }
 0x324   : > { %v3072_v30 = vmul.f32 %v7334_v51, %v2696_v26  ;;  %v4180_v60 = vmul.f32 %v7514_v52, %v4148_v45  ;;  %v7534_v50 = vadd.f32 %v3787_v37, %v3646_v9  ;;  %v2555_v8 = vrot.slane %v2455_v1, 2 }
 0x325   : > { %v2307_v24 = vsel %vm2297_vm15, %v2304_v41, %v2306_v38  ;;  %5716 = vpow2.f32 %v4470_v0  ;;  %v2923_v42 = vrot.slane %v2824_v15, 1  ;;  %v3441_v22 = vmul.f32 %v7360_v10, %v3313_v46 }
 0x326   : > { %v2413_v48 = vadd.f32 %v2307_v24, %v2132_v32  ;;  %v4212_v3 = vadd.f32 1.4214138, %v4180_v60  ;;  %v7541_v44 = vmul.f32 0.70710677, %v7534_v50  ;;  %v2556_v31 = vsel %vm2546_vm1, %v2553_v19, %v2555_v8 }
 0x327   : > { %v2750_v2 = vmul.f32 %v7312_v61, %v7351_v23  ;;  %v2924_v41 = vsel %vm2297_vm15, %v2921_v40, %v2923_v42  ;;  %v3171_v20 = vrot.slane %v3072_v30, 2  ;;  %v3367_v6 = vmul.f32 %v7381_v13, %v7497_v12 }
 0x328   : > { %v2662_v43 = vadd.f32 %v2556_v31, %v2413_v48  ;;  %v4244_v7 = vmul.f32 %v7514_v52, %v4212_v3  ;;  %v3958_v49 = vand.u32 2147483647, %v7541_v44  ;;  %v3540_v34 = vrot.slane %v3441_v22, 1 }
 0x329   : > { %v3689_v29 = vmul.f32 %v7371_v5, %v3313_v46  ;;  %v3172_v28 = vsel %vm2546_vm1, %v3169_v56, %v3171_v20  ;;  %v2133_v39 = vmul.f32 %v7283_v59, %v7348_v21  ;;  %v2207_v47 = vmul.f32 %v7277_v54, %v7348_v21 }
 0x32a   : > { %v2782_v19 = vadd.f32 %v2750_v2, %v2662_v43  ;;  %v4276_v40 = vadd.f32 -0.28449672, %v4244_v7  ;;  %v3990_v58 = vmul.f32 0.3275911, %v3958_v49  ;;  %v3541_v53 = vsel %vm2297_vm15, %v3538_v11, %v3540_v34 }
 0x32b   : > { %v7564_v25 = vmul.f32 %v7277_v54, %v7351_v23  ;;  %v4406_v26 = vsub.f32 0.0, %v3958_v49  ;;  %v2308_v14 = vrot.slane %v2207_v47, 1  ;;  %v2456_v56 = vmul.f32 %v7289_v17, %v7348_v21 }
 0x32c   : > { %v7566_v57 = vpop.eup %5712  ;;  %v3030_v16 = vadd.f32 %v2924_v41, %v2782_v19  ;;  %v4308_v27 = vmul.f32 %v7514_v52, %v4276_v40  ;;  %v4022_v35 = vadd.f32 1.0, %v3990_v58  ;;  %v3788_v1 = vrot.slane %v3689_v29, 2  ;;  %v7605_v40 = vld [vmem:[#allocation2 + $0x60] sm:$0xff] }
 0x32d   : > { %v4117_v0 = vmul.f32 1.0614054, %v7566_v57  ;;  %v2309_v11 = vrot.slane %v7564_v25, 1  ;;  %v7575_v9 = vmul.f32 %v7289_v17, %v7351_v23  ;;  %v2557_v38 = vrot.slane %v2456_v56, 2 }
 0x32e   : > { %v3278_v45 = vadd.f32 %v3172_v28, %v3030_v16  ;;  %v4340_v15 = vadd.f32 0.2548296, %v4308_v27  ;;  %5718 = vrcp.f32 %v4022_v35  ;;  %v3789_v37 = vsel %vm2546_vm1, %v3786_v18, %v3788_v1  ;;  %v7615_v16 = vld [vmem:[#allocation2 + $0x68] sm:$0xff] }
 0x32f   : > { %v4149_v46 = vadd.f32 -1.4531521, %v4117_v0  ;;  %v4438_v21 = vmul.f32 %v4406_v26, %v3958_v49  ;;  %v2310_v30 = vsel %vm2297_vm15, %v2308_v14, %v2309_v11  ;;  %v2558_v60 = vrot.slane %v7575_v9, 2 }
 0x330   : > { %v3399_v32 = vadd.f32 %v3367_v6, %v3278_v45  ;;  %v5715_v24 = vpop.eup %5714  ;;  %v4372_v8 = vmul.f32 %v7514_v52, %v4340_v15  ;;  %v2414_v42 = vadd.f32 %v2310_v30, %v2133_v39  ;;  %v2751_v22 = vmul.f32 %v7312_v61, %v7490_v62 }
 0x331   : > { %v4181_v48 = vmul.f32 %v7566_v57, %v4149_v46  ;;  %v2559_v18 = vsel %vm2546_vm1, %v2557_v38, %v2558_v60  ;;  %v2825_v31 = vmul.f32 %v7329_v63, %v7490_v62  ;;  %v7593_v2 = vmul.f32 %v7329_v63, %v7497_v12 }
 0x332   : > { %v3647_v3 = vadd.f32 %v3541_v53, %v3399_v32  ;;  %v5717_v43 = vpop.eup %5716  ;;  %v4532_v52 = vmul.f32 %v5715_v24, %v4372_v8  ;;  %v2663_v20 = vadd.f32 %v2559_v18, %v2414_v42  ;;  %v3073_v6 = vmul.f32 %v7334_v51, %v7490_v62 }
 0x333   : > { %v4213_v41 = vadd.f32 1.4214138, %v4181_v48  ;;  %v2925_v49 = vrot.slane %v2825_v31, 1  ;;  %v2926_v34 = vrot.slane %v7593_v2, 1  ;;  %v7602_v29 = vmul.f32 %v7334_v51, %v7497_v12 }
 0x334   : > { %v7597_v7 = vadd.f32 %v3789_v37, %v3647_v3  ;;  %v4564_v19 = vsub.f32 1.0, %v4532_v52  ;;  %v2783_v39 = vadd.f32 %v2751_v22, %v2663_v20  ;;  %v3173_v47 = vrot.slane %v3073_v6, 2  ;;  %v2082_v20 = vld [vmem:[#allocation2 + $0x40] sm:$0x3] }
 0x335   : > { %v4245_v28 = vmul.f32 %v7566_v57, %v4213_v41  ;;  %vm4596_vm5 = vcmp.ge.f32.partialorder %v7431_v33, 0.0  ;;  %v2927_v53 = vsel %vm2297_vm15, %v2925_v49, %v2926_v34  ;;  %v3174_v26 = vrot.slane %v7602_v29, 2 }
 0x336   : > { %v7609_v58 = vmul.f32 0.70710677, %v7597_v7  ;;  %v4628_v14 = vsub.f32 0.0, %v4564_v19  ;;  %v4472_v27 = vmul.f32 1.442695, %v4438_v21  ;;  %v3031_v0 = vadd.f32 %v2927_v53, %v2783_v39 }
 0x337   : > { %v4277_v56 = vadd.f32 -0.28449672, %v4245_v28  ;;  %v3175_v33 = vsel %vm2546_vm1, %v3173_v47, %v3174_v26  ;;  %v3368_v1 = vmul.f32 %v7381_v13, %v7605_v40  ;;  %v3442_v45 = vmul.f32 %v7360_v10, %v7605_v40 }
 0x338   : > { %v3959_v35 = vand.u32 2147483647, %v7609_v58  ;;  %v4660_v38 = vsel %vm4596_vm5, %v4564_v19, %v4628_v14  ;;  %v3279_v46 = vadd.f32 %v3175_v33, %v3031_v0  ;;  %v7628_v37 = vmul.f32 %v7360_v10, %v7615_v16  ;;  %v2699_v0 = vld [vmem:[#allocation2 + $0x58] sm:$0x3] }
 0x339   : > { %v4309_v15 = vmul.f32 %v7566_v57, %v4277_v56  ;;  %v4724_v21 = vadd.f32 1.0, %v4660_v38  ;;  %v3542_v24 = vrot.slane %v3442_v45, 1  ;;  %v3690_v22 = vmul.f32 %v7371_v5, %v7605_v40 }
 0x33a   : > { %v3991_v32 = vmul.f32 0.3275911, %v3959_v35  ;;  %v4407_v30 = vsub.f32 0.0, %v3959_v35  ;;  %v3400_v48 = vadd.f32 %v3368_v1, %v3279_v46  ;;  %v3543_v42 = vrot.slane %v7628_v37, 1 }
 0x33b   : > { %v4341_v8 = vadd.f32 0.2548296, %v4309_v15  ;;  %v7633_v3 = vpop.eup %5718  ;;  %v4756_v18 = vmul.f32 %v4724_v21, %v7522_v4  ;;  %v7638_v41 = vmul.f32 %v7371_v5, %v7615_v16  ;;  %v3790_v28 = vrot.slane %v3690_v22, 2 }
 0x33c   : > { %v4023_v31 = vadd.f32 1.0, %v3991_v32  ;;  %v4439_v52 = vmul.f32 %v4407_v30, %v3959_v35  ;;  %v4118_v49 = vmul.f32 1.0614054, %v7633_v3  ;;  %v3544_v19 = vsel %vm2297_vm15, %v3542_v24, %v3543_v42 }
 0x33d   : > { %v4373_v6 = vmul.f32 %v7566_v57, %v4341_v8  ;;  %5387 = vmatprep.mubr.f32.mxu0 %v4756_v18  ;;  %v3648_v39 = vadd.f32 %v3544_v19, %v3400_v48  ;;  %v3791_v4 = vrot.slane %v7638_v41, 2  ;;  %v4693_v53 = vmul.f32 0.5, %v7468_v36  ;;  %v3316_v48 = vld [vmem:[#allocation2 + $0x70] sm:$0x3] }
 0x33e   : > { %5720 = vrcp.f32 %v4023_v31  ;;  %v4150_v14 = vadd.f32 -1.4531521, %v4118_v49  ;;  %v2209_v56 = vmul.f32 %v7277_v54, %v2082_v20  ;;  %vm4597_vm6 = vcmp.ge.f32.partialorder %v7476_v55, 0.0 }
 0x33f   : > { %v4533_v47 = vmul.f32 %v5717_v43, %v4373_v6  ;;  %v4474_v57 = vmul.f32 1.442695, %v4439_v52  ;;  %v3792_v35 = vsel %vm2546_vm1, %v3790_v28, %v3791_v4  ;;  %v2458_v33 = vmul.f32 %v7289_v17, %v2082_v20 }
 0x340   : > { %v4182_v45 = vmul.f32 %v7633_v3, %v4150_v14  ;;  %5722 = vpow2.f32 %v4472_v27  ;;  %v7654_v43 = vadd.f32 %v3792_v35, %v3648_v39  ;;  %v7657_v36 = vmul.f32 0.5, %v7534_v50 }
 0x341   : > { %v4565_v1 = vsub.f32 1.0, %v4533_v47  ;;  %v2311_v38 = vrot.slane %v2209_v56, 1  ;;  %v2827_v15 = vmul.f32 %v7329_v63, %v2699_v0  ;;  %v3075_v46 = vmul.f32 %v7334_v51, %v2699_v0 }
 0x342   : > { %v4214_v32 = vadd.f32 1.4214138, %v4182_v45  ;;  %v7662_v30 = vmul.f32 0.70710677, %v7654_v43  ;;  %v2560_v24 = vrot.slane %v2458_v33, 2  ;;  %5724 = vpow2.f32 %v4474_v57 }
 0x343   : > { %v4629_v21 = vsub.f32 0.0, %v4565_v1  ;;  %v2134_v27 = vmul.f32 %v7283_v59, %v7351_v23  ;;  %v2312_v50 = vsel %vm2297_vm15, %v2309_v11, %v2311_v38  ;;  %v2752_v8 = vmul.f32 %v7312_v61, %v7497_v12 }
 0x344   : > { %v4246_v18 = vmul.f32 %v7633_v3, %v4214_v32  ;;  %v3960_v31 = vand.u32 2147483647, %v7662_v30  ;;  %v2561_v52 = vsel %vm2546_vm1, %v2558_v60, %v2560_v24  ;;  %v2928_v25 = vrot.slane %v2827_v15, 1 }
 0x345   : > { %v4661_v22 = vsel %vm4597_vm6, %v4565_v1, %v4629_v21  ;;  %v2415_v20 = vadd.f32 %v2312_v50, %v2134_v27  ;;  %v3176_v6 = vrot.slane %v3075_v46, 2  ;;  %v3444_v28 = vmul.f32 %v7360_v10, %v3316_v48 }
 0x346   : > { %v4725_v23 = vadd.f32 1.0, %v4661_v22  ;;  %v4278_v11 = vadd.f32 -0.28449672, %v4246_v18  ;;  %v3992_v49 = vmul.f32 0.3275911, %v3960_v31  ;;  %v4408_v19 = vsub.f32 0.0, %v3960_v31 }
 0x347   : > { %v2664_v55 = vadd.f32 %v2561_v52, %v2415_v20  ;;  %v3369_v47 = vmul.f32 %v7381_v13, %v7615_v16  ;;  %v3692_v14 = vmul.f32 %v7371_v5, %v3316_v48  ;;  %v2929_v60 = vsel %vm2297_vm15, %v2926_v34, %v2928_v25 }
 0x348   : > { %v4757_v39 = vmul.f32 %v4725_v23, %v4693_v53  ;;  %v4310_v9 = vmul.f32 %v7633_v3, %v4278_v11  ;;  %v4024_v56 = vadd.f32 1.0, %v3992_v49  ;;  %v3177_v0 = vsel %vm2546_vm1, %v3174_v26, %v3176_v6 }
 0x349   : > { %v2784_v57 = vadd.f32 %v2752_v8, %v2664_v55  ;;  %v2135_v53 = vmul.f32 %v7283_v59, %v7490_v62  ;;  %v2210_v35 = vmul.f32 %v7277_v54, %v7490_v62  ;;  %v7695_v33 = vmul.f32 %v7277_v54, %v7497_v12 }
 0x34a   : > { %5388 = vmatmul.mubr.f32.vlgmr.msra.gmra.mxu0 %v4757_v39  ;;  %v4342_v2 = vadd.f32 0.2548296, %v4310_v9  ;;  %5726 = vrcp.f32 %v4024_v56  ;;  %v4440_v34 = vmul.f32 %v4408_v19, %v3960_v31  ;;  %v3545_v29 = vrot.slane %v3444_v28, 1  ;;  %v7735_v39 = vld [vmem:[#allocation2 + $0x78] sm:$0xff] }
 0x34b   : > { %v7697_v1 = vpop.eup %5720  ;;  %vm4598_vm7 = vcmp.ge.f32.partialorder %v7541_v44, 0.0  ;;  %v3032_v45 = vadd.f32 %v2929_v60, %v2784_v57  ;;  %v3793_v38 = vrot.slane %v3692_v14, 2  ;;  %v2313_v15 = vrot.slane %v2210_v35, 1 }
 0x34c   : > { %v4119_v26 = vmul.f32 1.0614054, %v7697_v1  ;;  %v4374_v46 = vmul.f32 %v7633_v3, %v4342_v2  ;;  %v3546_v21 = vsel %vm2297_vm15, %v3543_v42, %v3545_v29  ;;  %v2314_v32 = vrot.slane %v7695_v33, 1 }
 0x34d   : > { %v2459_v24 = vmul.f32 %v7289_v17, %v7490_v62  ;;  %v5723_v27 = vpop.eup %5722  ;;  %v3280_v8 = vadd.f32 %v3177_v0, %v3032_v45  ;;  %v3794_v48 = vsel %vm2546_vm1, %v3791_v4, %v3793_v38  ;;  %v7713_v22 = vmul.f32 %v7289_v17, %v7497_v12 }
 0x34e   : > { %v4151_v50 = vadd.f32 -1.4531521, %v4119_v26  ;;  %v4534_v3 = vmul.f32 %v5723_v27, %v4374_v46  ;;  %v2315_v37 = vsel %vm2297_vm15, %v2313_v15, %v2314_v32  ;;  %v2828_v62 = vmul.f32 %v7329_v63, %v7605_v40 }
 0x34f   : > { %v2562_v42 = vrot.slane %v2459_v24, 2  ;;  %v3401_v31 = vadd.f32 %v3369_v47, %v3280_v8  ;;  %v2416_v52 = vadd.f32 %v2315_v37, %v2135_v53  ;;  %v2563_v41 = vrot.slane %v7713_v22, 2  ;;  %v5725_v4 = vpop.eup %5724  ;;  %v7744_v53 = vld [vmem:[#allocation2 + $0x80] sm:$0xff] }
 0x350   : > { %v4183_v18 = vmul.f32 %v7697_v1, %v4151_v50  ;;  %v4566_v23 = vsub.f32 1.0, %v4534_v3  ;;  %v7724_v20 = vmul.f32 %v7329_v63, %v7615_v16  ;;  %v2930_v25 = vrot.slane %v2828_v62, 1 }
 0x351   : > { %v3076_v6 = vmul.f32 %v7334_v51, %v7605_v40  ;;  %v3649_v49 = vadd.f32 %v3546_v21, %v3401_v31  ;;  %v2564_v19 = vsel %vm2546_vm1, %v2562_v42, %v2563_v41  ;;  %v7733_v28 = vmul.f32 %v7334_v51, %v7615_v16  ;;  %v2085_v31 = vld [vmem:[#allocation2 + $0x58] sm:$0x3] }
 0x352   : > { %v4215_v11 = vadd.f32 1.4214138, %v4183_v18  ;;  %v4630_v55 = vsub.f32 0.0, %v4566_v23  ;;  %v2665_v47 = vadd.f32 %v2564_v19, %v2416_v52  ;;  %v2753_v14 = vmul.f32 %v7312_v61, %v7605_v40 }
 0x353   : > { %v2931_v9 = vrot.slane %v7724_v20, 1  ;;  %v7741_v60 = vadd.f32 %v3794_v48, %v3649_v49  ;;  %v3178_v0 = vrot.slane %v3076_v6, 2  ;;  %v3179_v57 = vrot.slane %v7733_v28, 2  ;;  %v7829_v20 = vld [vmem:[%s9711_s4] ss:$0 sm:$0xff] }
 0x354   : > { %v4247_v56 = vmul.f32 %v7697_v1, %v4215_v11  ;;  %v4662_v35 = vsel %vm4598_vm7, %v4566_v23, %v4630_v55  ;;  %v4476_v2 = vmul.f32 1.442695, %v4440_v34  ;;  %v2785_v29 = vadd.f32 %v2753_v14, %v2665_v47 }
 0x355   : > { %v3445_v26 = vmul.f32 %v7360_v10, %v7735_v39  ;;  %v4726_v45 = vadd.f32 1.0, %v4662_v35  ;;  %v7751_v15 = vmul.f32 0.70710677, %v7741_v60  ;;  %v2932_v46 = vsel %vm2297_vm15, %v2930_v25, %v2931_v9 }
 0x356   : > { %v4279_v38 = vadd.f32 -0.28449672, %v4247_v56  ;;  %v3033_v21 = vadd.f32 %v2932_v46, %v2785_v29  ;;  %v3370_v24 = vmul.f32 %v7381_v13, %v7735_v39  ;;  %v7760_v44 = vmul.f32 %v7360_v10, %v7744_v53 }
 0x357   : > { %v3547_v34 = vrot.slane %v3445_v26, 1  ;;  %v7762_v27 = vpop.eup %5726  ;;  %v4758_v50 = vmul.f32 %v4726_v45, %v7657_v36  ;;  %v3961_v48 = vand.u32 2147483647, %v7751_v15  ;;  %v3180_v3 = vsel %vm2546_vm1, %v3178_v0, %v3179_v57 }
 0x358   : > { %v4311_v8 = vmul.f32 %v7697_v1, %v4279_v38  ;;  %v4120_v37 = vmul.f32 1.0614054, %v7762_v27  ;;  %v3281_v42 = vadd.f32 %v3180_v3, %v3033_v21  ;;  %v3548_v62 = vrot.slane %v7760_v44, 1 }
 0x359   : > { %v3693_v18 = vmul.f32 %v7371_v5, %v7735_v39  ;;  %5390 = vmatprep.mubr.f32.mxu0 %v4758_v50  ;;  %v3993_v36 = vmul.f32 0.3275911, %v3961_v48  ;;  %v4409_v23 = vsub.f32 0.0, %v3961_v48  ;;  %v7776_v25 = vmul.f32 %v7371_v5, %v7744_v53 }
 0x35a   : > { %v4343_v52 = vadd.f32 0.2548296, %v4311_v8  ;;  %v4152_v6 = vadd.f32 -1.4531521, %v4120_v37  ;;  %v3402_v11 = vadd.f32 %v3370_v24, %v3281_v42  ;;  %v3549_v49 = vsel %vm2297_vm15, %v3547_v34, %v3548_v62  ;;  %v2702_v24 = vld [vmem:[#allocation2 + $0x70] sm:$0x3] }
 0x35b   : > { %v3795_v19 = vrot.slane %v3693_v18, 2  ;;  %v4025_v47 = vadd.f32 1.0, %v3993_v36  ;;  %v4441_v14 = vmul.f32 %v4409_v23, %v3961_v48  ;;  %v3796_v56 = vrot.slane %v7776_v25, 2  ;;  %v3319_v42 = vld [vmem:[#allocation2 + $0x88] sm:$0x3] }
 0x35c   : > { %v4375_v55 = vmul.f32 %v7697_v1, %v4343_v52  ;;  %v4184_v0 = vmul.f32 %v7762_v27, %v4152_v6  ;;  %5728 = vpow2.f32 %v4476_v2  ;;  %v3650_v35 = vadd.f32 %v3549_v49, %v3402_v11 }
 0x35d   : > { %v2212_v29 = vmul.f32 %v7277_v54, %v2085_v31  ;;  %5730 = vrcp.f32 %v4025_v47  ;;  %v3797_v45 = vsel %vm2546_vm1, %v3795_v19, %v3796_v56  ;;  %v2461_v21 = vmul.f32 %v7289_v17, %v2085_v31 }
 0x35e   : > { %v4535_v26 = vmul.f32 %v5725_v4, %v4375_v55  ;;  %v4216_v38 = vadd.f32 1.4214138, %v4184_v0  ;;  %v7788_v46 = vadd.f32 %v3797_v45, %v3650_v35  ;;  %v4695_v50 = vmul.f32 0.5, %v7597_v7 }
 0x35f   : > { %v2316_v1 = vrot.slane %v2212_v29, 1  ;;  %v4478_v2 = vmul.f32 1.442695, %v4441_v14  ;;  %v2136_v54 = vmul.f32 %v7283_v59, %v7497_v12  ;;  %vm4599_vm8 = vcmp.ge.f32.partialorder %v7609_v58, 0.0 }
 0x360   : > { %v4567_v34 = vsub.f32 1.0, %v4535_v26  ;;  %v4248_v4 = vmul.f32 %v7762_v27, %v4216_v38  ;;  %v7797_v8 = vmul.f32 0.70710677, %v7788_v46  ;;  %v2565_v37 = vrot.slane %v2461_v21, 2 }
 0x361   : > { %v2317_v48 = vsel %vm2297_vm15, %v2314_v32, %v2316_v1  ;;  %v2830_v7 = vmul.f32 %v7329_v63, %v2702_v24  ;;  %v7804_v59 = vmul.f32 0.5, %v7654_v43  ;;  %v3078_v58 = vmul.f32 %v7334_v51, %v2702_v24  ;;  %v7852_v1 = vld [vmem:[%s9711_s4 + $0x2] ss:$0 sm:$0xff] }
 0x362   : > { %v4631_v17 = vsub.f32 0.0, %v4567_v34  ;;  %v2417_v3 = vadd.f32 %v2317_v48, %v2136_v54  ;;  %v4280_v18 = vadd.f32 -0.28449672, %v4248_v4  ;;  %v3962_v12 = vand.u32 2147483647, %v7797_v8 }
 0x363   : > { %5732 = vpow2.f32 %v4478_v2  ;;  %v2566_v33 = vsel %vm2546_vm1, %v2563_v41, %v2565_v37  ;;  %v2754_v32 = vmul.f32 %v7312_v61, %v7615_v16  ;;  %v2933_v6 = vrot.slane %v2830_v7, 1 }
 0x364   : > { %v4663_v31 = vsel %vm4599_vm8, %v4567_v34, %v4631_v17  ;;  %v4312_v63 = vmul.f32 %v7762_v27, %v4280_v18  ;;  %v3994_v36 = vmul.f32 0.3275911, %v3962_v12  ;;  %v4410_v23 = vsub.f32 0.0, %v3962_v12 }
 0x365   : > { %v4727_v52 = vadd.f32 1.0, %v4663_v31  ;;  %v2666_v43 = vadd.f32 %v2566_v33, %v2417_v3  ;;  %v3447_v11 = vmul.f32 %v7360_v10, %v3319_v42  ;;  %v3695_v51 = vmul.f32 %v7371_v5, %v3319_v42  ;;  %v7869_v3 = vld [vmem:[%s9711_s4 + $0x4] ss:$0 sm:$0xff]  ;;  %v7883_v42 = vld [vmem:[%s9711_s4 + $0x5] ss:$0 sm:$0xff] }
 0x366   : > { %v4344_v19 = vadd.f32 0.2548296, %v4312_v63  ;;  %v4026_v55 = vadd.f32 1.0, %v3994_v36  ;;  %v3181_v22 = vrot.slane %v3078_v58, 2  ;;  %vm4600_vm9 = vcmp.ge.f32.partialorder %v7662_v30, 0.0 }
 0x367   : > { %v4759_v49 = vmul.f32 %v4727_v52, %v4695_v50  ;;  %v4442_v41 = vmul.f32 %v4410_v23, %v3962_v12  ;;  %v2786_v47 = vadd.f32 %v2754_v32, %v2666_v43  ;;  %v2934_v61 = vsel %vm2297_vm15, %v2931_v9, %v2933_v6  ;;  %v7836_v9 = vld [vmem:[%s9711_s4 + $0x1] ss:$0 sm:$0xff]  ;;  %v7907_v30 = vld [vmem:[%s9711_s4 + $0x3] ss:$0 sm:$0xff] }
 0x368   : > { %v3371_v14 = vmul.f32 %v7381_v13, %v7744_v53  ;;  %v4376_v10 = vmul.f32 %v7762_v27, %v4344_v19  ;;  %5734 = vrcp.f32 %v4026_v55  ;;  %v3182_v5 = vsel %vm2546_vm1, %v3179_v57, %v3181_v22  ;;  %v7902_v19 = vld [vmem:[#allocation2 + $0x98] sm:$0xff] }
 0x369   : > { %5391 = vmatmul.mubr.f32.gmra.mxu0 %v4759_v49  ;;  %v3550_v0 = vrot.slane %v3447_v11, 1  ;;  %v5729_v35 = vpop.eup %5728  ;;  %v3034_v29 = vadd.f32 %v2934_v61, %v2786_v47  ;;  %v3798_v26 = vrot.slane %v3695_v51, 2  ;;  %v2137_v13 = vmul.f32 %v7829_v20, %v7605_v40  ;;  %v7900_v49 = vld [vmem:[#allocation2 + $0x90] sm:$0xff] }
 0x36a   : > { %v2213_v28 = vmul.f32 %v7836_v9, %v7605_v40  ;;  %v7840_v57 = vpop.eup %5730  ;;  %v4536_v27 = vmul.f32 %v5729_v35, %v4376_v10  ;;  %v7847_v38 = vmul.f32 %v7836_v9, %v7615_v16  ;;  %v2462_v21 = vmul.f32 %v7852_v1, %v7605_v40 }
 0x36b   : > { %v3551_v45 = vsel %vm2297_vm15, %v3548_v62, %v3550_v0  ;;  %v4121_v24 = vmul.f32 1.0614054, %v7840_v57  ;;  %v3282_v34 = vadd.f32 %v3182_v5, %v3034_v29  ;;  %v7859_v44 = vmul.f32 %v7852_v1, %v7615_v16  ;;  %v7923_v29 = vld [vmem:[%s9711_s4 + $0x7] ss:$0 sm:$0xff] }
 0x36c   : > { %v2318_v50 = vrot.slane %v2213_v28, 1  ;;  %v4568_v62 = vsub.f32 1.0, %v4536_v27  ;;  %v3799_v2 = vsel %vm2546_vm1, %v3796_v56, %v3798_v26  ;;  %v2319_v54 = vrot.slane %v7847_v38, 1 }
 0x36d   : > { %v2567_v4 = vrot.slane %v2462_v21, 2  ;;  %v4153_v48 = vadd.f32 -1.4531521, %v4121_v24  ;;  %v3403_v17 = vadd.f32 %v3371_v14, %v3282_v34  ;;  %v2568_v40 = vrot.slane %v7859_v44, 2 }
 0x36e   : > { %v2831_v37 = vmul.f32 %v7869_v3, %v7735_v39  ;;  %v4632_v7 = vsub.f32 0.0, %v4568_v62  ;;  %v2320_v25 = vsel %vm2297_vm15, %v2318_v50, %v2319_v54  ;;  %v7878_v56 = vmul.f32 %v7869_v3, %v7744_v53 }
 0x36f   : > { %v3079_v18 = vmul.f32 %v7883_v42, %v7735_v39  ;;  %v4185_v12 = vmul.f32 %v7840_v57, %v4153_v48  ;;  %v3651_v58 = vadd.f32 %v3551_v45, %v3403_v17  ;;  %v2418_v31 = vadd.f32 %v2320_v25, %v2137_v13  ;;  %v7940_v45 = vld [vmem:[%s9711_s4 + $0x8] ss:$0 sm:$0xff] }
 0x370   : > { %v2569_v33 = vsel %vm2546_vm1, %v2567_v4, %v2568_v40  ;;  %v5733_v32 = vpop.eup %5732  ;;  %v4664_v52 = vsel %vm4600_vm9, %v4568_v62, %v4632_v7  ;;  %v2935_v63 = vrot.slane %v2831_v37, 1  ;;  %v2936_v36 = vrot.slane %v7878_v56, 1  ;;  %v2088_v37 = vld [vmem:[#allocation2 + $0x70] sm:$0x3] }
 0x371   : > { %v7896_v23 = vmul.f32 %v7883_v42, %v7744_v53  ;;  %v4728_v43 = vadd.f32 1.0, %v4664_v52  ;;  %v4217_v6 = vadd.f32 1.4214138, %v4185_v12  ;;  %v7898_v11 = vadd.f32 %v3799_v2, %v3651_v58 }
 0x372   : > { %v2667_v51 = vadd.f32 %v2569_v33, %v2418_v31  ;;  %v2755_v55 = vmul.f32 %v7907_v30, %v7735_v39  ;;  %v3183_v22 = vrot.slane %v3079_v18, 2  ;;  %v4480_v10 = vmul.f32 1.442695, %v4442_v41  ;;  %v7954_v18 = vld [vmem:[%s9711_s4 + $0x6] ss:$0 sm:$0xff] }
 0x373   : > { %v3184_v47 = vrot.slane %v7896_v23, 2  ;;  %v4760_v61 = vmul.f32 %v4728_v43, %v7804_v59  ;;  %v4249_v14 = vmul.f32 %v7840_v57, %v4217_v6  ;;  %v7915_v5 = vmul.f32 0.70710677, %v7898_v11 }
 0x374   : > { %v2787_v0 = vadd.f32 %v2755_v55, %v2667_v51  ;;  %v2937_v35 = vsel %vm2297_vm15, %v2935_v63, %v2936_v36  ;;  %v3448_v26 = vmul.f32 %v7923_v29, %v7900_v49  ;;  %v7929_v59 = vmul.f32 %v7923_v29, %v7902_v19  ;;  %v2705_v51 = vld [vmem:[#allocation2 + $0x88] sm:$0x3] }
 0x375   : > { %v7931_v41 = vpop.eup %5734  ;;  %5393 = vmatprep.mubr.f32.mxu0 %v4760_v61  ;;  %v4281_v13 = vadd.f32 -0.28449672, %v4249_v14  ;;  %v3963_v28 = vand.u32 2147483647, %v7915_v5  ;;  %v3185_v27 = vsel %vm2546_vm1, %v3183_v22, %v3184_v47  ;;  %v3696_v21 = vmul.f32 %v7940_v45, %v7900_v49 }
 0x376   : > { %v4122_v24 = vmul.f32 1.0614054, %v7931_v41  ;;  %v3035_v34 = vadd.f32 %v2937_v35, %v2787_v0  ;;  %v3552_v50 = vrot.slane %v3448_v26, 1  ;;  %v3553_v62 = vrot.slane %v7929_v59, 1 }
 0x377   : > { %v4313_v2 = vmul.f32 %v7840_v57, %v4281_v13  ;;  %v3995_v4 = vmul.f32 0.3275911, %v3963_v28  ;;  %v4411_v48 = vsub.f32 0.0, %v3963_v28  ;;  %v7949_v17 = vmul.f32 %v7940_v45, %v7902_v19 }
 0x378   : > { %v4154_v7 = vadd.f32 -1.4531521, %v4122_v24  ;;  %v3283_v25 = vadd.f32 %v3185_v27, %v3035_v34  ;;  %v3372_v12 = vmul.f32 %v7954_v18, %v7900_v49  ;;  %v3800_v33 = vrot.slane %v3696_v21, 2 }
 0x379   : > { %v4345_v58 = vadd.f32 0.2548296, %v4313_v2  ;;  %v4027_v31 = vadd.f32 1.0, %v3995_v4  ;;  %v3801_v52 = vrot.slane %v7949_v17, 2  ;;  %5736 = vpow2.f32 %v4480_v10 }
 0x37a   : > { %v4186_v63 = vmul.f32 %v7931_v41, %v4154_v7  ;;  %v3404_v43 = vadd.f32 %v3372_v12, %v3283_v25  ;;  %v2215_v6 = vmul.f32 %v7836_v9, %v2088_v37  ;;  %v4443_v22 = vmul.f32 %v4411_v48, %v3963_v28  ;;  %v3322_v25 = vld [vmem:[#allocation2 + $0xa0] sm:$0x3] }
 0x37b   : > { %v4377_v55 = vmul.f32 %v7840_v57, %v4345_v58  ;;  %5738 = vrcp.f32 %v4027_v31  ;;  %v3554_v61 = vsel %vm2297_vm15, %v3552_v50, %v3553_v62  ;;  %v2464_v26 = vmul.f32 %v7852_v1, %v2088_v37 }
 0x37c   : > { %v4218_v14 = vadd.f32 1.4214138, %v4186_v63  ;;  %v3652_v0 = vadd.f32 %v3554_v61, %v3404_v43  ;;  %v2321_v35 = vrot.slane %v2215_v6, 1  ;;  %v3802_v10 = vsel %vm2546_vm1, %v3800_v33, %v3801_v52 }
 0x37d   : > { %v4537_v13 = vmul.f32 %v5733_v32, %v4377_v55  ;;  %v2138_v27 = vmul.f32 %v7829_v20, %v7615_v16  ;;  %v2833_v57 = vmul.f32 %v7869_v3, %v2705_v51  ;;  %v2570_v34 = vrot.slane %v2464_v26, 2 }
 0x37e   : > { %v4250_v28 = vmul.f32 %v7931_v41, %v4218_v14  ;;  %v7973_v21 = vadd.f32 %v3802_v10, %v3652_v0  ;;  %v2322_v24 = vsel %vm2297_vm15, %v2319_v54, %v2321_v35  ;;  %v4697_v32 = vmul.f32 0.5, %v7741_v60 }
 0x37f   : > { %v4569_v50 = vsub.f32 1.0, %v4537_v13  ;;  %v4482_v2 = vmul.f32 1.442695, %v4443_v22  ;;  %v2419_v4 = vadd.f32 %v2322_v24, %v2138_v27  ;;  %v2571_v16 = vsel %vm2546_vm1, %v2568_v40, %v2570_v34 }
 0x380   : > { %v4282_v48 = vadd.f32 -0.28449672, %v4250_v28  ;;  %v7980_v37 = vmul.f32 0.70710677, %v7973_v21  ;;  %v3081_v7 = vmul.f32 %v7883_v42, %v2705_v51  ;;  %v2756_v54 = vmul.f32 %v7907_v30, %v7744_v53 }
 0x381   : > { %v4633_v38 = vsub.f32 0.0, %v4569_v50  ;;  %v2668_v12 = vadd.f32 %v2571_v16, %v2419_v4  ;;  %v2938_v58 = vrot.slane %v2833_v57, 1  ;;  %vm4601_vm10 = vcmp.ge.f32.partialorder %v7751_v15, 0.0 }
 0x382   : > { %v4314_v60 = vmul.f32 %v7931_v41, %v4282_v48  ;;  %v7991_v31 = vmul.f32 0.5, %v7788_v46  ;;  %v3964_v44 = vand.u32 2147483647, %v7980_v37  ;;  %v3450_v43 = vmul.f32 %v7923_v29, %v3322_v25 }
 0x383   : > { %v4665_v33 = vsel %vm4601_vm10, %v4569_v50, %v4633_v38  ;;  %v2788_v40 = vadd.f32 %v2756_v54, %v2668_v12  ;;  %v2939_v63 = vsel %vm2297_vm15, %v2936_v36, %v2938_v58  ;;  %v3186_v22 = vrot.slane %v3081_v7, 2 }
 0x384   : > { %v4729_v6 = vadd.f32 1.0, %v4665_v33  ;;  %v4346_v51 = vadd.f32 0.2548296, %v4314_v60  ;;  %v3996_v55 = vmul.f32 0.3275911, %v3964_v44  ;;  %vm4602_vm11 = vcmp.ge.f32.partialorder %v7797_v8, 0.0 }
 0x385   : > { %5740 = vpow2.f32 %v4482_v2  ;;  %v3036_v15 = vadd.f32 %v2939_v63, %v2788_v40  ;;  %v3373_v46 = vmul.f32 %v7954_v18, %v7902_v19  ;;  %v3698_v61 = vmul.f32 %v7940_v45, %v3322_v25 }
 0x386   : > { %v4761_v14 = vmul.f32 %v4729_v6, %v4697_v32  ;;  %v4378_v56 = vmul.f32 %v7931_v41, %v4346_v51  ;;  %v4028_v0 = vadd.f32 1.0, %v3996_v55  ;;  %v3187_v36 = vsel %vm2546_vm1, %v3184_v47, %v3186_v22  ;;  %v5737_v35 = vpop.eup %5736 }
 0x387   : > { %v4412_v26 = vsub.f32 0.0, %v3964_v44  ;;  %v3284_v13 = vadd.f32 %v3187_v36, %v3036_v15  ;;  %v3555_v10 = vrot.slane %v3450_v43, 1  ;;  %v2216_v27 = vmul.f32 %v7836_v9, %v7735_v39 }
 0x388   : > { %v8008_v57 = vpop.eup %5738  ;;  %5394 = vmatmul.mubr.f32.gmra.mxu0 %v4761_v14  ;;  %v4538_v28 = vmul.f32 %v5737_v35, %v4378_v56  ;;  %5742 = vrcp.f32 %v4028_v0  ;;  %v2139_v41 = vmul.f32 %v7829_v20, %v7735_v39  ;;  %v8014_v23 = vmul.f32 %v7836_v9, %v7744_v53  ;;  %v8066_v0 = vld [vmem:[#allocation2 + $0xb0] sm:$0xff] }
 0x389   : > { %v4123_v47 = vmul.f32 1.0614054, %v8008_v57  ;;  %v3405_v24 = vadd.f32 %v3373_v46, %v3284_v13  ;;  %v3803_v34 = vrot.slane %v3698_v61, 2  ;;  %v2323_v50 = vrot.slane %v2216_v27, 1  ;;  %v8061_v46 = vld [vmem:[#allocation2 + $0xa8] sm:$0xff] }
 0x38a   : > { %v4570_v32 = vsub.f32 1.0, %v4538_v28  ;;  %v3556_v2 = vsel %vm2297_vm15, %v3553_v62, %v3555_v10  ;;  %v2324_v4 = vrot.slane %v8014_v23, 1  ;;  %v2465_v48 = vmul.f32 %v7852_v1, %v7735_v39 }
 0x38b   : > { %v4155_v16 = vadd.f32 -1.4531521, %v4123_v47  ;;  %v3653_v7 = vadd.f32 %v3556_v2, %v3405_v24  ;;  %v3804_v25 = vsel %vm2546_vm1, %v3801_v52, %v3803_v34  ;;  %v8028_v38 = vmul.f32 %v7852_v1, %v7744_v53 }
 0x38c   : > { %v4634_v12 = vsub.f32 0.0, %v4570_v32  ;;  %v2325_v59 = vsel %vm2297_vm15, %v2323_v50, %v2324_v4  ;;  %v2572_v62 = vrot.slane %v2465_v48, 2  ;;  %v2834_v54 = vmul.f32 %v7869_v3, %v7900_v49 }
 0x38d   : > { %v4187_v39 = vmul.f32 %v8008_v57, %v4155_v16  ;;  %v4444_v58 = vmul.f32 %v4412_v26, %v3964_v44  ;;  %v8036_v60 = vadd.f32 %v3804_v25, %v3653_v7  ;;  %v2573_v17 = vrot.slane %v8028_v38, 2 }
 0x38e   : > { %v4666_v52 = vsel %vm4602_vm11, %v4570_v32, %v4634_v12  ;;  %v2420_v33 = vadd.f32 %v2325_v59, %v2139_v41  ;;  %v8043_v40 = vmul.f32 %v7869_v3, %v7902_v19  ;;  %v3082_v63 = vmul.f32 %v7883_v42, %v7900_v49 }
 0x38f   : > { %v4730_v43 = vadd.f32 1.0, %v4666_v52  ;;  %v4219_v6 = vadd.f32 1.4214138, %v4187_v39  ;;  %v8048_v51 = vmul.f32 0.5, %v7898_v11  ;;  %v8051_v44 = vmul.f32 0.70710677, %v8036_v60 }
 0x390   : > { %v2574_v8 = vsel %vm2546_vm1, %v2572_v62, %v2573_v17  ;;  %v2940_v55 = vrot.slane %v2834_v54, 1  ;;  %v2941_v22 = vrot.slane %v8043_v40, 1  ;;  %v8059_v15 = vmul.f32 %v7883_v42, %v7902_v19  ;;  %v2091_v54 = vld [vmem:[#allocation2 + $0x88] sm:$0x3] }
 0x391   : > { %v4762_v61 = vmul.f32 %v4730_v43, %v7991_v31  ;;  %v4251_v11 = vmul.f32 %v8008_v57, %v4219_v6  ;;  %v3965_v14 = vand.u32 2147483647, %v8051_v44  ;;  %v3188_v56 = vrot.slane %v3082_v63, 2 }
 0x392   : > { %v5741_v36 = vpop.eup %5740  ;;  %v4484_v35 = vmul.f32 1.442695, %v4444_v58  ;;  %v2669_v26 = vadd.f32 %v2574_v8, %v2420_v33  ;;  %v2757_v13 = vmul.f32 %v7907_v30, %v7900_v49  ;;  %v3189_v10 = vrot.slane %v8059_v15, 2 }
 0x393   : > { %5396 = vmatprep.mubr.f32.mxu1 %v4762_v61  ;;  %v4283_v27 = vadd.f32 -0.28449672, %v4251_v11  ;;  %v3997_v28 = vmul.f32 0.3275911, %v3965_v14  ;;  %v4413_v41 = vsub.f32 0.0, %v3965_v14  ;;  %v3451_v31 = vmul.f32 %v7923_v29, %v8061_v46 }
 0x394   : > { %v2789_v47 = vadd.f32 %v2757_v13, %v2669_v26  ;;  %v2942_v24 = vsel %vm2297_vm15, %v2940_v55, %v2941_v22  ;;  %v8078_v34 = vmul.f32 %v7923_v29, %v8066_v0  ;;  %v3699_v50 = vmul.f32 %v7940_v45, %v8061_v46  ;;  %v2708_v61 = vld [vmem:[#allocation2 + $0xa0] sm:$0x3] }
 0x395   : > { %v8082_v32 = vpop.eup %5742  ;;  %v4315_v2 = vmul.f32 %v8008_v57, %v4283_v27  ;;  %v4029_v48 = vadd.f32 1.0, %v3997_v28  ;;  %v3190_v16 = vsel %vm2546_vm1, %v3188_v56, %v3189_v10  ;;  %v3374_v7 = vmul.f32 %v7954_v18, %v8061_v46 }
 0x396   : > { %v4124_v25 = vmul.f32 1.0614054, %v8082_v32  ;;  %v4445_v12 = vmul.f32 %v4413_v41, %v3965_v14  ;;  %v3037_v59 = vadd.f32 %v2942_v24, %v2789_v47  ;;  %v8093_v62 = vmul.f32 %v7940_v45, %v8066_v0  ;;  %v3325_v24 = vld [vmem:[#allocation2 + $0xb8] sm:$0x3] }
 0x397   : > { %v4347_v39 = vadd.f32 0.2548296, %v4315_v2  ;;  %5744 = vrcp.f32 %v4029_v48  ;;  %v3557_v58 = vrot.slane %v3451_v31, 1  ;;  %v3558_v52 = vrot.slane %v8078_v34, 1 }
 0x398   : > { %v4156_v33 = vadd.f32 -1.4531521, %v4124_v25  ;;  %v3285_v63 = vadd.f32 %v3190_v16, %v3037_v59  ;;  %v3805_v43 = vrot.slane %v3699_v50, 2  ;;  %v3806_v6 = vrot.slane %v8093_v62, 2 }
 0x399   : > { %v4379_v8 = vmul.f32 %v8008_v57, %v4347_v39  ;;  %vm4603_vm12 = vcmp.ge.f32.partialorder %v7915_v5, 0.0  ;;  %5746 = vpow2.f32 %v4484_v35  ;;  %v2218_v55 = vmul.f32 %v7836_v9, %v2091_v54 }
 0x39a   : > { %v4188_v11 = vmul.f32 %v8082_v32, %v4156_v33  ;;  %v4486_v14 = vmul.f32 1.442695, %v4445_v12  ;;  %v3406_v56 = vadd.f32 %v3374_v7, %v3285_v63  ;;  %v2467_v26 = vmul.f32 %v7852_v1, %v2091_v54 }
 0x39b   : > { %v4539_v13 = vmul.f32 %v5741_v36, %v4379_v8  ;;  %v3559_v27 = vsel %vm2297_vm15, %v3557_v58, %v3558_v52  ;;  %v2140_v28 = vmul.f32 %v7829_v20, %v7744_v53  ;;  %v2326_v41 = vrot.slane %v2218_v55, 1 }
 0x39c   : > { %v4220_v57 = vadd.f32 1.4214138, %v4188_v11  ;;  %v3654_v31 = vadd.f32 %v3559_v27, %v3406_v56  ;;  %v3807_v35 = vsel %vm2546_vm1, %v3805_v43, %v3806_v6  ;;  %v2836_v47 = vmul.f32 %v7869_v3, %v2708_v61 }
 0x39d   : > { %v4571_v34 = vsub.f32 1.0, %v4539_v13  ;;  %v2327_v36 = vsel %vm2297_vm15, %v2324_v4, %v2326_v41  ;;  %v2575_v50 = vrot.slane %v2467_v26, 2  ;;  %v3084_v2 = vmul.f32 %v7883_v42, %v2708_v61 }
 0x39e   : > { %v4252_v53 = vmul.f32 %v8082_v32, %v4220_v57  ;;  %5748 = vpow2.f32 %v4486_v14  ;;  %v8114_v48 = vadd.f32 %v3807_v35, %v3654_v31  ;;  %v2421_v16 = vadd.f32 %v2327_v36, %v2140_v28 }
 0x39f   : > { %v4635_v7 = vsub.f32 0.0, %v4571_v34  ;;  %v2576_v25 = vsel %vm2546_vm1, %v2573_v17, %v2575_v50  ;;  %v2758_v12 = vmul.f32 %v7907_v30, %v7902_v19  ;;  %v3453_v23 = vmul.f32 %v7923_v29, %v3325_v24 }
 0x3a0   : > { %v4284_v4 = vadd.f32 -0.28449672, %v4252_v53  ;;  %v8123_v59 = vmul.f32 0.70710677, %v8114_v48  ;;  %v2670_v54 = vadd.f32 %v2576_v25, %v2421_v16  ;;  %v2943_v39 = vrot.slane %v2836_v47, 1 }
 0x3a1   : > { %v4667_v58 = vsel %vm4603_vm12, %v4571_v34, %v4635_v7  ;;  %v3191_v33 = vrot.slane %v3084_v2, 2  ;;  %v3560_v63 = vrot.slane %v3453_v23, 1  ;;  %v3701_v38 = vmul.f32 %v7940_v45, %v3325_v24 }
 0x3a2   : > { %v4731_v43 = vadd.f32 1.0, %v4667_v58  ;;  %v4316_v17 = vmul.f32 %v8082_v32, %v4284_v4  ;;  %v3966_v8 = vand.u32 2147483647, %v8123_v59  ;;  %v3375_v55 = vmul.f32 %v7954_v18, %v8066_v0 }
 0x3a3   : > { %v2790_v61 = vadd.f32 %v2758_v12, %v2670_v54  ;;  %v2944_v11 = vsel %vm2297_vm15, %v2941_v22, %v2943_v39  ;;  %v3192_v5 = vsel %vm2546_vm1, %v3189_v10, %v3191_v33  ;;  %v3561_v14 = vsel %vm2297_vm15, %v3558_v52, %v3560_v63 }
 0x3a4   : > { %v8139_v56 = vpop.eup %5744  ;;  %v4763_v26 = vmul.f32 %v4731_v43, %v8048_v51  ;;  %v4348_v13 = vadd.f32 0.2548296, %v4316_v17  ;;  %v3998_v27 = vmul.f32 0.3275911, %v3966_v8  ;;  %v3808_v28 = vrot.slane %v3701_v38, 2 }
 0x3a5   : > { %vm4604_vm13 = vcmp.ge.f32.partialorder %v7980_v37, 0.0  ;;  %v4125_v41 = vmul.f32 1.0614054, %v8139_v56  ;;  %v3038_v40 = vadd.f32 %v2944_v11, %v2790_v61  ;;  %v2141_v22 = vmul.f32 %v7829_v20, %v7900_v49  ;;  %v8198_v37 = vld [vmem:[#allocation2 + $0xc8] sm:$0xff] }
 0x3a6   : > { %v2219_v15 = vmul.f32 %v7836_v9, %v7900_v49  ;;  %v5747_v10 = vpop.eup %5746  ;;  %5397 = vmatmul.mubr.f32.vlgmr.msra.gmra.mxu1 %v4763_v26  ;;  %v4380_v52 = vmul.f32 %v8082_v32, %v4348_v13  ;;  %v4030_v57 = vadd.f32 1.0, %v3998_v27  ;;  %v4414_v51 = vsub.f32 0.0, %v3966_v8  ;;  %v8191_v26 = vld [vmem:[#allocation2 + $0xc0] sm:$0xff] }
 0x3a7   : > { %v8151_v31 = vmul.f32 %v7836_v9, %v7902_v19  ;;  %v4157_v35 = vadd.f32 -1.4531521, %v4125_v41  ;;  %v3286_v47 = vadd.f32 %v3192_v5, %v3038_v40  ;;  %v2468_v34 = vmul.f32 %v7852_v1, %v7900_v49 }
 0x3a8   : > { %v2328_v24 = vrot.slane %v2219_v15, 1  ;;  %v4540_v36 = vmul.f32 %v5747_v10, %v4380_v52  ;;  %5750 = vrcp.f32 %v4030_v57  ;;  %v3809_v50 = vsel %vm2546_vm1, %v3806_v6, %v3808_v28 }
 0x3a9   : > { %v2329_v32 = vrot.slane %v8151_v31, 1  ;;  %v4189_v2 = vmul.f32 %v8139_v56, %v4157_v35  ;;  %v3407_v53 = vadd.f32 %v3375_v55, %v3286_v47  ;;  %v8162_v16 = vmul.f32 %v7852_v1, %v7902_v19 }
 0x3aa   : > { %v2577_v7 = vrot.slane %v2468_v34, 2  ;;  %v4572_v25 = vsub.f32 1.0, %v4540_v36  ;;  %v4446_v12 = vmul.f32 %v4414_v51, %v3966_v8  ;;  %v2759_v62 = vmul.f32 %v7907_v30, %v8061_v46 }
 0x3ab   : > { %v2330_v49 = vsel %vm2297_vm15, %v2328_v24, %v2329_v32  ;;  %v5749_v6 = vpop.eup %5748  ;;  %v4221_v23 = vadd.f32 1.4214138, %v4189_v2  ;;  %v3655_v4 = vadd.f32 %v3561_v14, %v3407_v53  ;;  %v2578_v39 = vrot.slane %v8162_v16, 2 }
 0x3ac   : > { %v2422_v54 = vadd.f32 %v2330_v49, %v2141_v22  ;;  %v4636_v58 = vsub.f32 0.0, %v4572_v25  ;;  %v2837_v33 = vmul.f32 %v7869_v3, %v8061_v46  ;;  %v8174_v63 = vmul.f32 %v7869_v3, %v8066_v0 }
 0x3ad   : > { %v3085_v38 = vmul.f32 %v7883_v42, %v8061_v46  ;;  %v4253_v43 = vmul.f32 %v8139_v56, %v4221_v23  ;;  %v8179_v17 = vadd.f32 %v3809_v50, %v3655_v4  ;;  %v2579_v8 = vsel %vm2546_vm1, %v2577_v7, %v2578_v39 }
 0x3ae   : > { %v8186_v55 = vmul.f32 %v7883_v42, %v8066_v0  ;;  %v4668_v61 = vsel %vm4604_vm13, %v4572_v25, %v4636_v58  ;;  %v2671_v11 = vadd.f32 %v2579_v8, %v2422_v54  ;;  %v2945_v5 = vrot.slane %v2837_v33, 1 }
 0x3af   : > { %v2946_v14 = vrot.slane %v8174_v63, 1  ;;  %v4700_v13 = vmul.f32 0.5, %v7973_v21  ;;  %v4732_v27 = vadd.f32 1.0, %v4668_v61  ;;  %v4285_v28 = vadd.f32 -0.28449672, %v4253_v43 }
 0x3b0   : > { %v8195_v41 = vmul.f32 0.70710677, %v8179_v17  ;;  %v4488_v40 = vmul.f32 1.442695, %v4446_v12  ;;  %v2791_v22 = vadd.f32 %v2759_v62, %v2671_v11  ;;  %v3193_v15 = vrot.slane %v3085_v38, 2 }
 0x3b1   : > { %v3194_v10 = vrot.slane %v8186_v55, 2  ;;  %v4764_v52 = vmul.f32 %v4732_v27, %v4700_v13  ;;  %v4317_v57 = vmul.f32 %v8139_v56, %v4285_v28  ;;  %v2947_v21 = vsel %vm2297_vm15, %v2945_v5, %v2946_v14  ;;  %v2094_v61 = vld [vmem:[#allocation2 + $0xa0] sm:$0x3]  ;;  %v2711_v13 = vld [vmem:[#allocation2 + $0xb8] sm:$0x3] }
 0x3b2   : > { %v3967_v51 = vand.u32 2147483647, %v8195_v41  ;;  %v3039_v35 = vadd.f32 %v2947_v21, %v2791_v22  ;;  %v3376_v24 = vmul.f32 %v7954_v18, %v8191_v26  ;;  %v3454_v34 = vmul.f32 %v7923_v29, %v8191_v26 }
 0x3b3   : > { %v3195_v47 = vsel %vm2546_vm1, %v3193_v15, %v3194_v10  ;;  %5399 = vmatprep.mubr.f32.mxu1 %v4764_v52  ;;  %v4349_v36 = vadd.f32 0.2548296, %v4317_v57  ;;  %v8214_v53 = vmul.f32 %v7923_v29, %v8198_v37  ;;  %v3702_v12 = vmul.f32 %v7940_v45, %v8191_v26 }
 0x3b4   : > { %v3999_v50 = vmul.f32 0.3275911, %v3967_v51  ;;  %v4415_v2 = vsub.f32 0.0, %v3967_v51  ;;  %v3287_v7 = vadd.f32 %v3195_v47, %v3039_v35  ;;  %v3562_v25 = vrot.slane %v3454_v34, 1 }
 0x3b5   : > { %v8220_v49 = vmul.f32 %v7940_v45, %v8198_v37  ;;  %v8222_v62 = vpop.eup %5750  ;;  %v4381_v23 = vmul.f32 %v8139_v56, %v4349_v36  ;;  %v3563_v58 = vrot.slane %v8214_v53, 1  ;;  %v3810_v43 = vrot.slane %v3702_v12, 2 }
 0x3b6   : > { %v4031_v4 = vadd.f32 1.0, %v3999_v50  ;;  %v4447_v54 = vmul.f32 %v4415_v2, %v3967_v51  ;;  %v4126_v33 = vmul.f32 1.0614054, %v8222_v62  ;;  %v3408_v38 = vadd.f32 %v3376_v24, %v3287_v7 }
 0x3b7   : > { %v3811_v8 = vrot.slane %v8220_v49, 2  ;;  %v4541_v11 = vmul.f32 %v5749_v6, %v4381_v23  ;;  %v3564_v5 = vsel %vm2297_vm15, %v3562_v25, %v3563_v58  ;;  %v4701_v56 = vmul.f32 0.5, %v8036_v60 }
 0x3b8   : > { %5752 = vrcp.f32 %v4031_v4  ;;  %v4158_v27 = vadd.f32 -1.4531521, %v4126_v33  ;;  %v4490_v28 = vmul.f32 1.442695, %v4447_v54  ;;  %v3656_v22 = vadd.f32 %v3564_v5, %v3408_v38  ;;  %v3328_v4 = vld [vmem:[#allocation2 + $0xd0] sm:$0x3] }
 0x3b9   : > { %v4573_v15 = vsub.f32 1.0, %v4541_v11  ;;  %v3812_v52 = vsel %vm2546_vm1, %v3810_v43, %v3811_v8  ;;  %v2221_v57 = vmul.f32 %v7836_v9, %v2094_v61  ;;  %v2470_v6 = vmul.f32 %v7852_v1, %v2094_v61 }
 0x3ba   : > { %v4190_v51 = vmul.f32 %v8222_v62, %v4158_v27  ;;  %5754 = vpow2.f32 %v4488_v40  ;;  %v8238_v21 = vadd.f32 %v3812_v52, %v3656_v22  ;;  %v2839_v35 = vmul.f32 %v7869_v3, %v2711_v13 }
 0x3bb   : > { %vm4605_vm14 = vcmp.ge.f32.partialorder %v8051_v44, 0.0  ;;  %v4637_v60 = vsub.f32 0.0, %v4573_v15  ;;  %v2331_v47 = vrot.slane %v2221_v57, 1  ;;  %v3087_v24 = vmul.f32 %v7883_v42, %v2711_v13 }
 0x3bc   : > { %v4222_v34 = vadd.f32 1.4214138, %v4190_v51  ;;  %v8244_v36 = vmul.f32 0.5, %v8114_v48  ;;  %v8247_v50 = vmul.f32 0.70710677, %v8238_v21  ;;  %v2142_v40 = vmul.f32 %v7829_v20, %v7902_v19 }
 0x3bd   : > { %v4669_v2 = vsel %vm4605_vm14, %v4573_v15, %v4637_v60  ;;  %5756 = vpow2.f32 %v4490_v28  ;;  %v2332_v44 = vsel %vm2297_vm15, %v2329_v32, %v2331_v47  ;;  %v2580_v7 = vrot.slane %v2470_v6, 2 }
 0x3be   : > { %v4733_v25 = vadd.f32 1.0, %v4669_v2  ;;  %v4254_v12 = vmul.f32 %v8222_v62, %v4222_v34  ;;  %v3968_v23 = vand.u32 2147483647, %v8247_v50  ;;  %v2948_v48 = vrot.slane %v2839_v35, 1 }
 0x3bf   : > { %v2423_v54 = vadd.f32 %v2332_v44, %v2142_v40  ;;  %v2581_v33 = vsel %vm2546_vm1, %v2578_v39, %v2580_v7  ;;  %v2760_v19 = vmul.f32 %v7907_v30, %v8066_v0  ;;  %v3196_v38 = vrot.slane %v3087_v24, 2 }
 0x3c0   : > { %v4765_v31 = vmul.f32 %v4733_v25, %v4701_v56  ;;  %v4286_v43 = vadd.f32 -0.28449672, %v4254_v12  ;;  %v4000_v32 = vmul.f32 0.3275911, %v3968_v23  ;;  %v2949_v61 = vsel %vm2297_vm15, %v2946_v14, %v2948_v48 }
 0x3c1   : > { %v4416_v11 = vsub.f32 0.0, %v3968_v23  ;;  %v2672_v5 = vadd.f32 %v2581_v33, %v2423_v54  ;;  %v3456_v13 = vmul.f32 %v7923_v29, %v3328_v4  ;;  %v3704_v27 = vmul.f32 %v7940_v45, %v3328_v4 }
 0x3c2   : > { %5400 = vmatmul.mubr.f32.gmra.mxu1 %v4765_v31  ;;  %v4318_v16 = vmul.f32 %v8222_v62, %v4286_v43  ;;  %v4032_v39 = vadd.f32 1.0, %v4000_v32  ;;  %v3197_v56 = vsel %vm2546_vm1, %v3194_v10, %v3196_v38  ;;  %v2222_v28 = vmul.f32 %v7836_v9, %v8061_v46 }
 0x3c3   : > { %v2792_v63 = vadd.f32 %v2760_v19, %v2672_v5  ;;  %v3377_v14 = vmul.f32 %v7954_v18, %v8198_v37  ;;  %v2143_v22 = vmul.f32 %v7829_v20, %v8061_v46  ;;  %v8278_v15 = vmul.f32 %v7836_v9, %v8066_v0 }
 0x3c4   : > { %v4350_v57 = vadd.f32 0.2548296, %v4318_v16  ;;  %5758 = vrcp.f32 %v4032_v39  ;;  %v3565_v55 = vrot.slane %v3456_v13, 1  ;;  %v2333_v10 = vrot.slane %v2222_v28, 1 }
 0x3c5   : > { %v8280_v52 = vpop.eup %5752  ;;  %vm4606_vm2 = vcmp.ge.f32.partialorder %v8123_v59, 0.0  ;;  %v4448_v51 = vmul.f32 %v4416_v11, %v3968_v23  ;;  %v3040_v35 = vadd.f32 %v2949_v61, %v2792_v63  ;;  %v3813_v60 = vrot.slane %v3704_v27, 2  ;;  %v8318_v11 = vld [vmem:[#allocation2 + $0xd8] sm:$0xff] }
 0x3c6   : > { %v4127_v6 = vmul.f32 1.0614054, %v8280_v52  ;;  %v4382_v47 = vmul.f32 %v8222_v62, %v4350_v57  ;;  %v3566_v24 = vsel %vm2297_vm15, %v3563_v58, %v3565_v55  ;;  %v2334_v34 = vrot.slane %v8278_v15, 1 }
 0x3c7   : > { %v2471_v40 = vmul.f32 %v7852_v1, %v8061_v46  ;;  %v5755_v2 = vpop.eup %5754  ;;  %v3288_v7 = vadd.f32 %v3197_v56, %v3040_v35  ;;  %v3814_v25 = vsel %vm2546_vm1, %v3811_v8, %v3813_v60  ;;  %v8296_v12 = vmul.f32 %v7852_v1, %v8066_v0 }
 0x3c8   : > { %v4159_v44 = vadd.f32 -1.4531521, %v4127_v6  ;;  %v4542_v62 = vmul.f32 %v5755_v2, %v4382_v47  ;;  %v2335_v53 = vsel %vm2297_vm15, %v2333_v10, %v2334_v34  ;;  %v2840_v46 = vmul.f32 %v7869_v3, %v8191_v26 }
 0x3c9   : > { %v2582_v58 = vrot.slane %v2471_v40, 2  ;;  %v3409_v48 = vadd.f32 %v3377_v14, %v3288_v7  ;;  %v2424_v4 = vadd.f32 %v2335_v53, %v2143_v22  ;;  %v2583_v49 = vrot.slane %v8296_v12, 2  ;;  %v8327_v14 = vld [vmem:[#allocation2 + $0xe0] sm:$0xff] }
 0x3ca   : > { %v4191_v23 = vmul.f32 %v8280_v52, %v4159_v44  ;;  %v5757_v8 = vpop.eup %5756  ;;  %v4574_v54 = vsub.f32 1.0, %v4542_v62  ;;  %v8307_v33 = vmul.f32 %v7869_v3, %v8198_v37  ;;  %v2950_v19 = vrot.slane %v2840_v46, 1 }
 0x3cb   : > { %v3088_v38 = vmul.f32 %v7883_v42, %v8191_v26  ;;  %v3657_v43 = vadd.f32 %v3566_v24, %v3409_v48  ;;  %v2584_v32 = vsel %vm2546_vm1, %v2582_v58, %v2583_v49  ;;  %v8316_v61 = vmul.f32 %v7883_v42, %v8198_v37  ;;  %v2097_v48 = vld [vmem:[#allocation2 + $0xb8] sm:$0x3] }
 0x3cc   : > { %v4223_v31 = vadd.f32 1.4214138, %v4191_v23  ;;  %v4638_v5 = vsub.f32 0.0, %v4574_v54  ;;  %v2673_v13 = vadd.f32 %v2584_v32, %v2424_v4  ;;  %v2761_v27 = vmul.f32 %v7907_v30, %v8191_v26 }
 0x3cd   : > { %v2951_v16 = vrot.slane %v8307_v33, 1  ;;  %v8324_v56 = vadd.f32 %v3814_v25, %v3657_v43  ;;  %v3198_v28 = vrot.slane %v3088_v38, 2  ;;  %v3199_v63 = vrot.slane %v8316_v61, 2  ;;  %v8412_v33 = vld [vmem:[%s9711_s4] ss:$0 sm:$0xff] }
 0x3ce   : > { %v4255_v39 = vmul.f32 %v8280_v52, %v4223_v31  ;;  %v4670_v22 = vsel %vm4606_vm2, %v4574_v54, %v4638_v5  ;;  %v4492_v57 = vmul.f32 1.442695, %v4448_v51  ;;  %v2793_v55 = vadd.f32 %v2761_v27, %v2673_v13 }
 0x3cf   : > { %v3457_v10 = vmul.f32 %v7923_v29, %v8318_v11  ;;  %v4734_v6 = vadd.f32 1.0, %v4670_v22  ;;  %v8334_v60 = vmul.f32 0.70710677, %v8324_v56  ;;  %v2952_v47 = vsel %vm2297_vm15, %v2950_v19, %v2951_v16 }
 0x3d0   : > { %v4287_v35 = vadd.f32 -0.28449672, %v4255_v39  ;;  %v3041_v24 = vadd.f32 %v2952_v47, %v2793_v55  ;;  %v3378_v40 = vmul.f32 %v7954_v18, %v8318_v11  ;;  %v8343_v59 = vmul.f32 %v7923_v29, %v8327_v14 }
 0x3d1   : > { %v3567_v51 = vrot.slane %v3457_v10, 1  ;;  %v8345_v2 = vpop.eup %5758  ;;  %v4766_v44 = vmul.f32 %v4734_v6, %v8244_v36  ;;  %v3969_v25 = vand.u32 2147483647, %v8334_v60  ;;  %v3200_v62 = vsel %vm2546_vm1, %v3198_v28, %v3199_v63 }
 0x3d2   : > { %v4319_v7 = vmul.f32 %v8280_v52, %v4287_v35  ;;  %v4128_v53 = vmul.f32 1.0614054, %v8345_v2  ;;  %v3289_v58 = vadd.f32 %v3200_v62, %v3041_v24  ;;  %v3568_v46 = vrot.slane %v8343_v59, 1 }
 0x3d3   : > { %v3705_v23 = vmul.f32 %v7940_v45, %v8318_v11  ;;  %5402 = vmatprep.mubr.f32.mxu1 %v4766_v44  ;;  %v4001_v36 = vmul.f32 0.3275911, %v3969_v25  ;;  %v4417_v54 = vsub.f32 0.0, %v3969_v25  ;;  %v8359_v19 = vmul.f32 %v7940_v45, %v8327_v14 }
 0x3d4   : > { %v4351_v4 = vadd.f32 0.2548296, %v4319_v7  ;;  %v4160_v38 = vadd.f32 -1.4531521, %v4128_v53  ;;  %v3410_v31 = vadd.f32 %v3378_v40, %v3289_v58  ;;  %v3569_v43 = vsel %vm2297_vm15, %v3567_v51, %v3568_v46  ;;  %v2714_v40 = vld [vmem:[#allocation2 + $0xd0] sm:$0x3] }
 0x3d5   : > { %v3815_v32 = vrot.slane %v3705_v23, 2  ;;  %v4033_v13 = vadd.f32 1.0, %v4001_v36  ;;  %v4449_v27 = vmul.f32 %v4417_v54, %v3969_v25  ;;  %v3816_v39 = vrot.slane %v8359_v19, 2  ;;  %v3331_v58 = vld [vmem:[#allocation2 + $0xe8] sm:$0x3] }
 0x3d6   : > { %v4383_v5 = vmul.f32 %v8280_v52, %v4351_v4  ;;  %v4192_v28 = vmul.f32 %v8345_v2, %v4160_v38  ;;  %5760 = vpow2.f32 %v4492_v57  ;;  %v3658_v22 = vadd.f32 %v3569_v43, %v3410_v31 }
 0x3d7   : > { %v2224_v55 = vmul.f32 %v7836_v9, %v2097_v48  ;;  %5762 = vrcp.f32 %v4033_v13  ;;  %v3817_v6 = vsel %vm2546_vm1, %v3815_v32, %v3816_v39  ;;  %v2473_v24 = vmul.f32 %v7852_v1, %v2097_v48 }
 0x3d8   : > { %v4543_v10 = vmul.f32 %v5757_v8, %v4383_v5  ;;  %v4224_v35 = vadd.f32 1.4214138, %v4192_v28  ;;  %v8371_v47 = vadd.f32 %v3817_v6, %v3658_v22  ;;  %v4703_v44 = vmul.f32 0.5, %v8179_v17 }
 0x3d9   : > { %v2336_v52 = vrot.slane %v2224_v55, 1  ;;  %v4494_v57 = vmul.f32 1.442695, %v4449_v27  ;;  %v2144_v9 = vmul.f32 %v7829_v20, %v8066_v0  ;;  %vm4607_vm3 = vcmp.ge.f32.partialorder %v8195_v41, 0.0 }
 0x3da   : > { %v4575_v51 = vsub.f32 1.0, %v4543_v10  ;;  %v4256_v8 = vmul.f32 %v8345_v2, %v4224_v35  ;;  %v8380_v7 = vmul.f32 0.70710677, %v8371_v47  ;;  %v2585_v53 = vrot.slane %v2473_v24, 2 }
 0x3db   : > { %v2337_v25 = vsel %vm2297_vm15, %v2334_v34, %v2336_v52  ;;  %v2842_v17 = vmul.f32 %v7869_v3, %v2714_v40  ;;  %v8387_v20 = vmul.f32 0.5, %v8238_v21  ;;  %v3090_v41 = vmul.f32 %v7883_v42, %v2714_v40  ;;  %v8435_v52 = vld [vmem:[%s9711_s4 + $0x2] ss:$0 sm:$0xff] }
 0x3dc   : > { %v4639_v1 = vsub.f32 0.0, %v4575_v51  ;;  %v2425_v62 = vadd.f32 %v2337_v25, %v2144_v9  ;;  %v4288_v23 = vadd.f32 -0.28449672, %v4256_v8  ;;  %v3970_v0 = vand.u32 2147483647, %v8380_v7 }
 0x3dd   : > { %5764 = vpow2.f32 %v4494_v57  ;;  %v2586_v15 = vsel %vm2546_vm1, %v2583_v49, %v2585_v53  ;;  %v2762_v34 = vmul.f32 %v7907_v30, %v8198_v37  ;;  %v2953_v38 = vrot.slane %v2842_v17, 1 }
 0x3de   : > { %v4671_v48 = vsel %vm4607_vm3, %v4575_v51, %v4639_v1  ;;  %v4320_v3 = vmul.f32 %v8345_v2, %v4288_v23  ;;  %v4002_v36 = vmul.f32 0.3275911, %v3970_v0  ;;  %v4418_v54 = vsub.f32 0.0, %v3970_v0 }
 0x3df   : > { %v4735_v4 = vadd.f32 1.0, %v4671_v48  ;;  %v2674_v21 = vadd.f32 %v2586_v15, %v2425_v62  ;;  %v3459_v31 = vmul.f32 %v7923_v29, %v3331_v58  ;;  %v3707_v42 = vmul.f32 %v7940_v45, %v3331_v58  ;;  %v8452_v62 = vld [vmem:[%s9711_s4 + $0x4] ss:$0 sm:$0xff]  ;;  %v8466_v58 = vld [vmem:[%s9711_s4 + $0x5] ss:$0 sm:$0xff] }
 0x3e0   : > { %v4352_v32 = vadd.f32 0.2548296, %v4320_v3  ;;  %v4034_v5 = vadd.f32 1.0, %v4002_v36  ;;  %v3201_v12 = vrot.slane %v3090_v41, 2  ;;  %vm4608_vm4 = vcmp.ge.f32.partialorder %v8247_v50, 0.0 }
 0x3e1   : > { %v4767_v43 = vmul.f32 %v4735_v4, %v4703_v44  ;;  %v4450_v49 = vmul.f32 %v4418_v54, %v3970_v0  ;;  %v2794_v13 = vadd.f32 %v2762_v34, %v2674_v21  ;;  %v2954_v30 = vsel %vm2297_vm15, %v2951_v16, %v2953_v38  ;;  %v8419_v16 = vld [vmem:[%s9711_s4 + $0x1] ss:$0 sm:$0xff]  ;;  %v8490_v50 = vld [vmem:[%s9711_s4 + $0x3] ss:$0 sm:$0xff] }
 0x3e2   : > { %v3379_v27 = vmul.f32 %v7954_v18, %v8327_v14  ;;  %v4384_v29 = vmul.f32 %v8345_v2, %v4352_v32  ;;  %5766 = vrcp.f32 %v4034_v5  ;;  %v3202_v45 = vsel %vm2546_vm1, %v3199_v63, %v3201_v12  ;;  %v8485_v32 = vld [vmem:[#allocation2 + $0xf8] sm:$0xff] }
 0x3e3   : > { %5403 = vmatmul.mubr.f32.gmra.mxu1 %v4767_v43  ;;  %v3570_v28 = vrot.slane %v3459_v31, 1  ;;  %v5761_v22 = vpop.eup %5760  ;;  %v3042_v55 = vadd.f32 %v2954_v30, %v2794_v13  ;;  %v3818_v10 = vrot.slane %v3707_v42, 2  ;;  %v2145_v18 = vmul.f32 %v8412_v33, %v8191_v26  ;;  %v8483_v43 = vld [vmem:[#allocation2 + $0xf0] sm:$0xff] }
 0x3e4   : > { %v2225_v61 = vmul.f32 %v8419_v16, %v8191_v26  ;;  %v8423_v63 = vpop.eup %5762  ;;  %v4544_v2 = vmul.f32 %v5761_v22, %v4384_v29  ;;  %v8430_v35 = vmul.f32 %v8419_v16, %v8198_v37  ;;  %v2474_v24 = vmul.f32 %v8435_v52, %v8191_v26 }
 0x3e5   : > { %v3571_v6 = vsel %vm2297_vm15, %v3568_v46, %v3570_v28  ;;  %v4129_v40 = vmul.f32 1.0614054, %v8423_v63  ;;  %v3290_v51 = vadd.f32 %v3202_v45, %v3042_v55  ;;  %v8442_v59 = vmul.f32 %v8435_v52, %v8198_v37  ;;  %v8506_v55 = vld [vmem:[%s9711_s4 + $0x7] ss:$0 sm:$0xff] }
 0x3e6   : > { %v2338_v44 = vrot.slane %v2225_v61, 1  ;;  %v4576_v46 = vsub.f32 1.0, %v4544_v2  ;;  %v3819_v57 = vsel %vm2546_vm1, %v3816_v39, %v3818_v10  ;;  %v2339_v9 = vrot.slane %v8430_v35, 1 }
 0x3e7   : > { %v2587_v8 = vrot.slane %v2474_v24, 2  ;;  %v4161_v25 = vadd.f32 -1.4531521, %v4129_v40  ;;  %v3411_v1 = vadd.f32 %v3379_v27, %v3290_v51  ;;  %v2588_v26 = vrot.slane %v8442_v59, 2 }
 0x3e8   : > { %v2843_v53 = vmul.f32 %v8452_v62, %v8318_v11  ;;  %v4640_v17 = vsub.f32 0.0, %v4576_v46  ;;  %v2340_v19 = vsel %vm2297_vm15, %v2338_v44, %v2339_v9  ;;  %v8461_v39 = vmul.f32 %v8452_v62, %v8327_v14 }
 0x3e9   : > { %v3091_v23 = vmul.f32 %v8466_v58, %v8318_v11  ;;  %v4193_v0 = vmul.f32 %v8423_v63, %v4161_v25  ;;  %v3659_v41 = vadd.f32 %v3571_v6, %v3411_v1  ;;  %v2426_v48 = vadd.f32 %v2340_v19, %v2145_v18  ;;  %v8523_v6 = vld [vmem:[%s9711_s4 + $0x8] ss:$0 sm:$0xff] }
 0x3ea   : > { %v2589_v15 = vsel %vm2546_vm1, %v2587_v8, %v2588_v26  ;;  %v5765_v34 = vpop.eup %5764  ;;  %v4672_v4 = vsel %vm4608_vm4, %v4576_v46, %v4640_v17  ;;  %v2955_v3 = vrot.slane %v2843_v53, 1  ;;  %v2956_v36 = vrot.slane %v8461_v39, 1  ;;  %v2100_v53 = vld [vmem:[#allocation2 + $0xd0] sm:$0x3] }
 0x3eb   : > { %v8479_v54 = vmul.f32 %v8466_v58, %v8327_v14  ;;  %v4736_v21 = vadd.f32 1.0, %v4672_v4  ;;  %v4225_v38 = vadd.f32 1.4214138, %v4193_v0  ;;  %v8481_v31 = vadd.f32 %v3819_v57, %v3659_v41 }
 0x3ec   : > { %v2675_v42 = vadd.f32 %v2589_v15, %v2426_v48  ;;  %v2763_v5 = vmul.f32 %v8490_v50, %v8318_v11  ;;  %v3203_v12 = vrot.slane %v3091_v23, 2  ;;  %v4496_v29 = vmul.f32 1.442695, %v4450_v49  ;;  %v8537_v23 = vld [vmem:[%s9711_s4 + $0x6] ss:$0 sm:$0xff] }
 0x3ed   : > { %v3204_v13 = vrot.slane %v8479_v54, 2  ;;  %v4768_v30 = vmul.f32 %v4736_v21, %v8387_v20  ;;  %v4257_v27 = vmul.f32 %v8423_v63, %v4225_v38  ;;  %v8498_v45 = vmul.f32 0.70710677, %v8481_v31 }
 0x3ee   : > { %v2795_v28 = vadd.f32 %v2763_v5, %v2675_v42  ;;  %v2957_v22 = vsel %vm2297_vm15, %v2955_v3, %v2956_v36  ;;  %v3460_v10 = vmul.f32 %v8506_v55, %v8483_v43  ;;  %v8512_v20 = vmul.f32 %v8506_v55, %v8485_v32  ;;  %v2717_v42 = vld [vmem:[#allocation2 + $0xe8] sm:$0x3] }
 0x3ef   : > { %v8514_v49 = vpop.eup %5766  ;;  %5405 = vmatprep.mubr.f32.mxu1 %v4768_v30  ;;  %v4289_v18 = vadd.f32 -0.28449672, %v4257_v27  ;;  %v3971_v61 = vand.u32 2147483647, %v8498_v45  ;;  %v3205_v2 = vsel %vm2546_vm1, %v3203_v12, %v3204_v13  ;;  %v3708_v24 = vmul.f32 %v8523_v6, %v8483_v43 }
 0x3f0   : > { %v4130_v40 = vmul.f32 1.0614054, %v8514_v49  ;;  %v3043_v51 = vadd.f32 %v2957_v22, %v2795_v28  ;;  %v3572_v44 = vrot.slane %v3460_v10, 1  ;;  %v3573_v46 = vrot.slane %v8512_v20, 1 }
 0x3f1   : > { %v4321_v57 = vmul.f32 %v8423_v63, %v4289_v18  ;;  %v4003_v8 = vmul.f32 0.3275911, %v3971_v61  ;;  %v4419_v25 = vsub.f32 0.0, %v3971_v61  ;;  %v8532_v1 = vmul.f32 %v8523_v6, %v8485_v32 }
 0x3f2   : > { %v4162_v17 = vadd.f32 -1.4531521, %v4130_v40  ;;  %v3291_v19 = vadd.f32 %v3205_v2, %v3043_v51  ;;  %v3380_v0 = vmul.f32 %v8537_v23, %v8483_v43  ;;  %v3820_v15 = vrot.slane %v3708_v24, 2 }
 0x3f3   : > { %v4353_v41 = vadd.f32 0.2548296, %v4321_v57  ;;  %v4035_v48 = vadd.f32 1.0, %v4003_v8  ;;  %v3821_v4 = vrot.slane %v8532_v1, 2  ;;  %5768 = vpow2.f32 %v4496_v29 }
 0x3f4   : > { %v4194_v3 = vmul.f32 %v8514_v49, %v4162_v17  ;;  %v3412_v21 = vadd.f32 %v3380_v0, %v3291_v19  ;;  %v2227_v38 = vmul.f32 %v8419_v16, %v2100_v53  ;;  %v4451_v12 = vmul.f32 %v4419_v25, %v3971_v61  ;;  %v3334_v19 = vld [vmem:[#allocation2 + $0x100] sm:$0x3] }
 0x3f5   : > { %v4385_v5 = vmul.f32 %v8423_v63, %v4353_v41  ;;  %5770 = vrcp.f32 %v4035_v48  ;;  %v3574_v30 = vsel %vm2297_vm15, %v3572_v44, %v3573_v46  ;;  %v2476_v10 = vmul.f32 %v8435_v52, %v2100_v53 }
 0x3f6   : > { %v4226_v27 = vadd.f32 1.4214138, %v4194_v3  ;;  %v3660_v28 = vadd.f32 %v3574_v30, %v3412_v21  ;;  %v2341_v22 = vrot.slane %v2227_v38, 1  ;;  %v3822_v29 = vsel %vm2546_vm1, %v3820_v15, %v3821_v4 }
 0x3f7   : > { %v4545_v18 = vmul.f32 %v5765_v34, %v4385_v5  ;;  %v2146_v2 = vmul.f32 %v8412_v33, %v8198_v37  ;;  %v2845_v63 = vmul.f32 %v8452_v62, %v2717_v42  ;;  %v2590_v51 = vrot.slane %v2476_v10, 2 }
 0x3f8   : > { %v4258_v61 = vmul.f32 %v8514_v49, %v4226_v27  ;;  %v8556_v24 = vadd.f32 %v3822_v29, %v3660_v28  ;;  %v2342_v40 = vsel %vm2297_vm15, %v2339_v9, %v2341_v22  ;;  %v4705_v34 = vmul.f32 0.5, %v8324_v56 }
 0x3f9   : > { %v4577_v44 = vsub.f32 1.0, %v4545_v18  ;;  %v4498_v57 = vmul.f32 1.442695, %v4451_v12  ;;  %v2427_v8 = vadd.f32 %v2342_v40, %v2146_v2  ;;  %v2591_v37 = vsel %vm2546_vm1, %v2588_v26, %v2590_v51 }
 0x3fa   : > { %v4290_v25 = vadd.f32 -0.28449672, %v4258_v61  ;;  %v8563_v53 = vmul.f32 0.70710677, %v8556_v24  ;;  %v3093_v17 = vmul.f32 %v8466_v58, %v2717_v42  ;;  %v2764_v9 = vmul.f32 %v8490_v50, %v8327_v14 }
 0x3fb   : > { %v4641_v35 = vsub.f32 0.0, %v4577_v44  ;;  %v2676_v0 = vadd.f32 %v2591_v37, %v2427_v8  ;;  %v2958_v41 = vrot.slane %v2845_v63, 1  ;;  %vm4609_vm5 = vcmp.ge.f32.partialorder %v8334_v60, 0.0 }
 0x3fc   : > { %v4322_v56 = vmul.f32 %v8514_v49, %v4290_v25  ;;  %v8574_v48 = vmul.f32 0.5, %v8371_v47  ;;  %v3972_v59 = vand.u32 2147483647, %v8563_v53  ;;  %v3462_v21 = vmul.f32 %v8506_v55, %v3334_v19 }
 0x3fd   : > { %v4673_v15 = vsel %vm4609_vm5, %v4577_v44, %v4641_v35  ;;  %v2796_v26 = vadd.f32 %v2764_v9, %v2676_v0  ;;  %v2959_v3 = vsel %vm2297_vm15, %v2956_v36, %v2958_v41  ;;  %v3206_v12 = vrot.slane %v3093_v17, 2 }
 0x3fe   : > { %v4737_v38 = vadd.f32 1.0, %v4673_v15  ;;  %v4354_v42 = vadd.f32 0.2548296, %v4322_v56  ;;  %v4004_v5 = vmul.f32 0.3275911, %v3972_v59  ;;  %vm4610_vm6 = vcmp.ge.f32.partialorder %v8380_v7, 0.0 }
 0x3ff   : > { %5772 = vpow2.f32 %v4498_v57  ;;  %v3044_v60 = vadd.f32 %v2959_v3, %v2796_v26  ;;  %v3381_v47 = vmul.f32 %v8537_v23, %v8485_v32  ;;  %v3710_v30 = vmul.f32 %v8523_v6, %v3334_v19 }
 0x400   : > { %v4769_v27 = vmul.f32 %v4737_v38, %v4705_v34  ;;  %v4386_v39 = vmul.f32 %v8514_v49, %v4354_v42  ;;  %v4036_v28 = vadd.f32 1.0, %v4004_v5  ;;  %v3207_v36 = vsel %vm2546_vm1, %v3204_v13, %v3206_v12  ;;  %v5769_v22 = vpop.eup %5768 }
 0x401   : > { %v4420_v10 = vsub.f32 0.0, %v3972_v59  ;;  %v3292_v18 = vadd.f32 %v3207_v36, %v3044_v60  ;;  %v3575_v29 = vrot.slane %v3462_v21, 1  ;;  %v2228_v2 = vmul.f32 %v8419_v16, %v8318_v11 }
 0x402   : > { %v8591_v63 = vpop.eup %5770  ;;  %5406 = vmatmul.mubr.f32.gmra.mxu1 %v4769_v27  ;;  %v4546_v61 = vmul.f32 %v5769_v22, %v4386_v39  ;;  %5774 = vrcp.f32 %v4036_v28  ;;  %v2147_v49 = vmul.f32 %v8412_v33, %v8318_v11  ;;  %v8597_v54 = vmul.f32 %v8419_v16, %v8327_v14  ;;  %v8649_v28 = vld [vmem:[#allocation2 + $0x110] sm:$0xff] }
 0x403   : > { %v4131_v13 = vmul.f32 1.0614054, %v8591_v63  ;;  %v3413_v40 = vadd.f32 %v3381_v47, %v3292_v18  ;;  %v3823_v51 = vrot.slane %v3710_v30, 2  ;;  %v2343_v44 = vrot.slane %v2228_v2, 1  ;;  %v8644_v47 = vld [vmem:[#allocation2 + $0x108] sm:$0xff] }
 0x404   : > { %v4578_v34 = vsub.f32 1.0, %v4546_v61  ;;  %v3576_v57 = vsel %vm2297_vm15, %v3573_v46, %v3575_v29  ;;  %v2344_v8 = vrot.slane %v8597_v54, 1  ;;  %v2477_v25 = vmul.f32 %v8435_v52, %v8318_v11 }
 0x405   : > { %v4163_v37 = vadd.f32 -1.4531521, %v4131_v13  ;;  %v3661_v17 = vadd.f32 %v3576_v57, %v3413_v40  ;;  %v3824_v19 = vsel %vm2546_vm1, %v3821_v4, %v3823_v51  ;;  %v8611_v35 = vmul.f32 %v8435_v52, %v8327_v14 }
 0x406   : > { %v4642_v0 = vsub.f32 0.0, %v4578_v34  ;;  %v2345_v20 = vsel %vm2297_vm15, %v2343_v44, %v2344_v8  ;;  %v2592_v46 = vrot.slane %v2477_v25, 2  ;;  %v2846_v9 = vmul.f32 %v8452_v62, %v8483_v43 }
 0x407   : > { %v4195_v11 = vmul.f32 %v8591_v63, %v4163_v37  ;;  %v4452_v41 = vmul.f32 %v4420_v10, %v3972_v59  ;;  %v8619_v56 = vadd.f32 %v3824_v19, %v3661_v17  ;;  %v2593_v1 = vrot.slane %v8611_v35, 2 }
 0x408   : > { %v4674_v4 = vsel %vm4610_vm6, %v4578_v34, %v4642_v0  ;;  %v2428_v15 = vadd.f32 %v2345_v20, %v2147_v49  ;;  %v8626_v26 = vmul.f32 %v8452_v62, %v8485_v32  ;;  %v3094_v3 = vmul.f32 %v8466_v58, %v8483_v43 }
 0x409   : > { %v4738_v21 = vadd.f32 1.0, %v4674_v4  ;;  %v4227_v38 = vadd.f32 1.4214138, %v4195_v11  ;;  %v8631_v42 = vmul.f32 0.5, %v8481_v31  ;;  %v8634_v59 = vmul.f32 0.70710677, %v8619_v56 }
 0x40a   : > { %v2594_v7 = vsel %vm2546_vm1, %v2592_v46, %v2593_v1  ;;  %v2960_v5 = vrot.slane %v2846_v9, 1  ;;  %v2961_v12 = vrot.slane %v8626_v26, 1  ;;  %v8642_v60 = vmul.f32 %v8466_v58, %v8485_v32  ;;  %v2103_v9 = vld [vmem:[#allocation2 + $0xe8] sm:$0x3] }
 0x40b   : > { %v4770_v30 = vmul.f32 %v4738_v21, %v8574_v48  ;;  %v4259_v31 = vmul.f32 %v8591_v63, %v4227_v38  ;;  %v3973_v27 = vand.u32 2147483647, %v8634_v59  ;;  %v3208_v39 = vrot.slane %v3094_v3, 2 }
 0x40c   : > { %v5773_v36 = vpop.eup %5772  ;;  %v4500_v22 = vmul.f32 1.442695, %v4452_v41  ;;  %v2677_v10 = vadd.f32 %v2594_v7, %v2428_v15  ;;  %v2765_v18 = vmul.f32 %v8490_v50, %v8483_v43  ;;  %v3209_v29 = vrot.slane %v8642_v60, 2 }
 0x40d   : > { %5408 = vmatprep.mubr.f32.mxu1 %v4770_v30  ;;  %v4291_v2 = vadd.f32 -0.28449672, %v4259_v31  ;;  %v4005_v61 = vmul.f32 0.3275911, %v3973_v27  ;;  %v4421_v49 = vsub.f32 0.0, %v3973_v27  ;;  %v3463_v48 = vmul.f32 %v8506_v55, %v8644_v47 }
 0x40e   : > { %v2797_v13 = vadd.f32 %v2765_v18, %v2677_v10  ;;  %v2962_v40 = vsel %vm2297_vm15, %v2960_v5, %v2961_v12  ;;  %v8661_v51 = vmul.f32 %v8506_v55, %v8649_v28  ;;  %v3711_v44 = vmul.f32 %v8523_v6, %v8644_v47  ;;  %v2720_v30 = vld [vmem:[#allocation2 + $0x100] sm:$0x3] }
 0x40f   : > { %v8665_v34 = vpop.eup %5774  ;;  %v4323_v57 = vmul.f32 %v8591_v63, %v4291_v2  ;;  %v4037_v25 = vadd.f32 1.0, %v4005_v61  ;;  %v3210_v37 = vsel %vm2546_vm1, %v3208_v39, %v3209_v29  ;;  %v3382_v17 = vmul.f32 %v8537_v23, %v8644_v47 }
 0x410   : > { %v4132_v19 = vmul.f32 1.0614054, %v8665_v34  ;;  %v4453_v0 = vmul.f32 %v4421_v49, %v3973_v27  ;;  %v3045_v20 = vadd.f32 %v2962_v40, %v2797_v13  ;;  %v8676_v46 = vmul.f32 %v8523_v6, %v8649_v28  ;;  %v3337_v40 = vld [vmem:[#allocation2 + $0x118] sm:$0x3] }
 0x411   : > { %v4355_v11 = vadd.f32 0.2548296, %v4323_v57  ;;  %5776 = vrcp.f32 %v4037_v25  ;;  %v3577_v41 = vrot.slane %v3463_v48, 1  ;;  %v3578_v4 = vrot.slane %v8661_v51, 1 }
 0x412   : > { %v4164_v15 = vadd.f32 -1.4531521, %v4132_v19  ;;  %v3293_v3 = vadd.f32 %v3210_v37, %v3045_v20  ;;  %v3825_v21 = vrot.slane %v3711_v44, 2  ;;  %v3826_v38 = vrot.slane %v8676_v46, 2 }
 0x413   : > { %v4387_v7 = vmul.f32 %v8591_v63, %v4355_v11  ;;  %vm4611_vm7 = vcmp.ge.f32.partialorder %v8498_v45, 0.0  ;;  %5778 = vpow2.f32 %v4500_v22  ;;  %v2230_v5 = vmul.f32 %v8419_v16, %v2103_v9 }
 0x414   : > { %v4196_v31 = vmul.f32 %v8665_v34, %v4164_v15  ;;  %v4502_v27 = vmul.f32 1.442695, %v4453_v0  ;;  %v3414_v39 = vadd.f32 %v3382_v17, %v3293_v3  ;;  %v2479_v10 = vmul.f32 %v8435_v52, %v2103_v9 }
 0x415   : > { %v4547_v18 = vmul.f32 %v5773_v36, %v4387_v7  ;;  %v3579_v2 = vsel %vm2297_vm15, %v3577_v41, %v3578_v4  ;;  %v2148_v61 = vmul.f32 %v8412_v33, %v8327_v14  ;;  %v2346_v49 = vrot.slane %v2230_v5, 1 }
 0x416   : > { %v4228_v63 = vadd.f32 1.4214138, %v4196_v31  ;;  %v3662_v48 = vadd.f32 %v3579_v2, %v3414_v39  ;;  %v3827_v22 = vsel %vm2546_vm1, %v3825_v21, %v3826_v38  ;;  %v2848_v13 = vmul.f32 %v8452_v62, %v2720_v30 }
 0x417   : > { %v4579_v51 = vsub.f32 1.0, %v4547_v18  ;;  %v2347_v36 = vsel %vm2297_vm15, %v2344_v8, %v2346_v49  ;;  %v2595_v44 = vrot.slane %v2479_v10, 2  ;;  %v3096_v57 = vmul.f32 %v8466_v58, %v2720_v30 }
 0x418   : > { %v4260_v14 = vmul.f32 %v8665_v34, %v4228_v63  ;;  %5780 = vpow2.f32 %v4502_v27  ;;  %v8697_v25 = vadd.f32 %v3827_v22, %v3662_v48  ;;  %v2429_v37 = vadd.f32 %v2347_v36, %v2148_v61 }
 0x419   : > { %v4643_v17 = vsub.f32 0.0, %v4579_v51  ;;  %v2596_v19 = vsel %vm2546_vm1, %v2593_v1, %v2595_v44  ;;  %v2766_v0 = vmul.f32 %v8490_v50, %v8485_v32  ;;  %v3465_v54 = vmul.f32 %v8506_v55, %v3337_v40 }
 0x41a   : > { %v4292_v8 = vadd.f32 -0.28449672, %v4260_v14  ;;  %v8706_v20 = vmul.f32 0.70710677, %v8697_v25  ;;  %v2678_v9 = vadd.f32 %v2596_v19, %v2429_v37  ;;  %v2963_v11 = vrot.slane %v2848_v13, 1 }
 0x41b   : > { %v4675_v41 = vsel %vm4611_vm7, %v4579_v51, %v4643_v17  ;;  %v3211_v15 = vrot.slane %v3096_v57, 2  ;;  %v3580_v3 = vrot.slane %v3465_v54, 1  ;;  %v3713_v35 = vmul.f32 %v8523_v6, %v3337_v40 }
 0x41c   : > { %v4739_v21 = vadd.f32 1.0, %v4675_v41  ;;  %v4324_v1 = vmul.f32 %v8665_v34, %v4292_v8  ;;  %v3974_v7 = vand.u32 2147483647, %v8706_v20  ;;  %v3383_v5 = vmul.f32 %v8537_v23, %v8649_v28 }
 0x41d   : > { %v2798_v30 = vadd.f32 %v2766_v0, %v2678_v9  ;;  %v2964_v31 = vsel %vm2297_vm15, %v2961_v12, %v2963_v11  ;;  %v3212_v45 = vsel %vm2546_vm1, %v3209_v29, %v3211_v15  ;;  %v3581_v27 = vsel %vm2297_vm15, %v3578_v4, %v3580_v3 }
 0x41e   : > { %v8722_v39 = vpop.eup %5776  ;;  %v4771_v10 = vmul.f32 %v4739_v21, %v8631_v42  ;;  %v4356_v18 = vadd.f32 0.2548296, %v4324_v1  ;;  %v4006_v2 = vmul.f32 0.3275911, %v3974_v7  ;;  %v3828_v61 = vrot.slane %v3713_v35, 2 }
 0x41f   : > { %vm4612_vm8 = vcmp.ge.f32.partialorder %v8563_v53, 0.0  ;;  %v4133_v49 = vmul.f32 1.0614054, %v8722_v39  ;;  %v3046_v26 = vadd.f32 %v2964_v31, %v2798_v30  ;;  %v2149_v12 = vmul.f32 %v8412_v33, %v8483_v43  ;;  %v8781_v53 = vld [vmem:[#allocation2 + $0x128] sm:$0xff] }
 0x420   : > { %v2231_v60 = vmul.f32 %v8419_v16, %v8483_v43  ;;  %v5779_v29 = vpop.eup %5778  ;;  %5409 = vmatmul.mubr.f32.gmra.mxu1 %v4771_v10  ;;  %v4388_v4 = vmul.f32 %v8665_v34, %v4356_v18  ;;  %v4038_v63 = vadd.f32 1.0, %v4006_v2  ;;  %v4422_v42 = vsub.f32 0.0, %v3974_v7  ;;  %v8774_v10 = vld [vmem:[#allocation2 + $0x120] sm:$0xff] }
 0x421   : > { %v8734_v48 = vmul.f32 %v8419_v16, %v8485_v32  ;;  %v4165_v22 = vadd.f32 -1.4531521, %v4133_v49  ;;  %v3294_v13 = vadd.f32 %v3212_v45, %v3046_v26  ;;  %v2480_v51 = vmul.f32 %v8435_v52, %v8483_v43 }
 0x422   : > { %v2348_v40 = vrot.slane %v2231_v60, 1  ;;  %v4548_v36 = vmul.f32 %v5779_v29, %v4388_v4  ;;  %5782 = vrcp.f32 %v4038_v63  ;;  %v3829_v44 = vsel %vm2546_vm1, %v3826_v38, %v3828_v61 }
 0x423   : > { %v2349_v34 = vrot.slane %v8734_v48, 1  ;;  %v4197_v57 = vmul.f32 %v8722_v39, %v4165_v22  ;;  %v3415_v14 = vadd.f32 %v3383_v5, %v3294_v13  ;;  %v8745_v37 = vmul.f32 %v8435_v52, %v8485_v32 }
 0x424   : > { %v2597_v17 = vrot.slane %v2480_v51, 2  ;;  %v4580_v19 = vsub.f32 1.0, %v4548_v36  ;;  %v4454_v0 = vmul.f32 %v4422_v42, %v3974_v7  ;;  %v2767_v46 = vmul.f32 %v8490_v50, %v8644_v47 }
 0x425   : > { %v2350_v43 = vsel %vm2297_vm15, %v2348_v40, %v2349_v34  ;;  %v5781_v38 = vpop.eup %5780  ;;  %v4229_v54 = vadd.f32 1.4214138, %v4197_v57  ;;  %v3663_v8 = vadd.f32 %v3581_v27, %v3415_v14  ;;  %v2598_v11 = vrot.slane %v8745_v37, 2 }
 0x426   : > { %v2430_v9 = vadd.f32 %v2350_v43, %v2149_v12  ;;  %v4644_v41 = vsub.f32 0.0, %v4580_v19  ;;  %v2849_v15 = vmul.f32 %v8452_v62, %v8644_v47  ;;  %v8757_v3 = vmul.f32 %v8452_v62, %v8649_v28 }
 0x427   : > { %v3097_v35 = vmul.f32 %v8466_v58, %v8644_v47  ;;  %v4261_v21 = vmul.f32 %v8722_v39, %v4229_v54  ;;  %v8762_v1 = vadd.f32 %v3829_v44, %v3663_v8  ;;  %v2599_v7 = vsel %vm2546_vm1, %v2597_v17, %v2598_v11 }
 0x428   : > { %v8769_v5 = vmul.f32 %v8466_v58, %v8649_v28  ;;  %v4676_v30 = vsel %vm4612_vm8, %v4580_v19, %v4644_v41  ;;  %v2679_v31 = vadd.f32 %v2599_v7, %v2430_v9  ;;  %v2965_v45 = vrot.slane %v2849_v15, 1 }
 0x429   : > { %v2966_v27 = vrot.slane %v8757_v3, 1  ;;  %v4708_v18 = vmul.f32 0.5, %v8556_v24  ;;  %v4740_v2 = vadd.f32 1.0, %v4676_v30  ;;  %v4293_v61 = vadd.f32 -0.28449672, %v4261_v21 }
 0x42a   : > { %v8778_v49 = vmul.f32 0.70710677, %v8762_v1  ;;  %v4504_v26 = vmul.f32 1.442695, %v4454_v0  ;;  %v2799_v12 = vadd.f32 %v2767_v46, %v2679_v31  ;;  %v3213_v60 = vrot.slane %v3097_v35, 2 }
 0x42b   : > { %v3214_v29 = vrot.slane %v8769_v5, 2  ;;  %v4772_v4 = vmul.f32 %v4740_v2, %v4708_v18  ;;  %v4325_v63 = vmul.f32 %v8722_v39, %v4293_v61  ;;  %v2967_v24 = vsel %vm2297_vm15, %v2965_v45, %v2966_v27  ;;  %v2106_v30 = vld [vmem:[#allocation2 + $0x100] sm:$0x3]  ;;  %v2723_v18 = vld [vmem:[#allocation2 + $0x118] sm:$0x3] }
 0x42c   : > { %v3975_v42 = vand.u32 2147483647, %v8778_v49  ;;  %v3047_v22 = vadd.f32 %v2967_v24, %v2799_v12  ;;  %v3384_v40 = vmul.f32 %v8537_v23, %v8774_v10  ;;  %v3466_v51 = vmul.f32 %v8506_v55, %v8774_v10 }
 0x42d   : > { %v3215_v13 = vsel %vm2546_vm1, %v3213_v60, %v3214_v29  ;;  %5411 = vmatprep.mubr.f32.mxu1 %v4772_v4  ;;  %v4357_v36 = vadd.f32 0.2548296, %v4325_v63  ;;  %v8797_v14 = vmul.f32 %v8506_v55, %v8781_v53  ;;  %v3714_v0 = vmul.f32 %v8523_v6, %v8774_v10 }
 0x42e   : > { %v4007_v44 = vmul.f32 0.3275911, %v3975_v42  ;;  %v4423_v57 = vsub.f32 0.0, %v3975_v42  ;;  %v3295_v17 = vadd.f32 %v3215_v13, %v3047_v22  ;;  %v3582_v19 = vrot.slane %v3466_v51, 1 }
 0x42f   : > { %v8803_v43 = vmul.f32 %v8523_v6, %v8781_v53  ;;  %v8805_v46 = vpop.eup %5782  ;;  %v4389_v54 = vmul.f32 %v8722_v39, %v4357_v36  ;;  %v3583_v41 = vrot.slane %v8797_v14, 1  ;;  %v3830_v21 = vrot.slane %v3714_v0, 2 }
 0x430   : > { %v4039_v8 = vadd.f32 1.0, %v4007_v44  ;;  %v4455_v9 = vmul.f32 %v4423_v57, %v3975_v42  ;;  %v4134_v15 = vmul.f32 1.0614054, %v8805_v46  ;;  %v3416_v35 = vadd.f32 %v3384_v40, %v3295_v17 }
 0x431   : > { %v3831_v7 = vrot.slane %v8803_v43, 2  ;;  %v4549_v31 = vmul.f32 %v5781_v38, %v4389_v54  ;;  %v3584_v45 = vsel %vm2297_vm15, %v3582_v19, %v3583_v41  ;;  %v4709_v39 = vmul.f32 0.5, %v8619_v56 }
 0x432   : > { %5784 = vrcp.f32 %v4039_v8  ;;  %v4166_v2 = vadd.f32 -1.4531521, %v4134_v15  ;;  %v4506_v61 = vmul.f32 1.442695, %v4455_v9  ;;  %v3664_v12 = vadd.f32 %v3584_v45, %v3416_v35  ;;  %v3340_v8 = vld [vmem:[#allocation2 + $0x130] sm:$0x3] }
 0x433   : > { %v4581_v60 = vsub.f32 1.0, %v4549_v31  ;;  %v3832_v4 = vsel %vm2546_vm1, %v3830_v21, %v3831_v7  ;;  %v2233_v63 = vmul.f32 %v8419_v16, %v2106_v30  ;;  %v2482_v38 = vmul.f32 %v8435_v52, %v2106_v30 }
 0x434   : > { %v4198_v42 = vmul.f32 %v8805_v46, %v4166_v2  ;;  %5786 = vpow2.f32 %v4504_v26  ;;  %v8821_v24 = vadd.f32 %v3832_v4, %v3664_v12  ;;  %v2851_v22 = vmul.f32 %v8452_v62, %v2723_v18 }
 0x435   : > { %vm4613_vm9 = vcmp.ge.f32.partialorder %v8634_v59, 0.0  ;;  %v4645_v56 = vsub.f32 0.0, %v4581_v60  ;;  %v2351_v13 = vrot.slane %v2233_v63, 1  ;;  %v3099_v40 = vmul.f32 %v8466_v58, %v2723_v18 }
 0x436   : > { %v4230_v51 = vadd.f32 1.4214138, %v4198_v42  ;;  %v8827_v36 = vmul.f32 0.5, %v8697_v25  ;;  %v8830_v44 = vmul.f32 0.70710677, %v8821_v24  ;;  %v2150_v26 = vmul.f32 %v8412_v33, %v8485_v32 }
 0x437   : > { %v4677_v57 = vsel %vm4613_vm9, %v4581_v60, %v4645_v56  ;;  %5788 = vpow2.f32 %v4506_v61  ;;  %v2352_v59 = vsel %vm2297_vm15, %v2349_v34, %v2351_v13  ;;  %v2600_v17 = vrot.slane %v2482_v38, 2 }
 0x438   : > { %v4741_v19 = vadd.f32 1.0, %v4677_v57  ;;  %v4262_v0 = vmul.f32 %v8805_v46, %v4230_v51  ;;  %v3976_v54 = vand.u32 2147483647, %v8830_v44  ;;  %v2968_v25 = vrot.slane %v2851_v22, 1 }
 0x439   : > { %v2431_v9 = vadd.f32 %v2352_v59, %v2150_v26  ;;  %v2601_v15 = vsel %vm2546_vm1, %v2598_v11, %v2600_v17  ;;  %v2768_v32 = vmul.f32 %v8490_v50, %v8649_v28  ;;  %v3216_v35 = vrot.slane %v3099_v40, 2 }
 0x43a   : > { %v4773_v48 = vmul.f32 %v4741_v19, %v4709_v39  ;;  %v4294_v21 = vadd.f32 -0.28449672, %v4262_v0  ;;  %v4008_v34 = vmul.f32 0.3275911, %v3976_v54  ;;  %v2969_v30 = vsel %vm2297_vm15, %v2966_v27, %v2968_v25 }
 0x43b   : > { %v4424_v31 = vsub.f32 0.0, %v3976_v54  ;;  %v2680_v45 = vadd.f32 %v2601_v15, %v2431_v9  ;;  %v3468_v18 = vmul.f32 %v8506_v55, %v3340_v8  ;;  %v3716_v2 = vmul.f32 %v8523_v6, %v3340_v8 }
 0x43c   : > { %5412 = vmatmul.mubr.f32.gmra.mxu1 %v4773_v48  ;;  %v4326_v37 = vmul.f32 %v8805_v46, %v4294_v21  ;;  %v4040_v11 = vadd.f32 1.0, %v4008_v34  ;;  %v3217_v39 = vsel %vm2546_vm1, %v3214_v29, %v3216_v35  ;;  %v2234_v61 = vmul.f32 %v8419_v16, %v8644_v47 }
 0x43d   : > { %v2800_v3 = vadd.f32 %v2768_v32, %v2680_v45  ;;  %v3385_v27 = vmul.f32 %v8537_v23, %v8781_v53  ;;  %v2151_v12 = vmul.f32 %v8412_v33, %v8644_v47  ;;  %v8861_v60 = vmul.f32 %v8419_v16, %v8649_v28 }
 0x43e   : > { %v4358_v63 = vadd.f32 0.2548296, %v4326_v37  ;;  %5790 = vrcp.f32 %v4040_v11  ;;  %v3585_v5 = vrot.slane %v3468_v18, 1  ;;  %v2353_v29 = vrot.slane %v2234_v61, 1 }
 0x43f   : > { %v8863_v4 = vpop.eup %5784  ;;  %vm4614_vm10 = vcmp.ge.f32.partialorder %v8706_v20, 0.0  ;;  %v4456_v42 = vmul.f32 %v4424_v31, %v3976_v54  ;;  %v3048_v22 = vadd.f32 %v2969_v30, %v2800_v3  ;;  %v3833_v56 = vrot.slane %v3716_v2, 2  ;;  %v8901_v31 = vld [vmem:[#allocation2 + $0x138] sm:$0xff] }
 0x440   : > { %v4135_v38 = vmul.f32 1.0614054, %v8863_v4  ;;  %v4390_v13 = vmul.f32 %v8805_v46, %v4358_v63  ;;  %v3586_v40 = vsel %vm2297_vm15, %v3583_v41, %v3585_v5  ;;  %v2354_v51 = vrot.slane %v8861_v60, 1 }
 0x441   : > { %v2483_v26 = vmul.f32 %v8435_v52, %v8644_v47  ;;  %v5787_v57 = vpop.eup %5786  ;;  %v3296_v17 = vadd.f32 %v3217_v39, %v3048_v22  ;;  %v3834_v19 = vsel %vm2546_vm1, %v3831_v7, %v3833_v56  ;;  %v8879_v0 = vmul.f32 %v8435_v52, %v8649_v28 }
 0x442   : > { %v4167_v59 = vadd.f32 -1.4531521, %v4135_v38  ;;  %v4550_v46 = vmul.f32 %v5787_v57, %v4390_v13  ;;  %v2355_v14 = vsel %vm2297_vm15, %v2353_v29, %v2354_v51  ;;  %v2852_v47 = vmul.f32 %v8452_v62, %v8774_v10 }
 0x443   : > { %v2602_v41 = vrot.slane %v2483_v26, 2  ;;  %v3417_v25 = vadd.f32 %v3385_v27, %v3296_v17  ;;  %v2432_v8 = vadd.f32 %v2355_v14, %v2151_v12  ;;  %v2603_v43 = vrot.slane %v8879_v0, 2  ;;  %v8910_v27 = vld [vmem:[#allocation2 + $0x140] sm:$0xff] }
 0x444   : > { %v4199_v54 = vmul.f32 %v8863_v4, %v4167_v59  ;;  %v5789_v7 = vpop.eup %5788  ;;  %v4582_v9 = vsub.f32 1.0, %v4550_v46  ;;  %v8890_v15 = vmul.f32 %v8452_v62, %v8781_v53  ;;  %v2970_v32 = vrot.slane %v2852_v47, 1 }
 0x445   : > { %v3100_v35 = vmul.f32 %v8466_v58, %v8774_v10  ;;  %v3665_v21 = vadd.f32 %v3586_v40, %v3417_v25  ;;  %v2604_v34 = vsel %vm2546_vm1, %v2602_v41, %v2603_v43  ;;  %v8899_v30 = vmul.f32 %v8466_v58, %v8781_v53  ;;  %v2109_v25 = vld [vmem:[#allocation2 + $0x118] sm:$0x3] }
 0x446   : > { %v4231_v48 = vadd.f32 1.4214138, %v4199_v54  ;;  %v4646_v45 = vsub.f32 0.0, %v4582_v9  ;;  %v2681_v18 = vadd.f32 %v2604_v34, %v2432_v8  ;;  %v2769_v2 = vmul.f32 %v8490_v50, %v8774_v10 }
 0x447   : > { %v2971_v37 = vrot.slane %v8890_v15, 1  ;;  %v8907_v39 = vadd.f32 %v3834_v19, %v3665_v21  ;;  %v3218_v61 = vrot.slane %v3100_v35, 2  ;;  %v3219_v3 = vrot.slane %v8899_v30, 2  ;;  %v8995_v15 = vld [vmem:[%s9711_s4] ss:$0 sm:$0xff] }
 0x448   : > { %v4263_v11 = vmul.f32 %v8863_v4, %v4231_v48  ;;  %v4678_v12 = vsel %vm4614_vm10, %v4582_v9, %v4646_v45  ;;  %v4508_v63 = vmul.f32 1.442695, %v4456_v42  ;;  %v2801_v5 = vadd.f32 %v2769_v2, %v2681_v18 }
 0x449   : > { %v3469_v29 = vmul.f32 %v8506_v55, %v8901_v31  ;;  %v4742_v38 = vadd.f32 1.0, %v4678_v12  ;;  %v8917_v56 = vmul.f32 0.70710677, %v8907_v39  ;;  %v2972_v13 = vsel %vm2297_vm15, %v2970_v32, %v2971_v37 }
 0x44a   : > { %v4295_v22 = vadd.f32 -0.28449672, %v4263_v11  ;;  %v3049_v40 = vadd.f32 %v2972_v13, %v2801_v5  ;;  %v3386_v26 = vmul.f32 %v8537_v23, %v8901_v31  ;;  %v8926_v20 = vmul.f32 %v8506_v55, %v8910_v27 }
 0x44b   : > { %v3587_v42 = vrot.slane %v3469_v29, 1  ;;  %v8928_v57 = vpop.eup %5790  ;;  %v4774_v59 = vmul.f32 %v4742_v38, %v8827_v36  ;;  %v3977_v19 = vand.u32 2147483647, %v8917_v56  ;;  %v3220_v46 = vsel %vm2546_vm1, %v3218_v61, %v3219_v3 }
 0x44c   : > { %v4327_v17 = vmul.f32 %v8863_v4, %v4295_v22  ;;  %v4136_v14 = vmul.f32 1.0614054, %v8928_v57  ;;  %v3297_v41 = vadd.f32 %v3220_v46, %v3049_v40  ;;  %v3588_v47 = vrot.slane %v8926_v20, 1 }
 0x44d   : > { %v3717_v54 = vmul.f32 %v8523_v6, %v8901_v31  ;;  %5414 = vmatprep.mubr.f32.mxu1 %v4774_v59  ;;  %v4009_v36 = vmul.f32 0.3275911, %v3977_v19  ;;  %v4425_v9 = vsub.f32 0.0, %v3977_v19  ;;  %v8942_v32 = vmul.f32 %v8523_v6, %v8910_v27 }
 0x44e   : > { %v4359_v8 = vadd.f32 0.2548296, %v4327_v17  ;;  %v4168_v35 = vadd.f32 -1.4531521, %v4136_v14  ;;  %v3418_v48 = vadd.f32 %v3386_v26, %v3297_v41  ;;  %v3589_v21 = vsel %vm2297_vm15, %v3587_v42, %v3588_v47  ;;  %v2726_v26 = vld [vmem:[#allocation2 + $0x130] sm:$0x3] }
 0x44f   : > { %v3835_v34 = vrot.slane %v3717_v54, 2  ;;  %v4041_v18 = vadd.f32 1.0, %v4009_v36  ;;  %v4457_v2 = vmul.f32 %v4425_v9, %v3977_v19  ;;  %v3836_v11 = vrot.slane %v8942_v32, 2  ;;  %v3343_v41 = vld [vmem:[#allocation2 + $0x148] sm:$0x3] }
 0x450   : > { %v4391_v45 = vmul.f32 %v8863_v4, %v4359_v8  ;;  %v4200_v61 = vmul.f32 %v8928_v57, %v4168_v35  ;;  %5792 = vpow2.f32 %v4508_v63  ;;  %v3666_v12 = vadd.f32 %v3589_v21, %v3418_v48 }
 0x451   : > { %v2236_v5 = vmul.f32 %v8419_v16, %v2109_v25  ;;  %5794 = vrcp.f32 %v4041_v18  ;;  %v3837_v38 = vsel %vm2546_vm1, %v3835_v34, %v3836_v11  ;;  %v2485_v40 = vmul.f32 %v8435_v52, %v2109_v25 }
 0x452   : > { %v4551_v29 = vmul.f32 %v5789_v7, %v4391_v45  ;;  %v4232_v22 = vadd.f32 1.4214138, %v4200_v61  ;;  %v8954_v13 = vadd.f32 %v3837_v38, %v3666_v12  ;;  %v4711_v59 = vmul.f32 0.5, %v8762_v1 }
 0x453   : > { %v2356_v4 = vrot.slane %v2236_v5, 1  ;;  %v4510_v63 = vmul.f32 1.442695, %v4457_v2  ;;  %v2152_v16 = vmul.f32 %v8412_v33, %v8649_v28  ;;  %vm4615_vm11 = vcmp.ge.f32.partialorder %v8778_v49, 0.0 }
 0x454   : > { %v4583_v42 = vsub.f32 1.0, %v4551_v29  ;;  %v4264_v7 = vmul.f32 %v8928_v57, %v4232_v22  ;;  %v8963_v17 = vmul.f32 0.70710677, %v8954_v13  ;;  %v2605_v14 = vrot.slane %v2485_v40, 2 }
 0x455   : > { %v2357_v19 = vsel %vm2297_vm15, %v2354_v51, %v2356_v4  ;;  %v2854_v1 = vmul.f32 %v8452_v62, %v2726_v26  ;;  %v8970_v33 = vmul.f32 0.5, %v8821_v24  ;;  %v3102_v49 = vmul.f32 %v8466_v58, %v2726_v26  ;;  %v9018_v4 = vld [vmem:[%s9711_s4 + $0x2] ss:$0 sm:$0xff] }
 0x456   : > { %v4647_v52 = vsub.f32 0.0, %v4583_v42  ;;  %v2433_v46 = vadd.f32 %v2357_v19, %v2152_v16  ;;  %v4296_v54 = vadd.f32 -0.28449672, %v4264_v7  ;;  %v3978_v28 = vand.u32 2147483647, %v8963_v17 }
 0x457   : > { %5796 = vpow2.f32 %v4510_v63  ;;  %v2606_v60 = vsel %vm2546_vm1, %v2603_v43, %v2605_v14  ;;  %v2770_v51 = vmul.f32 %v8490_v50, %v8781_v53  ;;  %v2973_v35 = vrot.slane %v2854_v1, 1 }
 0x458   : > { %v4679_v25 = vsel %vm4615_vm11, %v4583_v42, %v4647_v52  ;;  %v4328_v62 = vmul.f32 %v8928_v57, %v4296_v54  ;;  %v4010_v36 = vmul.f32 0.3275911, %v3978_v28  ;;  %v4426_v9 = vsub.f32 0.0, %v3978_v28 }
 0x459   : > { %v4743_v8 = vadd.f32 1.0, %v4679_v25  ;;  %v2682_v24 = vadd.f32 %v2606_v60, %v2433_v46  ;;  %v3471_v48 = vmul.f32 %v8506_v55, %v3343_v41  ;;  %v3719_v58 = vmul.f32 %v8523_v6, %v3343_v41  ;;  %v9035_v46 = vld [vmem:[%s9711_s4 + $0x4] ss:$0 sm:$0xff]  ;;  %v9049_v41 = vld [vmem:[%s9711_s4 + $0x5] ss:$0 sm:$0xff] }
 0x45a   : > { %v4360_v34 = vadd.f32 0.2548296, %v4328_v62  ;;  %v4042_v45 = vadd.f32 1.0, %v4010_v36  ;;  %v3221_v0 = vrot.slane %v3102_v49, 2  ;;  %vm4616_vm12 = vcmp.ge.f32.partialorder %v8830_v44, 0.0 }
 0x45b   : > { %v4775_v21 = vmul.f32 %v4743_v8, %v4711_v59  ;;  %v4458_v43 = vmul.f32 %v4426_v9, %v3978_v28  ;;  %v2802_v18 = vadd.f32 %v2770_v51, %v2682_v24  ;;  %v2974_v50 = vsel %vm2297_vm15, %v2971_v37, %v2973_v35  ;;  %v9002_v37 = vld [vmem:[%s9711_s4 + $0x1] ss:$0 sm:$0xff]  ;;  %v9073_v44 = vld [vmem:[%s9711_s4 + $0x3] ss:$0 sm:$0xff] }
 0x45c   : > { %v3387_v2 = vmul.f32 %v8537_v23, %v8910_v27  ;;  %v4392_v55 = vmul.f32 %v8928_v57, %v4360_v34  ;;  %5798 = vrcp.f32 %v4042_v45  ;;  %v3222_v6 = vsel %vm2546_vm1, %v3219_v3, %v3221_v0  ;;  %v9068_v34 = vld [vmem:[#allocation2 + $0x158] sm:$0xff] }
 0x45d   : > { %5415 = vmatmul.mubr.f32.gmra.mxu1 %v4775_v21  ;;  %v3590_v61 = vrot.slane %v3471_v48, 1  ;;  %v5793_v12 = vpop.eup %5792  ;;  %v3050_v5 = vadd.f32 %v2974_v50, %v2802_v18  ;;  %v3838_v29 = vrot.slane %v3719_v58, 2  ;;  %v2153_v23 = vmul.f32 %v8995_v15, %v8774_v10  ;;  %v9066_v21 = vld [vmem:[#allocation2 + $0x150] sm:$0xff] }
 0x45e   : > { %v2237_v30 = vmul.f32 %v9002_v37, %v8774_v10  ;;  %v9006_v3 = vpop.eup %5794  ;;  %v4552_v57 = vmul.f32 %v5793_v12, %v4392_v55  ;;  %v9013_v22 = vmul.f32 %v9002_v37, %v8781_v53  ;;  %v2486_v40 = vmul.f32 %v9018_v4, %v8774_v10 }
 0x45f   : > { %v3591_v38 = vsel %vm2297_vm15, %v3588_v47, %v3590_v61  ;;  %v4137_v26 = vmul.f32 1.0614054, %v9006_v3  ;;  %v3298_v42 = vadd.f32 %v3222_v6, %v3050_v5  ;;  %v9025_v20 = vmul.f32 %v9018_v4, %v8781_v53  ;;  %v9089_v5 = vld [vmem:[%s9711_s4 + $0x7] ss:$0 sm:$0xff] }
 0x460   : > { %v2358_v59 = vrot.slane %v2237_v30, 1  ;;  %v4584_v47 = vsub.f32 1.0, %v4552_v57  ;;  %v3839_v63 = vsel %vm2546_vm1, %v3836_v11, %v3838_v29  ;;  %v2359_v16 = vrot.slane %v9013_v22, 1 }
 0x461   : > { %v2607_v7 = vrot.slane %v2486_v40, 2  ;;  %v4169_v19 = vadd.f32 -1.4531521, %v4137_v26  ;;  %v3419_v52 = vadd.f32 %v3387_v2, %v3298_v42  ;;  %v2608_v10 = vrot.slane %v9025_v20, 2 }
 0x462   : > { %v2855_v14 = vmul.f32 %v9035_v46, %v8901_v31  ;;  %v4648_v1 = vsub.f32 0.0, %v4584_v47  ;;  %v2360_v32 = vsel %vm2297_vm15, %v2358_v59, %v2359_v16  ;;  %v9044_v11 = vmul.f32 %v9035_v46, %v8910_v27 }
 0x463   : > { %v3103_v54 = vmul.f32 %v9049_v41, %v8901_v31  ;;  %v4201_v28 = vmul.f32 %v9006_v3, %v4169_v19  ;;  %v3667_v49 = vadd.f32 %v3591_v38, %v3419_v52  ;;  %v2434_v25 = vadd.f32 %v2360_v32, %v2153_v23  ;;  %v9106_v38 = vld [vmem:[%s9711_s4 + $0x8] ss:$0 sm:$0xff] }
 0x464   : > { %v2609_v60 = vsel %vm2546_vm1, %v2607_v7, %v2608_v10  ;;  %v5797_v51 = vpop.eup %5796  ;;  %v4680_v8 = vsel %vm4616_vm12, %v4584_v47, %v4648_v1  ;;  %v2975_v62 = vrot.slane %v2855_v14, 1  ;;  %v2976_v36 = vrot.slane %v9044_v11, 1  ;;  %v2112_v14 = vld [vmem:[#allocation2 + $0x130] sm:$0x3] }
 0x465   : > { %v9062_v9 = vmul.f32 %v9049_v41, %v8910_v27  ;;  %v4744_v24 = vadd.f32 1.0, %v4680_v8  ;;  %v4233_v35 = vadd.f32 1.4214138, %v4201_v28  ;;  %v9064_v48 = vadd.f32 %v3839_v63, %v3667_v49 }
 0x466   : > { %v2683_v58 = vadd.f32 %v2609_v60, %v2434_v25  ;;  %v2771_v45 = vmul.f32 %v9073_v44, %v8901_v31  ;;  %v3223_v0 = vrot.slane %v3103_v54, 2  ;;  %v4512_v55 = vmul.f32 1.442695, %v4458_v43  ;;  %v9120_v54 = vld [vmem:[%s9711_s4 + $0x6] ss:$0 sm:$0xff] }
 0x467   : > { %v3224_v18 = vrot.slane %v9062_v9, 2  ;;  %v4776_v50 = vmul.f32 %v4744_v24, %v8970_v33  ;;  %v4265_v2 = vmul.f32 %v9006_v3, %v4233_v35  ;;  %v9081_v6 = vmul.f32 0.70710677, %v9064_v48 }
 0x468   : > { %v2803_v61 = vadd.f32 %v2771_v45, %v2683_v58  ;;  %v2977_v12 = vsel %vm2297_vm15, %v2975_v62, %v2976_v36  ;;  %v3472_v29 = vmul.f32 %v9089_v5, %v9066_v21  ;;  %v9095_v33 = vmul.f32 %v9089_v5, %v9068_v34  ;;  %v2729_v58 = vld [vmem:[#allocation2 + $0x148] sm:$0x3] }
 0x469   : > { %v9097_v43 = vpop.eup %5798  ;;  %5417 = vmatprep.mubr.f32.mxu1 %v4776_v50  ;;  %v4297_v23 = vadd.f32 -0.28449672, %v4265_v2  ;;  %v3979_v30 = vand.u32 2147483647, %v9081_v6  ;;  %v3225_v57 = vsel %vm2546_vm1, %v3223_v0, %v3224_v18  ;;  %v3720_v40 = vmul.f32 %v9106_v38, %v9066_v21 }
 0x46a   : > { %v4138_v26 = vmul.f32 1.0614054, %v9097_v43  ;;  %v3051_v42 = vadd.f32 %v2977_v12, %v2803_v61  ;;  %v3592_v59 = vrot.slane %v3472_v29, 1  ;;  %v3593_v47 = vrot.slane %v9095_v33, 1 }
 0x46b   : > { %v4329_v63 = vmul.f32 %v9006_v3, %v4297_v23  ;;  %v4011_v7 = vmul.f32 0.3275911, %v3979_v30  ;;  %v4427_v19 = vsub.f32 0.0, %v3979_v30  ;;  %v9115_v52 = vmul.f32 %v9106_v38, %v9068_v34 }
 0x46c   : > { %v4170_v1 = vadd.f32 -1.4531521, %v4138_v26  ;;  %v3299_v32 = vadd.f32 %v3225_v57, %v3051_v42  ;;  %v3388_v28 = vmul.f32 %v9120_v54, %v9066_v21  ;;  %v3840_v60 = vrot.slane %v3720_v40, 2 }
 0x46d   : > { %v4361_v49 = vadd.f32 0.2548296, %v4329_v63  ;;  %v4043_v25 = vadd.f32 1.0, %v4011_v7  ;;  %v3841_v8 = vrot.slane %v9115_v52, 2  ;;  %5800 = vpow2.f32 %v4512_v55 }
 0x46e   : > { %v4202_v62 = vmul.f32 %v9097_v43, %v4170_v1  ;;  %v3420_v24 = vadd.f32 %v3388_v28, %v3299_v32  ;;  %v2239_v35 = vmul.f32 %v9002_v37, %v2112_v14  ;;  %v4459_v0 = vmul.f32 %v4427_v19, %v3979_v30  ;;  %v3346_v32 = vld [vmem:[#allocation2 + $0x160] sm:$0x3] }
 0x46f   : > { %v4393_v45 = vmul.f32 %v9006_v3, %v4361_v49  ;;  %5802 = vrcp.f32 %v4043_v25  ;;  %v3594_v50 = vsel %vm2297_vm15, %v3592_v59, %v3593_v47  ;;  %v2488_v29 = vmul.f32 %v9018_v4, %v2112_v14 }
 0x470   : > { %v4234_v2 = vadd.f32 1.4214138, %v4202_v62  ;;  %v3668_v61 = vadd.f32 %v3594_v50, %v3420_v24  ;;  %v2361_v12 = vrot.slane %v2239_v35, 1  ;;  %v3842_v55 = vsel %vm2546_vm1, %v3840_v60, %v3841_v8 }
 0x471   : > { %v4553_v23 = vmul.f32 %v5797_v51, %v4393_v45  ;;  %v2154_v57 = vmul.f32 %v8995_v15, %v8781_v53  ;;  %v2857_v3 = vmul.f32 %v9035_v46, %v2729_v58  ;;  %v2610_v42 = vrot.slane %v2488_v29, 2 }
 0x472   : > { %v4266_v30 = vmul.f32 %v9097_v43, %v4234_v2  ;;  %v9139_v40 = vadd.f32 %v3842_v55, %v3668_v61  ;;  %v2362_v26 = vsel %vm2297_vm15, %v2359_v16, %v2361_v12  ;;  %v4713_v51 = vmul.f32 0.5, %v8907_v39 }
 0x473   : > { %v4585_v59 = vsub.f32 1.0, %v4553_v23  ;;  %v4514_v63 = vmul.f32 1.442695, %v4459_v0  ;;  %v2435_v7 = vadd.f32 %v2362_v26, %v2154_v57  ;;  %v2611_v53 = vsel %vm2546_vm1, %v2608_v10, %v2610_v42 }
 0x474   : > { %v4298_v19 = vadd.f32 -0.28449672, %v4266_v30  ;;  %v9146_v14 = vmul.f32 0.70710677, %v9139_v40  ;;  %v3105_v1 = vmul.f32 %v9049_v41, %v2729_v58  ;;  %v2772_v16 = vmul.f32 %v9073_v44, %v8910_v27 }
 0x475   : > { %v4649_v22 = vsub.f32 0.0, %v4585_v59  ;;  %v2684_v28 = vadd.f32 %v2611_v53, %v2435_v7  ;;  %v2978_v49 = vrot.slane %v2857_v3, 1  ;;  %vm4617_vm13 = vcmp.ge.f32.partialorder %v8917_v56, 0.0 }
 0x476   : > { %v4330_v39 = vmul.f32 %v9097_v43, %v4298_v19  ;;  %v9157_v25 = vmul.f32 0.5, %v8954_v13  ;;  %v3980_v20 = vand.u32 2147483647, %v9146_v14  ;;  %v3474_v24 = vmul.f32 %v9089_v5, %v3346_v32 }
 0x477   : > { %v4681_v60 = vsel %vm4617_vm13, %v4585_v59, %v4649_v22  ;;  %v2804_v10 = vadd.f32 %v2772_v16, %v2684_v28  ;;  %v2979_v62 = vsel %vm2297_vm15, %v2976_v36, %v2978_v49  ;;  %v3226_v0 = vrot.slane %v3105_v1, 2 }
 0x478   : > { %v4745_v35 = vadd.f32 1.0, %v4681_v60  ;;  %v4362_v58 = vadd.f32 0.2548296, %v4330_v39  ;;  %v4012_v45 = vmul.f32 0.3275911, %v3980_v20  ;;  %vm4618_vm14 = vcmp.ge.f32.partialorder %v8963_v17, 0.0 }
 0x479   : > { %5804 = vpow2.f32 %v4514_v63  ;;  %v3052_v56 = vadd.f32 %v2979_v62, %v2804_v10  ;;  %v3389_v13 = vmul.f32 %v9120_v54, %v9068_v34  ;;  %v3722_v50 = vmul.f32 %v9106_v38, %v3346_v32 }
 0x47a   : > { %v4777_v2 = vmul.f32 %v4745_v35, %v4713_v51  ;;  %v4394_v11 = vmul.f32 %v9097_v43, %v4362_v58  ;;  %v4044_v61 = vadd.f32 1.0, %v4012_v45  ;;  %v3227_v36 = vsel %vm2546_vm1, %v3224_v18, %v3226_v0  ;;  %v5801_v12 = vpop.eup %5800 }
 0x47b   : > { %v4428_v29 = vsub.f32 0.0, %v3980_v20  ;;  %v3300_v23 = vadd.f32 %v3227_v36, %v3052_v56  ;;  %v3595_v55 = vrot.slane %v3474_v24, 1  ;;  %v2240_v57 = vmul.f32 %v9002_v37, %v8901_v31 }
 0x47c   : > { %v9174_v3 = vpop.eup %5802  ;;  %5418 = vmatmul.mubr.f32.gmra.mxu1 %v4777_v2  ;;  %v4554_v30 = vmul.f32 %v5801_v12, %v4394_v11  ;;  %5806 = vrcp.f32 %v4044_v61  ;;  %v2155_v43 = vmul.f32 %v8995_v15, %v8901_v31  ;;  %v9180_v9 = vmul.f32 %v9002_v37, %v8910_v27  ;;  %v9232_v61 = vld [vmem:[#allocation2 + $0x170] sm:$0xff] }
 0x47d   : > { %v4139_v18 = vmul.f32 1.0614054, %v9174_v3  ;;  %v3421_v26 = vadd.f32 %v3389_v13, %v3300_v23  ;;  %v3843_v42 = vrot.slane %v3722_v50, 2  ;;  %v2363_v59 = vrot.slane %v2240_v57, 1  ;;  %v9227_v13 = vld [vmem:[#allocation2 + $0x168] sm:$0xff] }
 0x47e   : > { %v4586_v51 = vsub.f32 1.0, %v4554_v30  ;;  %v3596_v63 = vsel %vm2297_vm15, %v3593_v47, %v3595_v55  ;;  %v2364_v7 = vrot.slane %v9180_v9, 1  ;;  %v2489_v19 = vmul.f32 %v9018_v4, %v8901_v31 }
 0x47f   : > { %v4171_v53 = vadd.f32 -1.4531521, %v4139_v18  ;;  %v3669_v1 = vadd.f32 %v3596_v63, %v3421_v26  ;;  %v3844_v32 = vsel %vm2546_vm1, %v3841_v8, %v3843_v42  ;;  %v9194_v22 = vmul.f32 %v9018_v4, %v8910_v27 }
 0x480   : > { %v4650_v28 = vsub.f32 0.0, %v4586_v51  ;;  %v2365_v33 = vsel %vm2297_vm15, %v2363_v59, %v2364_v7  ;;  %v2612_v47 = vrot.slane %v2489_v19, 2  ;;  %v2858_v16 = vmul.f32 %v9035_v46, %v9066_v21 }
 0x481   : > { %v4203_v31 = vmul.f32 %v9174_v3, %v4171_v53  ;;  %v4460_v49 = vmul.f32 %v4428_v29, %v3980_v20  ;;  %v9202_v39 = vadd.f32 %v3844_v32, %v3669_v1  ;;  %v2613_v52 = vrot.slane %v9194_v22, 2 }
 0x482   : > { %v4682_v8 = vsel %vm4618_vm14, %v4586_v51, %v4650_v28  ;;  %v2436_v60 = vadd.f32 %v2365_v33, %v2155_v43  ;;  %v9209_v10 = vmul.f32 %v9035_v46, %v9068_v34  ;;  %v3106_v62 = vmul.f32 %v9049_v41, %v9066_v21 }
 0x483   : > { %v4746_v24 = vadd.f32 1.0, %v4682_v8  ;;  %v4235_v35 = vadd.f32 1.4214138, %v4203_v31  ;;  %v9214_v58 = vmul.f32 0.5, %v9064_v48  ;;  %v9217_v20 = vmul.f32 0.70710677, %v9202_v39 }
 0x484   : > { %v2614_v17 = vsel %vm2546_vm1, %v2612_v47, %v2613_v52  ;;  %v2980_v45 = vrot.slane %v2858_v16, 1  ;;  %v2981_v0 = vrot.slane %v9209_v10, 1  ;;  %v9225_v56 = vmul.f32 %v9049_v41, %v9068_v34  ;;  %v2115_v16 = vld [vmem:[#allocation2 + $0x148] sm:$0x3] }
 0x485   : > { %v4778_v50 = vmul.f32 %v4746_v24, %v9157_v25  ;;  %v4267_v48 = vmul.f32 %v9174_v3, %v4235_v35  ;;  %v3981_v2 = vand.u32 2147483647, %v9217_v20  ;;  %v3228_v11 = vrot.slane %v3106_v62, 2 }
 0x486   : > { %v5805_v36 = vpop.eup %5804  ;;  %v4516_v12 = vmul.f32 1.442695, %v4460_v49  ;;  %v2685_v29 = vadd.f32 %v2614_v17, %v2436_v60  ;;  %v2773_v23 = vmul.f32 %v9073_v44, %v9066_v21  ;;  %v3229_v55 = vrot.slane %v9225_v56, 2 }
 0x487   : > { %5420 = vmatprep.mubr.f32.mxu1 %v4778_v50  ;;  %v4299_v57 = vadd.f32 -0.28449672, %v4267_v48  ;;  %v4013_v30 = vmul.f32 0.3275911, %v3981_v2  ;;  %v4429_v43 = vsub.f32 0.0, %v3981_v2  ;;  %v3475_v25 = vmul.f32 %v9089_v5, %v9227_v13 }
 0x488   : > { %v2805_v18 = vadd.f32 %v2773_v23, %v2685_v29  ;;  %v2982_v26 = vsel %vm2297_vm15, %v2980_v45, %v2981_v0  ;;  %v9244_v42 = vmul.f32 %v9089_v5, %v9232_v61  ;;  %v3723_v59 = vmul.f32 %v9106_v38, %v9227_v13  ;;  %v2732_v50 = vld [vmem:[#allocation2 + $0x160] sm:$0x3] }
 0x489   : > { %v9248_v51 = vpop.eup %5806  ;;  %v4331_v63 = vmul.f32 %v9174_v3, %v4299_v57  ;;  %v4045_v19 = vadd.f32 1.0, %v4013_v30  ;;  %v3230_v53 = vsel %vm2546_vm1, %v3228_v11, %v3229_v55  ;;  %v3390_v1 = vmul.f32 %v9120_v54, %v9227_v13 }
 0x48a   : > { %v4140_v32 = vmul.f32 1.0614054, %v9248_v51  ;;  %v4461_v28 = vmul.f32 %v4429_v43, %v3981_v2  ;;  %v3053_v33 = vadd.f32 %v2982_v26, %v2805_v18  ;;  %v9259_v47 = vmul.f32 %v9106_v38, %v9232_v61  ;;  %v3349_v26 = vld [vmem:[#allocation2 + $0x178] sm:$0x3] }
 0x48b   : > { %v4363_v31 = vadd.f32 0.2548296, %v4331_v63  ;;  %5808 = vrcp.f32 %v4045_v19  ;;  %v3597_v49 = vrot.slane %v3475_v25, 1  ;;  %v3598_v8 = vrot.slane %v9244_v42, 1  ;;  %v5398_v63 = vpop.f32.mrf.mxu1 }
 0x48c   : > { %v4172_v60 = vadd.f32 -1.4531521, %v4140_v32  ;;  %v3301_v62 = vadd.f32 %v3230_v53, %v3053_v33  ;;  %v3845_v24 = vrot.slane %v3723_v59, 2  ;;  %v3846_v35 = vrot.slane %v9259_v47, 2  ;;  %v5389_v59 = vpop.f32.mrf.mxu0  ;;  %5036 = vst.msk [vmem:[%s9283_s13 + $0x38] sm:$0xff] %vm302_vm0, %v5398_v63 }
 0x48d   : > { %v4395_v17 = vmul.f32 %v9174_v3, %v4363_v31  ;;  %vm4619_vm2 = vcmp.ge.f32.partialorder %v9081_v6, 0.0  ;;  %5810 = vpow2.f32 %v4516_v12  ;;  %v2242_v45 = vmul.f32 %v9002_v37, %v2115_v16  ;;  %5030 = vst.msk [vmem:[%s9283_s13 + $0x8] sm:$0xff] %vm302_vm0, %v5389_v59 }
 0x48e   : > { %v4204_v48 = vmul.f32 %v9248_v51, %v4172_v60  ;;  %v4518_v2 = vmul.f32 1.442695, %v4461_v28  ;;  %v3422_v11 = vadd.f32 %v3390_v1, %v3301_v62  ;;  %v2491_v29 = vmul.f32 %v9018_v4, %v2115_v16  ;;  %v4870_v32 = vpop.f32.mrf.mxu0  ;;  %v4900_v28 = vpop.f32.mrf.mxu1 }
 0x48f   : > { %v4555_v23 = vmul.f32 %v5805_v36, %v4395_v17  ;;  %v3599_v57 = vsel %vm2297_vm15, %v3597_v49, %v3598_v8  ;;  %v2156_v3 = vmul.f32 %v8995_v15, %v8910_v27  ;;  %v2366_v30 = vrot.slane %v2242_v45, 1  ;;  %5029 = vst.msk [vmem:[%s9283_s13] sm:$0xff] %vm302_vm0, %v4870_v32  ;;  %5035 = vst.msk [vmem:[%s9283_s13 + $0x30] sm:$0xff] %vm302_vm0, %v4900_v28 }
 0x490   : > { %v4236_v12 = vadd.f32 1.4214138, %v4204_v48  ;;  %v3670_v43 = vadd.f32 %v3599_v57, %v3422_v11  ;;  %v3847_v25 = vsel %vm2546_vm1, %v3845_v24, %v3846_v35  ;;  %v2860_v18 = vmul.f32 %v9035_v46, %v2732_v50  ;;  %v5392_v22 = vpop.f32.mrf.mxu0  ;;  %v5401_v45 = vpop.f32.mrf.mxu1 }
 0x491   : > { %v4587_v36 = vsub.f32 1.0, %v4555_v23  ;;  %v2367_v19 = vsel %vm2297_vm15, %v2364_v7, %v2366_v30  ;;  %v2615_v53 = vrot.slane %v2491_v29, 2  ;;  %v3108_v27 = vmul.f32 %v9049_v41, %v2732_v50  ;;  %5032 = vst.msk [vmem:[%s9283_s13 + $0x18] sm:$0xff] %vm302_vm0, %v5392_v22  ;;  %5038 = vst.msk [vmem:[%s9283_s13 + $0x48] sm:$0xff] %vm302_vm0, %v5401_v45 }
 0x492   : > { %v4268_v1 = vmul.f32 %v9248_v51, %v4236_v12  ;;  %5812 = vpow2.f32 %v4518_v2  ;;  %v9290_v9 = vadd.f32 %v3847_v25, %v3670_v43  ;;  %v2437_v7 = vadd.f32 %v2367_v19, %v2156_v3  ;;  %v4880_v6 = vpop.f32.mrf.mxu0  ;;  %v4910_v3 = vpop.f32.mrf.mxu1 }
 0x493   : > { %v4651_v33 = vsub.f32 0.0, %v4587_v36  ;;  %v2616_v16 = vsel %vm2546_vm1, %v2613_v52, %v2615_v53  ;;  %v2774_v31 = vmul.f32 %v9073_v44, %v9068_v34  ;;  %v3477_v49 = vmul.f32 %v9089_v5, %v3349_v26  ;;  %5031 = vst.msk [vmem:[%s9283_s13 + $0x10] sm:$0xff] %vm302_vm0, %v4880_v6  ;;  %5037 = vst.msk [vmem:[%s9283_s13 + $0x40] sm:$0xff] %vm302_vm0, %v4910_v3 }
 0x494   : > { %v4300_v60 = vadd.f32 -0.28449672, %v4268_v1  ;;  %v9303_v62 = vmul.f32 0.70710677, %v9290_v9  ;;  %v2686_v24 = vadd.f32 %v2616_v16, %v2437_v7  ;;  %v2983_v17 = vrot.slane %v2860_v18, 1  ;;  %v5395_v63 = vpop.f32.mrf.mxu0 }
 0x495   : > { %v4683_v52 = vsel %vm4619_vm2, %v4587_v36, %v4651_v33  ;;  %v3231_v50 = vrot.slane %v3108_v27, 2  ;;  %v3600_v48 = vrot.slane %v3477_v49, 1  ;;  %v3725_v2 = vmul.f32 %v9106_v38, %v3349_v26  ;;  %5034 = vst.msk [vmem:[%s9283_s13 + $0x28] sm:$0xff] %vm302_vm0, %v5395_v63 }
 0x496   : > { %v4747_v11 = vadd.f32 1.0, %v4683_v52  ;;  %v4332_v29 = vmul.f32 %v9248_v51, %v4300_v60  ;;  %v3982_v23 = vand.u32 2147483647, %v9303_v62  ;;  %v3391_v57 = vmul.f32 %v9120_v54, %v9232_v61  ;;  %v4890_v1 = vpop.f32.mrf.mxu0 }
 0x497   : > { %v2806_v30 = vadd.f32 %v2774_v31, %v2686_v24  ;;  %v2984_v12 = vsel %vm2297_vm15, %v2981_v0, %v2983_v17  ;;  %v3232_v43 = vsel %vm2546_vm1, %v3229_v55, %v3231_v50  ;;  %v3601_v25 = vsel %vm2297_vm15, %v3598_v8, %v3600_v48  ;;  %5033 = vst.msk [vmem:[%s9283_s13 + $0x20] sm:$0xff] %vm302_vm0, %v4890_v1 }
 0x498   : > { %v9329_v18 = vpop.eup %5808  ;;  %v4779_v26 = vmul.f32 %v4747_v11, %v9214_v58  ;;  %v4364_v10 = vadd.f32 0.2548296, %v4332_v29  ;;  %v4014_v59 = vmul.f32 0.3275911, %v3982_v23  ;;  %v3848_v0 = vrot.slane %v3725_v2, 2 }
 0x499   : > { %vm4620_vm3 = vcmp.ge.f32.partialorder %v9146_v14, 0.0  ;;  %v4141_v56 = vmul.f32 1.0614054, %v9329_v18  ;;  %v3054_v55 = vadd.f32 %v2984_v12, %v2806_v30  ;;  %v2157_v42 = vmul.f32 %v8995_v15, %v9066_v21 }
 0x49a   : > { %v2243_v8 = vmul.f32 %v9002_v37, %v9066_v21  ;;  %v5811_v36 = vpop.eup %5810  ;;  %5421 = vmatmul.mubr.f32.gmra.mxu1 %v4779_v26  ;;  %v4396_v58 = vmul.f32 %v9248_v51, %v4364_v10  ;;  %v4046_v19 = vadd.f32 1.0, %v4014_v59  ;;  %v4430_v53 = vsub.f32 0.0, %v3982_v23  ;;  %v9385_v59 = vld [vmem:[#allocation2 + $0x180] sm:$0xff] }
 0x49b   : > { %v9343_v27 = vmul.f32 %v9002_v37, %v9068_v34  ;;  %v4173_v7 = vadd.f32 -1.4531521, %v4141_v56  ;;  %v3302_v32 = vadd.f32 %v3232_v43, %v3054_v55  ;;  %v2492_v33 = vmul.f32 %v9018_v4, %v9066_v21 }
 0x49c   : > { %v2368_v28 = vrot.slane %v2243_v8, 1  ;;  %v4556_v16 = vmul.f32 %v5811_v36, %v4396_v58  ;;  %5814 = vrcp.f32 %v4046_v19  ;;  %v3849_v51 = vsel %vm2546_vm1, %v3846_v35, %v3848_v0  ;;  %v9394_v19 = vld [vmem:[#allocation2 + $0x188] sm:$0xff] }
 0x49d   : > { %v2369_v31 = vrot.slane %v9343_v27, 1  ;;  %v4205_v49 = vmul.f32 %v9329_v18, %v4173_v7  ;;  %v3423_v60 = vadd.f32 %v3391_v57, %v3302_v32  ;;  %v9356_v24 = vmul.f32 %v9018_v4, %v9068_v34 }
 0x49e   : > { %v2617_v17 = vrot.slane %v2492_v33, 2  ;;  %v4588_v22 = vsub.f32 1.0, %v4556_v16  ;;  %v4462_v21 = vmul.f32 %v4430_v53, %v3982_v23  ;;  %v2775_v47 = vmul.f32 %v9073_v44, %v9227_v13 }
 0x49f   : > { %v2370_v45 = vsel %vm2297_vm15, %v2368_v28, %v2369_v31  ;;  %v5813_v35 = vpop.eup %5812  ;;  %v4237_v52 = vadd.f32 1.4214138, %v4205_v49  ;;  %v3671_v50 = vadd.f32 %v3601_v25, %v3423_v60  ;;  %v2618_v2 = vrot.slane %v9356_v24, 2 }
 0x4a0   : > { %v2438_v48 = vadd.f32 %v2370_v45, %v2157_v42  ;;  %v4652_v11 = vsub.f32 0.0, %v4588_v22  ;;  %v2861_v29 = vmul.f32 %v9035_v46, %v9227_v13  ;;  %v9368_v23 = vmul.f32 %v9035_v46, %v9232_v61 }
 0x4a1   : > { %v3109_v57 = vmul.f32 %v9049_v41, %v9227_v13  ;;  %v4269_v6 = vmul.f32 %v9329_v18, %v4237_v52  ;;  %v9373_v3 = vadd.f32 %v3849_v51, %v3671_v50  ;;  %v2619_v30 = vsel %vm2546_vm1, %v2617_v17, %v2618_v2 }
 0x4a2   : > { %v9380_v12 = vmul.f32 %v9049_v41, %v9232_v61  ;;  %v4684_v43 = vsel %vm4620_vm3, %v4588_v22, %v4652_v11  ;;  %v2687_v25 = vadd.f32 %v2619_v30, %v2438_v48  ;;  %v2985_v26 = vrot.slane %v2861_v29, 1 }
 0x4a3   : > { %v2986_v10 = vrot.slane %v9368_v23, 1  ;;  %v5404_v0 = vpop.f32.mrf.mxu1  ;;  %v4716_v63 = vmul.f32 0.5, %v9139_v40  ;;  %v4748_v56 = vadd.f32 1.0, %v4684_v43  ;;  %v4301_v55 = vadd.f32 -0.28449672, %v4269_v6 }
 0x4a4   : > { %v9389_v42 = vmul.f32 0.70710677, %v9373_v3  ;;  %5040 = vst.msk [vmem:[%s9283_s13 + $0x58] sm:$0xff] %vm302_vm0, %v5404_v0  ;;  %v4520_v8 = vmul.f32 1.442695, %v4462_v21  ;;  %v2807_v14 = vadd.f32 %v2775_v47, %v2687_v25  ;;  %v3233_v36 = vrot.slane %v3109_v57, 2 }
 0x4a5   : > { %v3234_v58 = vrot.slane %v9380_v12, 2  ;;  %v4920_v53 = vpop.f32.mrf.mxu1  ;;  %v4780_v1 = vmul.f32 %v4748_v56, %v4716_v63  ;;  %v4333_v7 = vmul.f32 %v9329_v18, %v4301_v55  ;;  %v2987_v32 = vsel %vm2297_vm15, %v2985_v26, %v2986_v10  ;;  %v2118_v26 = vld [vmem:[#allocation2 + $0x160] sm:$0x3] }
 0x4a6   : > { %v3983_v40 = vand.u32 2147483647, %v9389_v42  ;;  %5039 = vst.msk [vmem:[%s9283_s13 + $0x50] sm:$0xff] %vm302_vm0, %v4920_v53  ;;  %v3055_v28 = vadd.f32 %v2987_v32, %v2807_v14  ;;  %v3392_v16 = vmul.f32 %v9120_v54, %v9385_v59  ;;  %v3478_v51 = vmul.f32 %v9089_v5, %v9385_v59  ;;  %v2735_v14 = vld [vmem:[#allocation2 + $0x178] sm:$0x3] }
 0x4a7   : > { %v3235_v33 = vsel %vm2546_vm1, %v3233_v36, %v3234_v58  ;;  %5423 = vmatprep.mubr.f32.mxu1 %v4780_v1  ;;  %v4365_v49 = vadd.f32 0.2548296, %v4333_v7  ;;  %v9412_v22 = vmul.f32 %v9089_v5, %v9394_v19  ;;  %v3726_v47 = vmul.f32 %v9106_v38, %v9385_v59 }
 0x4a8   : > { %v4015_v60 = vmul.f32 0.3275911, %v3983_v40  ;;  %v4431_v17 = vsub.f32 0.0, %v3983_v40  ;;  %v3303_v21 = vadd.f32 %v3235_v33, %v3055_v28  ;;  %v3602_v45 = vrot.slane %v3478_v51, 1 }
 0x4a9   : > { %v9418_v52 = vmul.f32 %v9106_v38, %v9394_v19  ;;  %v9420_v50 = vpop.eup %5814  ;;  %v4397_v48 = vmul.f32 %v9329_v18, %v4365_v49  ;;  %v3603_v57 = vrot.slane %v9412_v22, 1  ;;  %v3850_v43 = vrot.slane %v3726_v47, 2 }
 0x4aa   : > { %v4047_v11 = vadd.f32 1.0, %v4015_v60  ;;  %v4463_v29 = vmul.f32 %v4431_v17, %v3983_v40  ;;  %v4142_v6 = vmul.f32 1.0614054, %v9420_v50  ;;  %v3424_v30 = vadd.f32 %v3392_v16, %v3303_v21 }
 0x4ab   : > { %v3851_v25 = vrot.slane %v9418_v52, 2  ;;  %v4557_v0 = vmul.f32 %v5813_v35, %v4397_v48  ;;  %v3604_v63 = vsel %vm2297_vm15, %v3602_v45, %v3603_v57  ;;  %v4717_v56 = vmul.f32 0.5, %v9202_v39  ;;  %v3352_v48 = vld [vmem:[#allocation2 + $0x190] sm:$0x3] }
 0x4ac   : > { %5816 = vrcp.f32 %v4047_v11  ;;  %v4174_v18 = vadd.f32 -1.4531521, %v4142_v6  ;;  %v3672_v55 = vadd.f32 %v3604_v63, %v3424_v30  ;;  %v2245_v1 = vmul.f32 %v9002_v37, %v2118_v26 }
 0x4ad   : > { %v4589_v36 = vsub.f32 1.0, %v4557_v0  ;;  %v3852_v53 = vsel %vm2546_vm1, %v3850_v43, %v3851_v25  ;;  %v2494_v7 = vmul.f32 %v9018_v4, %v2118_v26  ;;  %5818 = vpow2.f32 %v4520_v8 }
 0x4ae   : > { %v4206_v35 = vmul.f32 %v9420_v50, %v4174_v18  ;;  %v4522_v40 = vmul.f32 1.442695, %v4463_v29  ;;  %v9436_v32 = vadd.f32 %v3852_v53, %v3672_v55  ;;  %vm4621_vm4 = vcmp.ge.f32.partialorder %v9217_v20, 0.0 }
 0x4af   : > { %v4653_v39 = vsub.f32 0.0, %v4589_v36  ;;  %v2371_v28 = vrot.slane %v2245_v1, 1  ;;  %v2863_v33 = vmul.f32 %v9035_v46, %v2735_v14  ;;  %v9441_v51 = vmul.f32 0.5, %v9290_v9 }
 0x4b0   : > { %v4238_v16 = vadd.f32 1.4214138, %v4206_v35  ;;  %v9444_v49 = vmul.f32 0.70710677, %v9436_v32  ;;  %v3111_v60 = vmul.f32 %v9049_v41, %v2735_v14  ;;  %v2158_v8 = vmul.f32 %v8995_v15, %v9068_v34 }
 0x4b1   : > { %v4685_v17 = vsel %vm4621_vm4, %v4589_v36, %v4653_v39  ;;  %v2372_v20 = vsel %vm2297_vm15, %v2369_v31, %v2371_v28  ;;  %v2620_v21 = vrot.slane %v2494_v7, 2  ;;  %5820 = vpow2.f32 %v4522_v40 }
 0x4b2   : > { %v4749_v45 = vadd.f32 1.0, %v4685_v17  ;;  %v4270_v47 = vmul.f32 %v9420_v50, %v4238_v16  ;;  %v9454_v9 = vand.u32 2147483647, %v9444_v49  ;;  %v2439_v11 = vadd.f32 %v2372_v20, %v2158_v8 }
 0x4b3   : > { %v2621_v29 = vsel %vm2546_vm1, %v2618_v2, %v2620_v21  ;;  %v2776_v34 = vmul.f32 %v9073_v44, %v9232_v61  ;;  %v2988_v27 = vrot.slane %v2863_v33, 1  ;;  %v3236_v43 = vrot.slane %v3111_v60, 2 }
 0x4b4   : > { %v4781_v6 = vmul.f32 %v4749_v45, %v4717_v56  ;;  %v4302_v31 = vadd.f32 -0.28449672, %v4270_v47  ;;  %v4016_v30 = vmul.f32 0.3275911, %v9454_v9  ;;  %v2688_v26 = vadd.f32 %v2621_v29, %v2439_v11 }
 0x4b5   : > { %v2989_v0 = vsel %vm2297_vm15, %v2986_v10, %v2988_v27  ;;  %v3480_v63 = vmul.f32 %v9089_v5, %v3352_v48  ;;  %v3728_v24 = vmul.f32 %v9106_v38, %v3352_v48  ;;  %v3237_v56 = vsel %vm2546_vm1, %v3234_v58, %v3236_v43 }
 0x4b6   : > { %5424 = vmatmul.mubr.f32.gmra.mxu1 %v4781_v6  ;;  %v4334_v2 = vmul.f32 %v9420_v50, %v4302_v31  ;;  %v4048_v18 = vadd.f32 1.0, %v4016_v30  ;;  %v2246_v55 = vmul.f32 %v9002_v37, %v9227_v13  ;;  %v4432_v14 = vsub.f32 0.0, %v9454_v9 }
 0x4b7   : > { %v2808_v23 = vadd.f32 %v2776_v34, %v2688_v26  ;;  %v3393_v10 = vmul.f32 %v9120_v54, %v9394_v19  ;;  %v9478_v36 = vmul.f32 %v9002_v37, %v9232_v61  ;;  %v3605_v12 = vrot.slane %v3480_v63, 1 }
 0x4b8   : > { %v4366_v1 = vadd.f32 0.2548296, %v4334_v2  ;;  %5822 = vrcp.f32 %v4048_v18  ;;  %v2373_v7 = vrot.slane %v2246_v55, 1  ;;  %vm4622_vm5 = vcmp.ge.f32.partialorder %v9303_v62, 0.0 }
 0x4b9   : > { %v9480_v53 = vpop.eup %5816  ;;  %v3056_v35 = vadd.f32 %v2989_v0, %v2808_v23  ;;  %v3853_v40 = vrot.slane %v3728_v24, 2  ;;  %v2159_v39 = vmul.f32 %v8995_v15, %v9227_v13  ;;  %v3606_v33 = vsel %vm2297_vm15, %v3603_v57, %v3605_v12 }
 0x4ba   : > { %v4143_v58 = vmul.f32 1.0614054, %v9480_v53  ;;  %v4398_v28 = vmul.f32 %v9420_v50, %v4366_v1  ;;  %v2374_v16 = vrot.slane %v9478_v36, 1  ;;  %v2495_v60 = vmul.f32 %v9018_v4, %v9227_v13  ;;  %v5819_v17 = vpop.eup %5818 }
 0x4bb   : > { %v3304_v20 = vadd.f32 %v3237_v56, %v3056_v35  ;;  %v3854_v21 = vsel %vm2546_vm1, %v3851_v25, %v3853_v40  ;;  %v9498_v45 = vmul.f32 %v9018_v4, %v9232_v61  ;;  %v2864_v13 = vmul.f32 %v9035_v46, %v9385_v59 }
 0x4bc   : > { %v4175_v8 = vadd.f32 -1.4531521, %v4143_v58  ;;  %v4558_v50 = vmul.f32 %v5819_v17, %v4398_v28  ;;  %v2375_v22 = vsel %vm2297_vm15, %v2373_v7, %v2374_v16  ;;  %v2622_v57 = vrot.slane %v2495_v60, 2  ;;  %v5866_v7 = vld [vmem:[#allocation2] sm:$0xff] }
 0x4bd   : > { %v3425_v48 = vadd.f32 %v3393_v10, %v3304_v20  ;;  %v2440_v11 = vadd.f32 %v2375_v22, %v2159_v39  ;;  %v2623_v52 = vrot.slane %v9498_v45, 2  ;;  %v9509_v29 = vmul.f32 %v9035_v46, %v9394_v19 }
 0x4be   : > { %v4207_v47 = vmul.f32 %v9480_v53, %v4175_v8  ;;  %v4590_v25 = vsub.f32 1.0, %v4558_v50  ;;  %v2990_v34 = vrot.slane %v2864_v13, 1  ;;  %v3112_v27 = vmul.f32 %v9049_v41, %v9385_v59  ;;  %v5821_v6 = vpop.eup %5820 }
 0x4bf   : > { %v3673_v30 = vadd.f32 %v3606_v33, %v3425_v48  ;;  %v2624_v43 = vsel %vm2546_vm1, %v2622_v57, %v2623_v52  ;;  %v9518_v26 = vmul.f32 %v9049_v41, %v9394_v19  ;;  %v2777_v24 = vmul.f32 %v9073_v44, %v9385_v59 }
 0x4c0   : > { %v4239_v31 = vadd.f32 1.4214138, %v4207_v47  ;;  %v4654_v0 = vsub.f32 0.0, %v4590_v25  ;;  %v2689_v63 = vadd.f32 %v2624_v43, %v2440_v11  ;;  %v2991_v2 = vrot.slane %v9509_v29, 1  ;;  %v2738_v43 = vld [vmem:[#allocation2 + $0x190] sm:$0x3] }
 0x4c1   : > { %v9524_v56 = vadd.f32 %v3854_v21, %v3673_v30  ;;  %v3238_v55 = vrot.slane %v3112_v27, 2  ;;  %v3239_v23 = vrot.slane %v9518_v26, 2  ;;  %v4464_v1 = vmul.f32 %v4432_v14, %v9454_v9 }
 0x4c2   : > { %v4271_v18 = vmul.f32 %v9480_v53, %v4239_v31  ;;  %v4686_v10 = vsel %vm4622_vm5, %v4590_v25, %v4654_v0  ;;  %v2809_v12 = vadd.f32 %v2777_v24, %v2689_v63  ;;  %v9531_v58 = vmul.f32 %v5866_v7, %v9089_v5  ;;  %v5407_v59 = vpop.f32.mrf.mxu1 }
 0x4c3   : > { %v4750_v35 = vadd.f32 1.0, %v4686_v10  ;;  %v9534_v39 = vmul.f32 0.70710677, %v9524_v56  ;;  %v2992_v28 = vsel %vm2297_vm15, %v2990_v34, %v2991_v2  ;;  %5042 = vst.msk [vmem:[%s9283_s13 + $0x68] sm:$0xff] %vm302_vm0, %v5407_v59  ;;  %v9542_v9 = vmul.f32 %v5866_v7, %v9120_v54  ;;  %v2121_v54 = vld [vmem:[#allocation2 + $0x178] sm:$0x3] }
 0x4c4   : > { %v4303_v40 = vadd.f32 -0.28449672, %v4271_v18  ;;  %v3057_v62 = vadd.f32 %v2992_v28, %v2809_v12  ;;  %v3607_v14 = vrot.slane %v9531_v58, 1  ;;  %v9546_v33 = vmul.f32 %v5866_v7, %v9106_v38  ;;  %v4930_v60 = vpop.f32.mrf.mxu1  ;;  %v3355_v12 = vld [vmem:[#allocation2 + $0x1a8] sm:$0x3] }
 0x4c5   : > { %v9548_v17 = vpop.eup %5822  ;;  %v4782_v8 = vmul.f32 %v4750_v35, %v9441_v51  ;;  %v3985_v21 = vand.u32 2147483647, %v9534_v39  ;;  %v3240_v50 = vsel %vm2546_vm1, %v3238_v55, %v3239_v23  ;;  %5041 = vst.msk [vmem:[%s9283_s13 + $0x60] sm:$0xff] %vm302_vm0, %v4930_v60  ;;  %v4524_v57 = vmul.f32 1.442695, %v4464_v1 }
 0x4c6   : > { %v4335_v20 = vmul.f32 %v9480_v53, %v4303_v40  ;;  %v4144_v22 = vmul.f32 1.0614054, %v9548_v17  ;;  %v3305_v13 = vadd.f32 %v3240_v50, %v3057_v62  ;;  %v3855_v47 = vrot.slane %v9546_v33, 2 }
 0x4c7   : > { %5426 = vmatprep.mubr.f32.mxu1 %v4782_v8  ;;  %v4017_v51 = vmul.f32 0.3275911, %v3985_v21  ;;  %v2248_v34 = vmul.f32 %v9002_v37, %v2121_v54  ;;  %v2497_v30 = vmul.f32 %v9018_v4, %v2121_v54  ;;  %5824 = vpow2.f32 %v4524_v57 }
 0x4c8   : > { %v4367_v48 = vadd.f32 0.2548296, %v4335_v20  ;;  %v4176_v11 = vadd.f32 -1.4531521, %v4144_v22  ;;  %v3426_v25 = vadd.f32 %v9542_v9, %v3305_v13  ;;  %v2160_v55 = vmul.f32 %v8995_v15, %v9232_v61 }
 0x4c9   : > { %v4049_v31 = vadd.f32 1.0, %v4017_v51  ;;  %v2376_v24 = vrot.slane %v2248_v34, 1  ;;  %v2625_v10 = vrot.slane %v2497_v30, 2  ;;  %v2866_v1 = vmul.f32 %v9035_v46, %v2738_v43 }
 0x4ca   : > { %v4399_v27 = vmul.f32 %v9480_v53, %v4367_v48  ;;  %v4208_v0 = vmul.f32 %v9548_v17, %v4176_v11  ;;  %v3674_v63 = vadd.f32 %v3607_v14, %v3426_v25  ;;  %v2778_v15 = vmul.f32 %v9073_v44, %v9394_v19 }
 0x4cb   : > { %5826 = vrcp.f32 %v4049_v31  ;;  %v2377_v4 = vsel %vm2297_vm15, %v2374_v16, %v2376_v24  ;;  %v2626_v36 = vsel %vm2546_vm1, %v2623_v52, %v2625_v10  ;;  %v2993_v16 = vrot.slane %v2866_v1, 1 }
 0x4cc   : > { %v4559_v18 = vmul.f32 %v5821_v6, %v4399_v27  ;;  %v4240_v37 = vadd.f32 1.4214138, %v4208_v0  ;;  %v9571_v53 = vadd.f32 %v3855_v47, %v3674_v63  ;;  %v4719_v6 = vmul.f32 0.5, %v9373_v3 }
 0x4cd   : > { %v2441_v59 = vadd.f32 %v2377_v4, %v2160_v55  ;;  %v3114_v28 = vmul.f32 %v9049_v41, %v2738_v43  ;;  %v3483_v3 = vmul.f32 %v9089_v5, %v3355_v12  ;;  %vm4623_vm6 = vcmp.ge.f32.partialorder %v9389_v42, 0.0 }
 0x4ce   : > { %v4591_v7 = vsub.f32 1.0, %v4559_v18  ;;  %v4272_v61 = vmul.f32 %v9548_v17, %v4240_v37  ;;  %v9582_v35 = vmul.f32 0.70710677, %v9571_v53  ;;  %v4433_v44 = vsub.f32 0.0, %v3985_v21 }
 0x4cf   : > { %v2690_v46 = vadd.f32 %v2626_v36, %v2441_v59  ;;  %v2994_v45 = vsel %vm2297_vm15, %v2991_v2, %v2993_v16  ;;  %v3241_v52 = vrot.slane %v3114_v28, 2  ;;  %v3610_v41 = vrot.slane %v3483_v3, 1 }
 0x4d0   : > { %v4655_v40 = vsub.f32 0.0, %v4591_v7  ;;  %v4304_v62 = vadd.f32 -0.28449672, %v4272_v61  ;;  %v3986_v19 = vand.u32 2147483647, %v9582_v35  ;;  %v3731_v5 = vmul.f32 %v9106_v38, %v3355_v12 }
 0x4d1   : > { %v2810_v8 = vadd.f32 %v2778_v15, %v2690_v46  ;;  %v3242_v48 = vsel %vm2546_vm1, %v3239_v23, %v3241_v52  ;;  %v4465_v51 = vmul.f32 %v4433_v44, %v3985_v21  ;;  %v3611_v25 = vsel %vm2297_vm15, %v3607_v14, %v3610_v41 }
 0x4d2   : > { %v4687_v60 = vsel %vm4623_vm6, %v4591_v7, %v4655_v40  ;;  %v4336_v50 = vmul.f32 %v9548_v17, %v4304_v62  ;;  %v4018_v54 = vmul.f32 0.3275911, %v3986_v19  ;;  %v3858_v11 = vrot.slane %v3731_v5, 2 }
 0x4d3   : > { %v4751_v20 = vadd.f32 1.0, %v4687_v60  ;;  %v3058_v22 = vadd.f32 %v2994_v45, %v2810_v8  ;;  %v4526_v21 = vmul.f32 1.442695, %v4465_v51  ;;  %v4434_v58 = vsub.f32 0.0, %v3986_v19 }
 0x4d4   : > { %v4368_v57 = vadd.f32 0.2548296, %v4336_v50  ;;  %v4050_v13 = vadd.f32 1.0, %v4018_v54  ;;  %v5825_v34 = vpop.eup %5824  ;;  %v3859_v26 = vsel %vm2546_vm1, %v3855_v47, %v3858_v11  ;;  %vm4624_vm15 = vcmp.ge.f32.partialorder %v9444_v49, 0.0 }
 0x4d5   : > { %v4783_v42 = vmul.f32 %v4751_v20, %v4719_v6  ;;  %v3306_v29 = vadd.f32 %v3242_v48, %v3058_v22  ;;  %v4720_v47 = vmul.f32 0.5, %v9436_v32  ;;  %v4466_v10 = vmul.f32 %v4434_v58, %v3986_v19 }
 0x4d6   : > { %v4400_v2 = vmul.f32 %v9548_v17, %v4368_v57  ;;  %5828 = vrcp.f32 %v4050_v13  ;;  %vm4625_vm1 = vcmp.ge.f32.partialorder %v9534_v39, 0.0  ;;  %v4721_v41 = vmul.f32 0.5, %v9524_v56 }
 0x4d7   : > { %5427 = vmatmul.mubr.f32.gmra.mxu1 %v4783_v42  ;;  %v3427_v38 = vadd.f32 %v9542_v9, %v3306_v29  ;;  %5830 = vpow2.f32 %v4526_v21  ;;  %v4528_v32 = vmul.f32 1.442695, %v4466_v10  ;;  %vm4626_vm7 = vcmp.ge.f32.partialorder %v9582_v35, 0.0 }
 0x4d8   : > { %v5827_v27 = vpop.eup %5826  ;;  %v4560_v31 = vmul.f32 %v5825_v34, %v4400_v2 }
 0x4d9   : > { %v4145_v23 = vmul.f32 1.0614054, %v5827_v27  ;;  %v3675_v30 = vadd.f32 %v3611_v25, %v3427_v38 }
 0x4da   : > { %v4592_v43 = vsub.f32 1.0, %v4560_v31  ;;  %v4722_v31 = vmul.f32 0.5, %v9571_v53 }
 0x4db   : > { %v4177_v0 = vadd.f32 -1.4531521, %v4145_v23  ;;  %v9607_v17 = vadd.f32 %v3859_v26, %v3675_v30 }
 0x4dc   : > { %v4656_v63 = vsub.f32 0.0, %v4592_v43 }
 0x4dd   : > { %v4209_v14 = vmul.f32 %v5827_v27, %v4177_v0  ;;  %v9611_v9 = vmul.f32 0.70710677, %v9607_v17 }
 0x4de   : > { %v4688_v33 = vsel %vm4624_vm15, %v4592_v43, %v4656_v63 }
 0x4df   : > { %v4752_v24 = vadd.f32 1.0, %v4688_v33  ;;  %v4241_v18 = vadd.f32 1.4214138, %v4209_v14  ;;  %v3987_v55 = vand.u32 2147483647, %v9611_v9  ;;  %vm4627_vm8 = vcmp.ge.f32.partialorder %v9611_v9, 0.0 }
 0x4e0   : > { %v5410_v37 = vpop.f32.mrf.mxu1 }
 0x4e1   : > { %v4784_v4 = vmul.f32 %v4752_v24, %v4720_v47  ;;  %v4273_v1 = vmul.f32 %v5827_v27, %v4241_v18  ;;  %v4019_v12 = vmul.f32 0.3275911, %v3987_v55  ;;  %5044 = vst.msk [vmem:[%s9283_s13 + $0x78] sm:$0xff] %vm302_vm0, %v5410_v37  ;;  %v4435_v44 = vsub.f32 0.0, %v3987_v55 }
 0x4e2   : > { %v4940_v49 = vpop.f32.mrf.mxu1  ;;  %v4723_v47 = vmul.f32 0.5, %v9607_v17 }
 0x4e3   : > { %v5829_v7 = vpop.eup %5828  ;;  %5429 = vmatprep.mubr.f32.mxu1 %v4784_v4  ;;  %v4305_v6 = vadd.f32 -0.28449672, %v4273_v1  ;;  %v4051_v59 = vadd.f32 1.0, %v4019_v12  ;;  %5043 = vst.msk [vmem:[%s9283_s13 + $0x70] sm:$0xff] %vm302_vm0, %v4940_v49  ;;  %v4467_v52 = vmul.f32 %v4435_v44, %v3987_v55 }
 0x4e4   : > { %v4146_v15 = vmul.f32 1.0614054, %v5829_v7  ;;  %v5831_v28 = vpop.eup %5830 }
 0x4e5   : > { %v4337_v61 = vmul.f32 %v5827_v27, %v4305_v6  ;;  %5832 = vrcp.f32 %v4051_v59  ;;  %v4530_v57 = vmul.f32 1.442695, %v4467_v52 }
 0x4e6   : > { %v4178_v36 = vadd.f32 -1.4531521, %v4146_v15  ;;  %5834 = vpow2.f32 %v4528_v32 }
 0x4e7   : > { %v4369_v16 = vadd.f32 0.2548296, %v4337_v61  ;;  %5836 = vpow2.f32 %v4530_v57 }
 0x4e8   : > { %v4210_v40 = vmul.f32 %v5829_v7, %v4178_v36 }
 0x4e9   : > { %v4401_v46 = vmul.f32 %v5827_v27, %v4369_v16 }
 0x4ea   : > { %v4242_v3 = vadd.f32 1.4214138, %v4210_v40 }
 0x4eb   : > { %v4561_v62 = vmul.f32 %v5831_v28, %v4401_v46 }
 0x4ec   : > { %v4274_v19 = vmul.f32 %v5829_v7, %v4242_v3 }
 0x4ed   : > { %v4593_v60 = vsub.f32 1.0, %v4561_v62 }
 0x4ee   : > { %v4306_v8 = vadd.f32 -0.28449672, %v4274_v19 }
 0x4ef   : > { %v4657_v45 = vsub.f32 0.0, %v4593_v60 }
 0x4f0   : > { %v4338_v20 = vmul.f32 %v5829_v7, %v4306_v8 }
 0x4f1   : > { %v4689_v50 = vsel %vm4625_vm1, %v4593_v60, %v4657_v45 }
 0x4f2   : > { %v5833_v54 = vpop.eup %5832  ;;  %v4753_v22 = vadd.f32 1.0, %v4689_v50  ;;  %v4370_v5 = vadd.f32 0.2548296, %v4338_v20 }
 0x4f3   : > { %v4147_v42 = vmul.f32 1.0614054, %v5833_v54  ;;  %v5835_v51 = vpop.eup %5834 }
 0x4f4   : > { %v4785_v13 = vmul.f32 %v4753_v22, %v4721_v41  ;;  %v4402_v48 = vmul.f32 %v5829_v7, %v4370_v5  ;;  %v5837_v35 = vpop.eup %5836 }
 0x4f5   : > { %v4179_v29 = vadd.f32 -1.4531521, %v4147_v42 }
 0x4f6   : > { %5430 = vmatmul.mubr.f32.gmra.mxu1 %v4785_v13  ;;  %v4562_v11 = vmul.f32 %v5835_v51, %v4402_v48 }
 0x4f7   : > { %v4211_v2 = vmul.f32 %v5833_v54, %v4179_v29 }
 0x4f8   : > { %v4594_v39 = vsub.f32 1.0, %v4562_v11 }
 0x4f9   : > { %v4243_v25 = vadd.f32 1.4214138, %v4211_v2 }
 0x4fa   : > { %v4658_v34 = vsub.f32 0.0, %v4594_v39 }
 0x4fb   : > { %v4275_v56 = vmul.f32 %v5833_v54, %v4243_v25 }
 0x4fc   : > { %v4690_v38 = vsel %vm4626_vm7, %v4594_v39, %v4658_v34  ;;  %v5413_v27 = vpop.f32.mrf.mxu1 }
 0x4fd   : > { %v4754_v26 = vadd.f32 1.0, %v4690_v38  ;;  %v4307_v23 = vadd.f32 -0.28449672, %v4275_v56  ;;  %5046 = vst.msk [vmem:[%s9283_s13 + $0x88] sm:$0xff] %vm302_vm0, %v5413_v27 }
 0x4fe   : > { %v4950_v21 = vpop.f32.mrf.mxu1 }
 0x4ff   : > { %v4786_v30 = vmul.f32 %v4754_v26, %v4722_v31  ;;  %v4339_v43 = vmul.f32 %v5833_v54, %v4307_v23  ;;  %5045 = vst.msk [vmem:[%s9283_s13 + $0x80] sm:$0xff] %vm302_vm0, %v4950_v21 }
 0x501   : > { %5432 = vmatprep.mubr.f32.mxu1 %v4786_v30  ;;  %v4371_v0 = vadd.f32 0.2548296, %v4339_v43 }
 0x503   : > { %v4403_v63 = vmul.f32 %v5833_v54, %v4371_v0 }
 0x505   : > { %v4563_v58 = vmul.f32 %v5837_v35, %v4403_v63 }
 0x507   : > { %v4595_v14 = vsub.f32 1.0, %v4563_v58 }
 0x509   : > { %v4659_v53 = vsub.f32 0.0, %v4595_v14 }
 0x50b   : > { %v4691_v33 = vsel %vm4627_vm8, %v4595_v14, %v4659_v53 }
 0x50c   : > { %v4755_v24 = vadd.f32 1.0, %v4691_v33 }
 0x50e   : > { %v4787_v18 = vmul.f32 %v4755_v24, %v4723_v47 }
 0x510   : > { %5433 = vmatmul.mubr.f32.gmra.mxu1 %v4787_v18 }
 0x51d   : > { %v5416_v55 = vpop.f32.mrf.mxu1 }
 0x51e   : > { %5048 = vst.msk [vmem:[%s9283_s13 + $0x98] sm:$0xff] %vm302_vm0, %v5416_v55 }
 0x51f   : > { %v4960_v10 = vpop.f32.mrf.mxu1 }
 0x520   : > { %5047 = vst.msk [vmem:[%s9283_s13 + $0x90] sm:$0xff] %vm302_vm0, %v4960_v10 }
 0x53c   : > { %v5419_v37 = vpop.f32.mrf.mxu1 }
 0x53d   : > { %5050 = vst.msk [vmem:[%s9283_s13 + $0xa8] sm:$0xff] %vm302_vm0, %v5419_v37 }
 0x53e   : > { %v4970_v9 = vpop.f32.mrf.mxu1 }
 0x53f   : > { %5049 = vst.msk [vmem:[%s9283_s13 + $0xa0] sm:$0xff] %vm302_vm0, %v4970_v9 }
 0x55a   : > { %v5422_v17 = vpop.f32.mrf.mxu1 }
 0x55b   : > { %5052 = vst.msk [vmem:[%s9283_s13 + $0xb8] sm:$0xff] %vm302_vm0, %v5422_v17 }
 0x55c   : > { %v4980_v4 = vpop.f32.mrf.mxu1 }
 0x55d   : > { %5051 = vst.msk [vmem:[%s9283_s13 + $0xb0] sm:$0xff] %vm302_vm0, %v4980_v4 }
 0x576   : > { %v5425_v1 = vpop.f32.mrf.mxu1 }
 0x577   : > { %5054 = vst.msk [vmem:[%s9283_s13 + $0xc8] sm:$0xff] %vm302_vm0, %v5425_v1 }
 0x578   : > { %v4990_v12 = vpop.f32.mrf.mxu1 }
 0x579   : > { %5053 = vst.msk [vmem:[%s9283_s13 + $0xc0] sm:$0xff] %vm302_vm0, %v4990_v12 }
 0x597   : > { %v5428_v49 = vpop.f32.mrf.mxu1 }
 0x598   : > { %5056 = vst.msk [vmem:[%s9283_s13 + $0xd8] sm:$0xff] %vm302_vm0, %v5428_v49 }
 0x599   : > { %v5000_v7 = vpop.f32.mrf.mxu1 }
 0x59a   : > { %5055 = vst.msk [vmem:[%s9283_s13 + $0xd0] sm:$0xff] %vm302_vm0, %v5000_v7 }
 0x5b6   : > { %v5431_v6 = vpop.f32.mrf.mxu1 }
 0x5b7   : > { %5058 = vst.msk [vmem:[%s9283_s13 + $0xe8] sm:$0xff] %vm302_vm0, %v5431_v6 }
 0x5b8   : > { %v5010_v59 = vpop.f32.mrf.mxu1 }
 0x5b9   : > { %5057 = vst.msk [vmem:[%s9283_s13 + $0xe0] sm:$0xff] %vm302_vm0, %v5010_v59 }
 0x5d0   : > { %v5434_v15 = vpop.f32.mrf.mxu1 }
 0x5d1   : > { %5060 = vst.msk [vmem:[%s9283_s13 + $0xf8] sm:$0xff] %vm302_vm0, %v5434_v15 }
 0x5d2   : > { %v5020_v32 = vpop.f32.mrf.mxu1 }
 0x5d3   : > { %5059 = vst.msk [vmem:[%s9283_s13 + $0xf0] sm:$0xff] %vm302_vm0, %v5020_v32 }
 0x5d4   : > { %5908 = shalt.err (!%p5905_p10)
}
 0x5d5   : > { %s5909_s17 = scalar_lea.hbm %s9658_s19, 4096  ;;  %s5913_s7 = scalar_lea.hbm %s9713_s6, 8192 }
 0x5d6   : > { %p5910_p0 = scmp.ne.s32.totalorder %s9658_s19, %s5909_s17  ;;  %p5914_p1 = scmp.lt.s32.totalorder %s9658_s19, %s9713_s6 }
 0x5d7   : > { %p5915_p3 = scmp.lt.s32.totalorder %s5913_s7, %s5909_s17 }
 0x5d8   : > { %p5911_p2 = pnand %p5910_p0, %p9722_p12 }
 0x5d9   : > { %p5916_p6 = por %p5915_p3, %p5914_p1 }
 0x5da   : > { %p5912_p9 = pneg %p5911_p2 }
 0x5dc   : > { %p5917_p11 = pnand %p5916_p6, %p5912_p9 }
 0x5de   : > { %5920 = shalt.err (!%p5917_p11)
}
 0x5df   : > { %s5966_s16 = smov 128   ;;  %s5967_s18 = smov 8  }
 0x5e0   : > { %5469 = dma.vmem_to_hbm [thread:$0]  (%p9722_p12), %s9660_s8, 4096, %s9658_s19, %s5062_s20, %s5966_s16, %s5966_s16, %s5967_s18  }
 0x5e1 PF: > { %s5090_s11 = sand.u32 1, %s5947_s21   ;;  %p9723_p13 = scmp.ne.s32.totalorder %s9719_s10, 0 }
 0x5e2   : > { %p9724_p4 = scmp.ge.s32.totalorder %s5959_s24, 2  ;;  %s5091_s25 = scalar_lea.sflag [#allocation5], %s5090_s11 }
 0x5e4   : > { %p5476_p5 = pnand %p9724_p4, %p9723_p13 }
 0x5e6   : > { %p5477_p7 = pneg %p5476_p5 }
 0x5e8   : > { %5942 = dma.done.wait (%p5477_p7), %s5091_s25, 4096  }
 0x5e9   : > { %5944 = vsyncadd (%p5477_p7), %s5091_s25, 4294963200  ;;  %p19_p8 = scmp.ge.s32.totalorder %s6028_s27, 4   ;;  %s9725_s21 = smov %s5951_s22 }
 0x5ea   : > { %s9726_s22 = smov %s5955_s23  ;;  %s9727_s23 = smov %s6040_s30 }
 0x5eb   : > { %s9728_s24 = smov %s6028_s27  ;;  %21 = sbr.rel (!%p19_p8) target bundleno = 5 (0x5), region = 99 }
 0x5f0   :  { %5096 = vsyncpa [#allocation4], 1 }
 0x5f1   :  { %5098 = vsyncpa [#allocation4 + $0x1], 1 }
 0x5f2   :  { %5099 = vsyncpa [#allocation5], 1 }
 0x5f3   :  { %5101 = vsyncpa [#allocation5 + $0x1], 1 }

</bundles_post_ra>
